<compile_context>
chip_gen: v5e
topology: v5e:2x2
jax: 0.10.0
libtpu: 0.0.40
codegen_flags: <defaults>
</compile_context>

<pallas_src>
import functools
import math

import jax
import jax.numpy as jnp
import numpy as np
from jax.experimental import pallas as pl
from jax.experimental.pallas import tpu as pltpu


def _round_up(v, m):
    return ((v + m - 1) // m) * m


# --------------------------- Pass 1: projection ---------------------------

def _proj_kernel(x_ref, w_ref, a_ref, h_ref, f_ref):
    # h = x @ W on the MXU (bf16 inputs, f32 accumulation).
    h32 = jnp.dot(x_ref[...], w_ref[...], preferred_element_type=jnp.float32)
    hb = h32.astype(jnp.bfloat16)
    h_ref[...] = hb  # value matrix reused by pass 2 (att @ h), stored bf16
    # f = h @ [a1 | a2 | 0 ...]: columns 0/1 are f1/f2; the (T, 128) slab is
    # lane-dense so the store is an unmasked vst (no vst.msk partial stores).
    f_ref[...] = jnp.dot(hb, a_ref[...], preferred_element_type=jnp.float32)


# ------------- Pass 2: masked attention with online softmax ---------------

def _attn_kernel(f1_ref, f2_ref, adj_ref, h_ref, o_ref, m_sc, l_sc, acc_sc,
                 *, tk):
    ki = pl.program_id(1)

    @pl.when(ki == 0)
    def _init():
        m_sc[...] = jnp.full_like(m_sc, -jnp.inf)
        l_sc[...] = jnp.zeros_like(l_sc)
        acc_sc[...] = jnp.zeros_like(acc_sc)

    # e = LeakyReLU(f1 + f2^T), masked by the int8 adjacency tile.
    e = f1_ref[...] + f2_ref[...]                 # (tq,1)+(1,tk) -> (tq,tk)
    e = jnp.maximum(e, 0.01 * e)                  # LeakyReLU in one VALU op
    e = jnp.where(adj_ref[...] != 0, e, jnp.float32(-9.0e15))  # int8 compare

    # Online softmax accumulation over key tiles (flash-attention style).
    m_prev = m_sc[...]
    m_new = jnp.maximum(m_prev, jnp.max(e, axis=1, keepdims=True))
    alpha = jnp.exp(m_prev - m_new)
    p = jnp.exp(e - m_new)
    l_sc[...] = alpha * l_sc[...] + jnp.sum(p, axis=1, keepdims=True)

    # h is fully resident in VMEM; slice out this key tile's value block.
    k0 = pl.multiple_of(ki * tk, 128)
    hk = h_ref[pl.ds(k0, tk), :]
    acc_sc[...] = alpha * acc_sc[...] + jnp.dot(
        p.astype(jnp.bfloat16), hk, preferred_element_type=jnp.float32)
    m_sc[...] = m_new

    @pl.when(ki == pl.num_programs(1) - 1)
    def _finalize():
        hp = acc_sc[...] * pl.reciprocal(l_sc[...], approx=True)  # EUP recip
        # ELU(alpha=1); the min() keeps exp() finite in the untaken branch.
        o_ref[...] = jnp.where(hp > 0, hp, jnp.exp(jnp.minimum(hp, 0.0)) - 1.0)


@functools.partial(jax.jit, static_argnames=("block_q", "block_k"))
def gat_layer(x, W, a1, a2, adj, *, block_q=512, block_k=256):
    """x: [N, Fin], W: [Fin, Fout], a1/a2: [Fout], adj: [N, N] (>0 == edge).

    block_q: query-row tile (sweep 512-1024 on v6e/v5e's 128 MiB VMEM).
    block_k: key-column tile (256 matches the 256-deep MXU contraction).
    """
    N, Fin = x.shape
    Fout = W.shape[1]

    Fp = _round_up(Fout, 128)        # lane-dense h / output columns
    Finp = _round_up(Fin, 128)       # lane-dense x loads in pass 1
    Np128 = _round_up(N, 128)

    TK = min(_round_up(block_k, 128), Np128)
    TQ = min(_round_up(block_q, 128), Np128)
    # v7x megacore: guarantee >= 2 query tiles whenever the padded graph spans
    # at least two 128-row tiles, so the "parallel" qi axis shards across both
    # TensorCores (no effect on v5e/v6e's single core).
    if Np128 >= 256:
        TQ = min(TQ, _round_up(-(-Np128 // 2), 128))
    # Pad N so both tile sizes divide it exactly.
    lcm_qk = TQ * TK // math.gcd(TQ, TK)
    Np = _round_up(N, lcm_qk)
    nbq, nbk = Np // TQ, Np // TK

    # Zero-pad to tile boundaries. Padded W/a rows+cols contribute exact
    # zeros; padded adjacency rows/cols are masked out; padding is sliced off.
    xp = jnp.zeros((Np, Finp), jnp.bfloat16).at[:N, :Fin].set(
        x.astype(jnp.bfloat16))
    Wp = jnp.zeros((Finp, Fp), jnp.bfloat16).at[:Fin, :Fout].set(
        W.astype(jnp.bfloat16))
    ap = jnp.zeros((Fp, 128), jnp.bfloat16)
    ap = ap.at[:Fout, 0].set(a1.reshape(-1).astype(jnp.bfloat16))
    ap = ap.at[:Fout, 1].set(a2.reshape(-1).astype(jnp.bfloat16))
    adj_i8 = jnp.zeros((Np, Np), jnp.int8).at[:N, :N].set(
        (adj > 0).astype(jnp.int8))

    # ---- Pass 1: h = x @ W and f = h @ [a1|a2|0...], tiled over node rows --
    h, f = pl.pallas_call(
        _proj_kernel,
        out_shape=(jax.ShapeDtypeStruct((Np, Fp), jnp.bfloat16),
                   jax.ShapeDtypeStruct((Np, 128), jnp.float32)),
        grid_spec=pltpu.PrefetchScalarGridSpec(
            num_scalar_prefetch=0,
            grid=(nbq,),
            in_specs=[pl.BlockSpec((TQ, Finp), lambda i: (i, 0)),
                      pl.BlockSpec((Finp, Fp), lambda i: (0, 0)),
                      pl.BlockSpec((Fp, 128), lambda i: (0, 0))],
            out_specs=[pl.BlockSpec((TQ, Fp), lambda i: (i, 0)),
                       pl.BlockSpec((TQ, 128), lambda i: (i, 0))]),
        compiler_params=pltpu.CompilerParams(
            dimension_semantics=("parallel",)),
    )(xp, Wp, ap)

    f1 = f[:, 0:1]                   # [Np, 1]
    f2r = f[:, 1].reshape(1, Np)     # [1, Np] (tiny relayout between passes)

    # ---- Pass 2: out = ELU(softmax(mask(LeakyReLU(f1+f2^T))) @ h), tiled ---
    out = pl.pallas_call(
        functools.partial(_attn_kernel, tk=TK),
        out_shape=jax.ShapeDtypeStruct((Np, Fp), jnp.float32),
        grid_spec=pltpu.PrefetchScalarGridSpec(
            num_scalar_prefetch=0,
            grid=(nbq, nbk),                                      # (q, k) tiles
            in_specs=[pl.BlockSpec((TQ, 1), lambda qi, ki: (qi, 0)),    # f1
                      pl.BlockSpec((1, TK), lambda qi, ki: (0, ki)),    # f2^T
                      pl.BlockSpec((TQ, TK), lambda qi, ki: (qi, ki)),  # adj i8
                      pl.BlockSpec((Np, Fp), lambda qi, ki: (0, 0))],   # h (VMEM-resident)
            out_specs=pl.BlockSpec((TQ, Fp), lambda qi, ki: (qi, 0)),
            scratch_shapes=[pltpu.VMEM((TQ, 1), jnp.float32),    # running max
                            pltpu.VMEM((TQ, 1), jnp.float32),    # running sum
                            pltpu.VMEM((TQ, Fp), jnp.float32)]), # accumulator
        compiler_params=pltpu.CompilerParams(
            dimension_semantics=("parallel", "arbitrary")),
    )(f1, f2r, adj_i8, h)

    return out[:N, :Fout]


# ------------------------------ verification ------------------------------

def _xavier_normal(key, shape, gain):
    fan_in, fan_out = shape[0], shape[1]
    std = gain * np.sqrt(2.0 / (fan_in + fan_out))
    return std * jax.random.normal(key, shape, dtype=jnp.float32)


def _reference(x, W, a1, a2, adj, bf16_matmul_inputs=True):
    """Pure-JAX GATLayer.forward. With bf16_matmul_inputs=True the matmul
    operands are rounded to bf16 at the same points as the kernel, so the
    comparison isolates kernel/tiling correctness from MXU input quantization."""
    hi = jax.lax.Precision.HIGHEST

    def rnd(v):
        return v.astype(jnp.bfloat16).astype(jnp.float32) if bf16_matmul_inputs else v

    h = jnp.dot(rnd(x), rnd(W), precision=hi)
    hv = rnd(h)
    f1 = jnp.dot(hv, rnd(a1.reshape(-1, 1)), precision=hi)
    f2 = jnp.dot(hv, rnd(a2.reshape(-1, 1)), precision=hi)
    e = f1 + f2.T
    e = jnp.where(e > 0, e, 0.01 * e)
    att = jnp.where(adj > 0, e, jnp.float32(-9.0e15))
    att = jax.nn.softmax(att, axis=1)
    hp = jnp.dot(rnd(att), hv, precision=hi)
    return jnp.where(hp > 0, hp, jnp.exp(jnp.minimum(hp, 0.0)) - 1.0)


if __name__ == "__main__":
    # N=300 deliberately exercises padding (-> 512), a 2x2 attention grid and
    # the >=2-query-tiles megacore split.
    N, in_features, out_features = 300, 64, 32
    key = jax.random.PRNGKey(0)
    k_x, k_w, k_a1, k_a2, k_adj = jax.random.split(key, 5)

    gain = np.sqrt(2.0)
    W = _xavier_normal(k_w, (in_features, out_features), gain)
    a1 = _xavier_normal(k_a1, (out_features, 1), gain).reshape(-1)
    a2 = _xavier_normal(k_a2, (out_features, 1), gain).reshape(-1)

    x = jax.random.normal(k_x, (N, in_features), dtype=jnp.float32)
    adj = (jax.random.uniform(k_adj, (N, N)) > 0.5).astype(jnp.float32)
    adj = jnp.maximum(adj, jnp.eye(N, dtype=jnp.float32))  # self-loops

    out = jax.block_until_ready(gat_layer(x, W, a1, a2, adj))
    assert out.shape == (N, out_features)

    # Tight check vs a reference with matching bf16 MXU-input rounding.
    ref_matched = _reference(x, W, a1, a2, adj, bf16_matmul_inputs=True)
    np.testing.assert_allclose(np.asarray(out), np.asarray(ref_matched),
                               rtol=3e-2, atol=3e-2)

    # Sanity bound vs the full-f32 (PyTorch-equivalent) math; the gap is the
    # bf16 MXU quantization, any algorithmic bug would show up as O(1) error.
    ref_f32 = _reference(x, W, a1, a2, adj, bf16_matmul_inputs=False)
    max_err = float(jnp.max(jnp.abs(out - ref_f32)))
    assert max_err < 0.25, f"unexpectedly large deviation from f32 math: {max_err}"

    print("KERNEL_OK")
</pallas_src>

<mosaic_0001>
module attributes {stable_mosaic.version = 11 : i64} {
  func.func @_proj_kernel(%arg0: i32, %arg1: memref<256x128xbf16, #tpu.memory_space<vmem>>, %arg2: memref<128x128xbf16, #tpu.memory_space<vmem>>, %arg3: memref<128x128xbf16, #tpu.memory_space<vmem>>, %arg4: memref<256x128xbf16, #tpu.memory_space<vmem>>, %arg5: memref<256x128xf32, #tpu.memory_space<vmem>>) attributes {dimension_semantics = [#tpu.dimension_semantics<parallel>], iteration_bounds = array<i64: 2>, scalar_prefetch = 0 : i64, scratch_operands = 0 : i64, tpu.core_type = #tpu.core_type<tc>, window_params = [{transform_indices = @transform_0, window_bounds = array<i64: 256, 128>}, {pipeline_mode = #tpu.pipeline_mode<synchronous>, transform_indices = @transform_1, window_bounds = array<i64: 128, 128>}, {pipeline_mode = #tpu.pipeline_mode<synchronous>, transform_indices = @transform_2, window_bounds = array<i64: 128, 128>}, {transform_indices = @transform_3, window_bounds = array<i64: 256, 128>}, {transform_indices = @transform_4, window_bounds = array<i64: 256, 128>}]} {
    %c0 = arith.constant 0 : index
    %c0_0 = arith.constant 0 : index
    %0 = vector.load %arg1[%c0, %c0_0] : memref<256x128xbf16, #tpu.memory_space<vmem>>, vector<256x128xbf16>
    %c0_1 = arith.constant 0 : index
    %c0_2 = arith.constant 0 : index
    %1 = vector.load %arg2[%c0_1, %c0_2] : memref<128x128xbf16, #tpu.memory_space<vmem>>, vector<128x128xbf16>
    %cst = arith.constant dense<0.000000e+00> : vector<256x128xf32>
    %2 = tpu.matmul %0, %1, %cst {dimension_numbers = #tpu.dot_dimension_numbers<[1], [0], [0], [1], [0, 0, 1, 1], [], []>} : vector<256x128xbf16>, vector<128x128xbf16>, vector<256x128xf32> -> vector<256x128xf32>
    %3 = arith.truncf %2 : vector<256x128xf32> to vector<256x128xbf16>
    %c0_3 = arith.constant 0 : index
    %c0_4 = arith.constant 0 : index
    %4 = vector.load %arg4[%c0_3, %c0_4] : memref<256x128xbf16, #tpu.memory_space<vmem>>, vector<256x128xbf16>
    tpu.vector_store %arg4[%c0_3, %c0_4], %3 {strides = array<i32>} : memref<256x128xbf16, #tpu.memory_space<vmem>>, vector<256x128xbf16>,
    %c0_5 = arith.constant 0 : index
    %c0_6 = arith.constant 0 : index
    %5 = vector.load %arg3[%c0_5, %c0_6] : memref<128x128xbf16, #tpu.memory_space<vmem>>, vector<128x128xbf16>
    %cst_7 = arith.constant dense<0.000000e+00> : vector<256x128xf32>
    %6 = tpu.matmul %3, %5, %cst_7 {dimension_numbers = #tpu.dot_dimension_numbers<[1], [0], [0], [1], [0, 0, 1, 1], [], []>} : vector<256x128xbf16>, vector<128x128xbf16>, vector<256x128xf32> -> vector<256x128xf32>
    %c0_8 = arith.constant 0 : index
    %c0_9 = arith.constant 0 : index
    %7 = vector.load %arg5[%c0_8, %c0_9] : memref<256x128xf32, #tpu.memory_space<vmem>>, vector<256x128xf32>
    tpu.vector_store %arg5[%c0_8, %c0_9], %6 {strides = array<i32>} : memref<256x128xf32, #tpu.memory_space<vmem>>, vector<256x128xf32>,
    return
  }
  func.func @transform_0(%arg0: i32) -> (i32, i32) {
    %c0_i32 = arith.constant 0 : i32
    %c0_i32_0 = arith.constant 0 : i32
    return %arg0, %c0_i32 : i32, i32
  }
  func.func @transform_1(%arg0: i32) -> (i32, i32) {
    %c0_i32 = arith.constant 0 : i32
    %c0_i32_0 = arith.constant 0 : i32
    %c0_i32_1 = arith.constant 0 : i32
    return %c0_i32, %c0_i32_0 : i32, i32
  }
  func.func @transform_2(%arg0: i32) -> (i32, i32) {
    %c0_i32 = arith.constant 0 : i32
    %c0_i32_0 = arith.constant 0 : i32
    %c0_i32_1 = arith.constant 0 : i32
    return %c0_i32, %c0_i32_0 : i32, i32
  }
  func.func @transform_3(%arg0: i32) -> (i32, i32) {
    %c0_i32 = arith.constant 0 : i32
    %c0_i32_0 = arith.constant 0 : i32
    return %arg0, %c0_i32 : i32, i32
  }
  func.func @transform_4(%arg0: i32) -> (i32, i32) {
    %c0_i32 = arith.constant 0 : i32
    %c0_i32_0 = arith.constant 0 : i32
    return %arg0, %c0_i32 : i32, i32
  }
}

module attributes {stable_mosaic.version = 11 : i64} {
  func.func @_attn_kernel(%arg0: i32, %arg1: i32, %arg2: memref<256x1xf32, #tpu.memory_space<vmem>>, %arg3: memref<1x256xf32, #tpu.memory_space<vmem>>, %arg4: memref<256x256xi8, #tpu.memory_space<vmem>>, %arg5: memref<512x128xbf16, #tpu.memory_space<vmem>>, %arg6: memref<256x128xf32, #tpu.memory_space<vmem>>, %arg7: memref<256x1xf32, #tpu.memory_space<vmem>>, %arg8: memref<256x1xf32, #tpu.memory_space<vmem>>, %arg9: memref<256x128xf32, #tpu.memory_space<vmem>>) attributes {dimension_semantics = [#tpu.dimension_semantics<parallel>, #tpu.dimension_semantics<arbitrary>], iteration_bounds = array<i64: 2, 2>, scalar_prefetch = 0 : i64, scratch_operands = 3 : i64, tpu.core_type = #tpu.core_type<tc>, window_params = [{transform_indices = @transform_0, window_bounds = array<i64: 256, 1>}, {transform_indices = @transform_1, window_bounds = array<i64: 1, 256>}, {transform_indices = @transform_2, window_bounds = array<i64: 256, 256>}, {pipeline_mode = #tpu.pipeline_mode<synchronous>, transform_indices = @transform_3, window_bounds = array<i64: 512, 128>}, {transform_indices = @transform_4, window_bounds = array<i64: 256, 128>}]} {
    %c0_i32 = arith.constant 0 : i32
    %0 = arith.cmpi eq, %arg1, %c0_i32 : i32
    %1 = arith.extui %0 : i1 to i32
    %c0_i32_0 = arith.constant 0 : i32
    %2 = arith.cmpi ne, %1, %c0_i32_0 : i32
    scf.if %2 {
      %cst_24 = arith.constant 0xFF800000 : f32
      %46 = vector.broadcast %cst_24 : f32 to vector<256x1xf32>
      %c0_25 = arith.constant 0 : index
      %c0_26 = arith.constant 0 : index
      %47 = vector.load %arg7[%c0_25, %c0_26] : memref<256x1xf32, #tpu.memory_space<vmem>>, vector<256x1xf32>
      tpu.vector_store %arg7[%c0_25, %c0_26], %46 {strides = array<i32>} : memref<256x1xf32, #tpu.memory_space<vmem>>, vector<256x1xf32>,
      %cst_27 = arith.constant 0.000000e+00 : f32
      %48 = vector.broadcast %cst_27 : f32 to vector<256x1xf32>
      %c0_28 = arith.constant 0 : index
      %c0_29 = arith.constant 0 : index
      %49 = vector.load %arg8[%c0_28, %c0_29] : memref<256x1xf32, #tpu.memory_space<vmem>>, vector<256x1xf32>
      tpu.vector_store %arg8[%c0_28, %c0_29], %48 {strides = array<i32>} : memref<256x1xf32, #tpu.memory_space<vmem>>, vector<256x1xf32>,
      %cst_30 = arith.constant 0.000000e+00 : f32
      %50 = vector.broadcast %cst_30 : f32 to vector<256x128xf32>
      %c0_31 = arith.constant 0 : index
      %c0_32 = arith.constant 0 : index
      %51 = vector.load %arg9[%c0_31, %c0_32] : memref<256x128xf32, #tpu.memory_space<vmem>>, vector<256x128xf32>
      tpu.vector_store %arg9[%c0_31, %c0_32], %50 {strides = array<i32>} : memref<256x128xf32, #tpu.memory_space<vmem>>, vector<256x128xf32>,
    } else {
    }
    %c0 = arith.constant 0 : index
    %c0_1 = arith.constant 0 : index
    %3 = vector.load %arg2[%c0, %c0_1] : memref<256x1xf32, #tpu.memory_space<vmem>>, vector<256x1xf32>
    %c0_2 = arith.constant 0 : index
    %c0_3 = arith.constant 0 : index
    %4 = vector.load %arg3[%c0_2, %c0_3] : memref<1x256xf32, #tpu.memory_space<vmem>>, vector<1x256xf32>
    %5 = vector.broadcast %3 : vector<256x1xf32> to vector<256x256xf32>
    %6 = vector.broadcast %4 : vector<1x256xf32> to vector<256x256xf32>
    %7 = arith.addf %5, %6 : vector<256x256xf32>
    %cst = arith.constant 0.00999999977 : f32
    %8 = vector.broadcast %cst : f32 to vector<256x256xf32>
    %9 = arith.mulf %8, %7 : vector<256x256xf32>
    %10 = arith.maximumf %7, %9 : vector<256x256xf32>
    %c0_4 = arith.constant 0 : index
    %c0_5 = arith.constant 0 : index
    %11 = vector.load %arg4[%c0_4, %c0_5] : memref<256x256xi8, #tpu.memory_space<vmem>>, vector<256x256xi8>
    %c0_i8 = arith.constant 0 : i8
    %12 = vector.broadcast %c0_i8 : i8 to vector<256x256xi8>
    %13 = arith.cmpi ne, %11, %12 : vector<256x256xi8>
    %cst_6 = arith.constant -9.000000e+15 : f32
    %14 = vector.broadcast %cst_6 : f32 to vector<256x256xf32>
    %15 = arith.select %13, %10, %14 : vector<256x256xi1>, vector<256x256xf32>
    %c0_7 = arith.constant 0 : index
    %c0_8 = arith.constant 0 : index
    %16 = vector.load %arg7[%c0_7, %c0_8] : memref<256x1xf32, #tpu.memory_space<vmem>>, vector<256x1xf32>
    %cst_9 = arith.constant dense<0xFF800000> : vector<256xf32>
    %17 = vector.multi_reduction <maximumf>, %15, %cst_9 [1] : vector<256x256xf32> to vector<256xf32>
    %18 = vector.shape_cast %17 : vector<256xf32> to vector<256x1xf32>
    %19 = arith.maximumf %16, %18 : vector<256x1xf32>
    %20 = arith.subf %16, %19 : vector<256x1xf32>
    %21 = math.exp %20 : vector<256x1xf32>
    %22 = vector.broadcast %19 : vector<256x1xf32> to vector<256x256xf32>
    %23 = arith.subf %15, %22 : vector<256x256xf32>
    %24 = math.exp %23 : vector<256x256xf32>
    %c0_10 = arith.constant 0 : index
    %c0_11 = arith.constant 0 : index
    %25 = vector.load %arg8[%c0_10, %c0_11] : memref<256x1xf32, #tpu.memory_space<vmem>>, vector<256x1xf32>
    %26 = arith.mulf %21, %25 : vector<256x1xf32>
    %cst_12 = arith.constant dense<0.000000e+00> : vector<256xf32>
    %27 = vector.multi_reduction <add>, %24, %cst_12 [1] : vector<256x256xf32> to vector<256xf32>
    %28 = vector.shape_cast %27 : vector<256xf32> to vector<256x1xf32>
    %29 = arith.addf %26, %28 : vector<256x1xf32>
    %c0_13 = arith.constant 0 : index
    %c0_14 = arith.constant 0 : index
    %30 = vector.load %arg8[%c0_13, %c0_14] : memref<256x1xf32, #tpu.memory_space<vmem>>, vector<256x1xf32>
    tpu.vector_store %arg8[%c0_13, %c0_14], %29 {strides = array<i32>} : memref<256x1xf32, #tpu.memory_space<vmem>>, vector<256x1xf32>,
    %c256_i32 = arith.constant 256 : i32
    %31 = arith.muli %arg1, %c256_i32 : i32
    %32 = tpu.assume_multiple %31, 128 : i32
    %33 = arith.index_cast %32 : i32 to index
    %c0_15 = arith.constant 0 : index
    %34 = vector.load %arg5[%33, %c0_15] : memref<512x128xbf16, #tpu.memory_space<vmem>>, vector<256x128xbf16>
    %c0_16 = arith.constant 0 : index
    %c0_17 = arith.constant 0 : index
    %35 = vector.load %arg9[%c0_16, %c0_17] : memref<256x128xf32, #tpu.memory_space<vmem>>, vector<256x128xf32>
    %36 = vector.broadcast %21 : vector<256x1xf32> to vector<256x128xf32>
    %37 = arith.mulf %36, %35 : vector<256x128xf32>
    %38 = arith.truncf %24 : vector<256x256xf32> to vector<256x256xbf16>
    %cst_18 = arith.constant dense<0.000000e+00> : vector<256x128xf32>
    %39 = tpu.matmul %38, %34, %cst_18 {dimension_numbers = #tpu.dot_dimension_numbers<[1], [0], [0], [1], [0, 0, 1, 1], [], []>} : vector<256x256xbf16>, vector<256x128xbf16>, vector<256x128xf32> -> vector<256x128xf32>
    %40 = arith.addf %37, %39 : vector<256x128xf32>
    %c0_19 = arith.constant 0 : index
    %c0_20 = arith.constant 0 : index
    %41 = vector.load %arg9[%c0_19, %c0_20] : memref<256x128xf32, #tpu.memory_space<vmem>>, vector<256x128xf32>
    tpu.vector_store %arg9[%c0_19, %c0_20], %40 {strides = array<i32>} : memref<256x128xf32, #tpu.memory_space<vmem>>, vector<256x128xf32>,
    %c0_21 = arith.constant 0 : index
    %c0_22 = arith.constant 0 : index
    %42 = vector.load %arg7[%c0_21, %c0_22] : memref<256x1xf32, #tpu.memory_space<vmem>>, vector<256x1xf32>
    tpu.vector_store %arg7[%c0_21, %c0_22], %19 {strides = array<i32>} : memref<256x1xf32, #tpu.memory_space<vmem>>, vector<256x1xf32>,
    %c1_i32 = arith.constant 1 : i32
    %43 = arith.cmpi eq, %arg1, %c1_i32 : i32
    %44 = arith.extui %43 : i1 to i32
    %c0_i32_23 = arith.constant 0 : i32
    %45 = arith.cmpi ne, %44, %c0_i32_23 : i32
    scf.if %45 {
      %c0_24 = arith.constant 0 : index
      %c0_25 = arith.constant 0 : index
      %46 = vector.load %arg9[%c0_24, %c0_25] : memref<256x128xf32, #tpu.memory_space<vmem>>, vector<256x128xf32>
      %c0_26 = arith.constant 0 : index
      %c0_27 = arith.constant 0 : index
      %47 = vector.load %arg8[%c0_26, %c0_27] : memref<256x1xf32, #tpu.memory_space<vmem>>, vector<256x1xf32>
      %48 = tpu.reciprocal %47 {approx = true} : vector<256x1xf32> -> vector<256x1xf32>
      %49 = vector.broadcast %48 : vector<256x1xf32> to vector<256x128xf32>
      %50 = arith.mulf %46, %49 : vector<256x128xf32>
      %cst_28 = arith.constant 0.000000e+00 : f32
      %51 = vector.broadcast %cst_28 : f32 to vector<256x128xf32>
      %52 = arith.cmpf ogt, %50, %51 : vector<256x128xf32>
      %cst_29 = arith.constant 0.000000e+00 : f32
      %53 = vector.broadcast %cst_29 : f32 to vector<256x128xf32>
      %54 = arith.minimumf %50, %53 : vector<256x128xf32>
      %55 = math.exp %54 : vector<256x128xf32>
      %cst_30 = arith.constant 1.000000e+00 : f32
      %56 = vector.broadcast %cst_30 : f32 to vector<256x128xf32>
      %57 = arith.subf %55, %56 : vector<256x128xf32>
      %58 = arith.select %52, %50, %57 : vector<256x128xi1>, vector<256x128xf32>
      %c0_31 = arith.constant 0 : index
      %c0_32 = arith.constant 0 : index
      %59 = vector.load %arg6[%c0_31, %c0_32] : memref<256x128xf32, #tpu.memory_space<vmem>>, vector<256x128xf32>
      tpu.vector_store %arg6[%c0_31, %c0_32], %58 {strides = array<i32>} : memref<256x128xf32, #tpu.memory_space<vmem>>, vector<256x128xf32>,
    } else {
    }
    return
  }
  func.func @transform_0(%arg0: i32, %arg1: i32) -> (i32, i32) {
    %c0_i32 = arith.constant 0 : i32
    %c0_i32_0 = arith.constant 0 : i32
    return %arg0, %c0_i32 : i32, i32
  }
  func.func @transform_1(%arg0: i32, %arg1: i32) -> (i32, i32) {
    %c0_i32 = arith.constant 0 : i32
    %c0_i32_0 = arith.constant 0 : i32
    return %c0_i32, %arg1 : i32, i32
  }
  func.func @transform_2(%arg0: i32, %arg1: i32) -> (i32, i32) {
    %c0_i32 = arith.constant 0 : i32
    return %arg0, %arg1 : i32, i32
  }
  func.func @transform_3(%arg0: i32, %arg1: i32) -> (i32, i32) {
    %c0_i32 = arith.constant 0 : i32
    %c0_i32_0 = arith.constant 0 : i32
    %c0_i32_1 = arith.constant 0 : i32
    return %c0_i32, %c0_i32_0 : i32, i32
  }
  func.func @transform_4(%arg0: i32, %arg1: i32) -> (i32, i32) {
    %c0_i32 = arith.constant 0 : i32
    %c0_i32_0 = arith.constant 0 : i32
    return %arg0, %c0_i32 : i32, i32
  }
}

</mosaic_0001>

<bundles_post_ra>
// kernel: gat_layer.2
= control target key start
LH: loop header
LB: loop body
LE: loop exit
PB: predicated region body
PF: predicated region fallthrough
CT: control target
= control target key end

     0   :  { %s1256_s15 = smov 0   ;;  %s1402_s0 = inlined_call_operand.vmem [shape: bf16[512,128], index: 0, kind: input, shape index: {}]   ;;  %s1403_s1 = inlined_call_operand.vmem [shape: bf16[128,128], index: 1, kind: input, shape index: {}]   ;;  %s1404_s2 = inlined_call_operand.vmem [shape: bf16[128,128], index: 2, kind: input, shape index: {}]   ;;  %s1405_s3 = inlined_call_operand.vmem [shape: bf16[512,128], index: 3, kind: output, shape index: {0}]   ;;  %s1406_s4 = inlined_call_operand.vmem [shape: f32[512,128], index: 4, kind: output, shape index: {1}]  }
   0x1 LB: > { %s931_s16 = sadd.s32 4294967295, %s1229_s15   ;;  %p935_p0 = scmp.ge.s32.totalorder %s1229_s15, 1  ;;  %s1229_s15 = sphi %s1256_s15, %s15_s15  }
   0x2   : > { %p166_p1 = scmp.lt.s32.totalorder %s1229_s15, 3 }
   0x4   : > { %p167_p2 = pnand %p935_p0, %p166_p1 }
   0x5   : > { %s936_s25 = sshll.u32 (!%p167_p2), %s931_s16, 5 }
   0x6   : > { %170 = sbr.rel (%p167_p2) target bundleno = 442 (0x1ba), region = 32  ;;  %p198_p3 = scmp.lt.s32.totalorder (!%p167_p2), %s936_s25, 63 }
   0xb   : > { %v1095_v0 = vld [vmem:[%s1403_s1 + $0x38] sm:$0xff]  ;;  %v1094_v1 = vld [vmem:[%s1403_s1 + $0x30] sm:$0xff]  ;;  %v1093_v2 = vld [vmem:[%s1403_s1 + $0x28] sm:$0xff]  ;;  %s1408_s25 = smov (!%p198_p3, %s936_s25), 63 }
   0xc   : > { %407 = vmatpush.bf16.msra.mxu0 %v1095_v0  ;;  %1199 = vmatpush.bf16.msra.mxu2 %v1095_v0  ;;  %v1092_v3 = vld [vmem:[%s1403_s1 + $0x20] sm:$0xff]  ;;  %v1091_v4 = vld [vmem:[%s1403_s1 + $0x18] sm:$0xff]  ;;  %v1090_v5 = vld [vmem:[%s1403_s1 + $0x10] sm:$0xff]  ;;  %s937_s6 = sshll.u32 %s1408_s25, 2 }
   0xd   : > { %v1089_v6 = vld [vmem:[%s1403_s1 + $0x8] sm:$0xff]  ;;  %v1088_v7 = vld [vmem:[%s1403_s1] sm:$0xff]  ;;  %s1296_s11 = scalar_lea.vmem %s1402_s0, %s937_s6  ;;  %v1103_v18 = vld [vmem:[%s1404_s2 + $0x38] sm:$0xff]  ;;  %s1343_s7 = scalar_lea.vmem %s1405_s3, %s937_s6 }
   0xe   : > { %v1072_v8 = vld [vmem:[%s1296_s11] sm:$0xff]  ;;  %v1073_v10 = vld [vmem:[%s1296_s11 + $0x8] sm:$0xff]  ;;  %v1074_v12 = vld [vmem:[%s1296_s11 + $0x10] sm:$0xff]  ;;  %720 = vmatpush.bf16.msra.mxu1 %v1103_v18  ;;  %1207 = vmatpush.bf16.msra.mxu3 %v1103_v18  ;;  %s941_s6 = sshll.u32 %s1408_s25, 3 }
   0xf   : > { %v1080_v9 = vld [vmem:[%s1296_s11 + $0x40] sm:$0xff]  ;;  %v1081_v11 = vld [vmem:[%s1296_s11 + $0x48] sm:$0xff]  ;;  %v1082_v13 = vld [vmem:[%s1296_s11 + $0x50] sm:$0xff]  ;;  %s1365_s10 = scalar_lea.vmem %s1406_s4, %s941_s6 }
  0x10   : > { %408 = vmatpush.bf16.msra.mxu0 %v1094_v1  ;;  %1200 = vmatpush.bf16.msra.mxu2 %v1094_v1  ;;  %v1075_v14 = vld [vmem:[%s1296_s11 + $0x18] sm:$0xff]  ;;  %v1076_v16 = vld [vmem:[%s1296_s11 + $0x20] sm:$0xff]  ;;  %v1077_v19 = vld [vmem:[%s1296_s11 + $0x28] sm:$0xff] }
  0x11   : > { %v1083_v15 = vld [vmem:[%s1296_s11 + $0x58] sm:$0xff]  ;;  %v1084_v17 = vld [vmem:[%s1296_s11 + $0x60] sm:$0xff]  ;;  %v1085_v20 = vld [vmem:[%s1296_s11 + $0x68] sm:$0xff] }
  0x12   : > { %v1102_v21 = vld [vmem:[%s1404_s2 + $0x30] sm:$0xff]  ;;  %v1101_v22 = vld [vmem:[%s1404_s2 + $0x28] sm:$0xff]  ;;  %v1100_v23 = vld [vmem:[%s1404_s2 + $0x20] sm:$0xff] }
  0x13   : > { %721 = vmatpush.bf16.msra.mxu1 %v1102_v21  ;;  %1208 = vmatpush.bf16.msra.mxu3 %v1102_v21  ;;  %v1099_v24 = vld [vmem:[%s1404_s2 + $0x18] sm:$0xff]  ;;  %v1078_v25 = vld [vmem:[%s1296_s11 + $0x30] sm:$0xff]  ;;  %v1097_v28 = vld [vmem:[%s1404_s2 + $0x8] sm:$0xff] }
  0x14   : > { %409 = vmatpush.bf16.msra.mxu0 %v1093_v2  ;;  %1201 = vmatpush.bf16.msra.mxu2 %v1093_v2  ;;  %v1086_v26 = vld [vmem:[%s1296_s11 + $0x70] sm:$0xff]  ;;  %v1096_v29 = vld [vmem:[%s1404_s2] sm:$0xff]  ;;  %v1079_v30 = vld [vmem:[%s1296_s11 + $0x38] sm:$0xff] }
  0x15   : > { %v1098_v27 = vld [vmem:[%s1404_s2 + $0x10] sm:$0xff]  ;;  %v1087_v31 = vld [vmem:[%s1296_s11 + $0x78] sm:$0xff] }
  0x17   : > { %722 = vmatpush.bf16.msra.mxu1 %v1101_v22  ;;  %1209 = vmatpush.bf16.msra.mxu3 %v1101_v22 }
  0x18   : > { %410 = vmatpush.bf16.msra.mxu0 %v1092_v3  ;;  %1202 = vmatpush.bf16.msra.mxu2 %v1092_v3 }
  0x1b   : > { %723 = vmatpush.bf16.msra.mxu1 %v1100_v23  ;;  %1210 = vmatpush.bf16.msra.mxu3 %v1100_v23 }
  0x1c   : > { %411 = vmatpush.bf16.msra.mxu0 %v1091_v4  ;;  %1203 = vmatpush.bf16.msra.mxu2 %v1091_v4 }
  0x1f   : > { %724 = vmatpush.bf16.msra.mxu1 %v1099_v24  ;;  %1211 = vmatpush.bf16.msra.mxu3 %v1099_v24 }
  0x20   : > { %412 = vmatpush.bf16.msra.mxu0 %v1090_v5  ;;  %1204 = vmatpush.bf16.msra.mxu2 %v1090_v5 }
  0x23   : > { %725 = vmatpush.bf16.msra.mxu1 %v1098_v27  ;;  %1212 = vmatpush.bf16.msra.mxu3 %v1098_v27 }
  0x24   : > { %413 = vmatpush.bf16.msra.mxu0 %v1089_v6  ;;  %1205 = vmatpush.bf16.msra.mxu2 %v1089_v6 }
  0x27   : > { %726 = vmatpush.bf16.msra.mxu1 %v1097_v28  ;;  %1213 = vmatpush.bf16.msra.mxu3 %v1097_v28 }
  0x28   : > { %414 = vmatpush.bf16.msra.mxu0 %v1088_v7  ;;  %1206 = vmatpush.bf16.msra.mxu2 %v1088_v7 }
  0x2b   : > { %415 = vmatmul.bf16.vlgmr.msra.gmra.mxu0 %v1072_v8  ;;  %455 = vmatmul.bf16.vlgmr.msra.gmra.mxu2 %v1080_v9 }
  0x2c   : > { %727 = vmatpush.bf16.msra.mxu1 %v1096_v29  ;;  %1214 = vmatpush.bf16.msra.mxu3 %v1096_v29 }
  0x3b   : > { %420 = vmatmul.bf16.gmra.mxu0 %v1073_v10  ;;  %460 = vmatmul.bf16.gmra.mxu2 %v1081_v11 }
  0x4b   : > { %425 = vmatmul.bf16.gmra.mxu0 %v1074_v12  ;;  %465 = vmatmul.bf16.gmra.mxu2 %v1082_v13 }
  0x5b   : > { %430 = vmatmul.bf16.gmra.mxu0 %v1075_v14  ;;  %470 = vmatmul.bf16.gmra.mxu2 %v1083_v15 }
  0x6b   : > { %435 = vmatmul.bf16.gmra.mxu0 %v1076_v16  ;;  %475 = vmatmul.bf16.gmra.mxu2 %v1084_v17 }
  0x7b   : > { %440 = vmatmul.bf16.gmra.mxu0 %v1077_v19  ;;  %480 = vmatmul.bf16.gmra.mxu2 %v1085_v20 }
  0x8b   : > { %445 = vmatmul.bf16.gmra.mxu0 %v1078_v25  ;;  %485 = vmatmul.bf16.gmra.mxu2 %v1086_v26 }
  0x9b   : > { %450 = vmatmul.bf16.gmra.mxu0 %v1079_v30  ;;  %490 = vmatmul.bf16.gmra.mxu2 %v1087_v31 }
  0xa8   : > { %v416_v32 = vpop.f32.mrf.mxu0 }
  0xa9   : > { %v496_v33 = vpack.c.bf16 %v416_v32, %v416_v32 }
  0xab   : > { %v608_v36 = vunpack.c.l.b16 %v496_v33 }
  0xae   : > { %v456_v34 = vpop.f32.mrf.mxu2 }
  0xaf   : > { %v512_v40 = vpack.c.bf16 %v456_v34, %v456_v34 }
  0xb0   : > { %v418_v35 = vpop.f32.mrf.mxu0 }
  0xb1   : > { %v497_v37 = vpack.c.bf16 %v418_v35, %v418_v35  ;;  %v1107_v38 = vpack.c.bf16 %v418_v35, %v416_v32  ;;  %v624_v46 = vunpack.c.l.b16 %v512_v40 }
  0xb3   : > { %1108 = vst [vmem:[%s1343_s7] sm:$0xff] %v1107_v38   ;;  %v609_v39 = vunpack.c.l.b16 %v497_v37 }
  0xb5   : > { %v640_v41 = vpack.c.b16 %v609_v39, %v608_v36 }
  0xb6   : > { %v458_v42 = vpop.f32.mrf.mxu2 }
  0xb7   : > { %v513_v43 = vpack.c.bf16 %v458_v42, %v458_v42  ;;  %v1147_v44 = vpack.c.bf16 %v458_v42, %v456_v34  ;;  %728 = vmatmul.bf16.vlgmr.msra.gmra.mxu1 %v640_v41 }
  0xb8   : > { %v421_v45 = vpop.f32.mrf.mxu0 }
  0xb9   : > { %1191 = vst [vmem:[%s1343_s7 + $0x40] sm:$0xff] %v1147_v44   ;;  %v625_v47 = vunpack.c.l.b16 %v513_v43  ;;  %v498_v49 = vpack.c.bf16 %v421_v45, %v421_v45 }
  0xbb   : > { %v648_v48 = vpack.c.b16 %v625_v47, %v624_v46  ;;  %v610_v52 = vunpack.c.l.b16 %v498_v49 }
  0xbd   : > { %768 = vmatmul.bf16.vlgmr.msra.gmra.mxu3 %v648_v48 }
  0xbe   : > { %v461_v50 = vpop.f32.mrf.mxu2 }
  0xbf   : > { %v514_v56 = vpack.c.bf16 %v461_v50, %v461_v50 }
  0xc0   : > { %v423_v51 = vpop.f32.mrf.mxu0 }
  0xc1   : > { %v499_v53 = vpack.c.bf16 %v423_v51, %v423_v51  ;;  %v1112_v54 = vpack.c.bf16 %v423_v51, %v421_v45  ;;  %v626_v62 = vunpack.c.l.b16 %v514_v56 }
  0xc3   : > { %1184 = vst [vmem:[%s1343_s7 + $0x8] sm:$0xff] %v1112_v54   ;;  %v611_v55 = vunpack.c.l.b16 %v499_v53 }
  0xc5   : > { %v641_v57 = vpack.c.b16 %v611_v55, %v610_v52 }
  0xc6   : > { %v463_v58 = vpop.f32.mrf.mxu2 }
  0xc7   : > { %v515_v59 = vpack.c.bf16 %v463_v58, %v463_v58  ;;  %v1152_v60 = vpack.c.bf16 %v463_v58, %v461_v50  ;;  %733 = vmatmul.bf16.gmra.mxu1 %v641_v57 }
  0xc8   : > { %v426_v61 = vpop.f32.mrf.mxu0 }
  0xc9   : > { %1192 = vst [vmem:[%s1343_s7 + $0x48] sm:$0xff] %v1152_v60   ;;  %v627_v63 = vunpack.c.l.b16 %v515_v59  ;;  %v500_v1 = vpack.c.bf16 %v426_v61, %v426_v61 }
  0xcb   : > { %v649_v0 = vpack.c.b16 %v627_v63, %v626_v62  ;;  %v612_v4 = vunpack.c.l.b16 %v500_v1 }
  0xcd   : > { %773 = vmatmul.bf16.gmra.mxu3 %v649_v0 }
  0xce   : > { %v466_v2 = vpop.f32.mrf.mxu2 }
  0xcf   : > { %v516_v8 = vpack.c.bf16 %v466_v2, %v466_v2 }
  0xd0   : > { %v428_v3 = vpop.f32.mrf.mxu0 }
  0xd1   : > { %v501_v5 = vpack.c.bf16 %v428_v3, %v428_v3  ;;  %v1117_v6 = vpack.c.bf16 %v428_v3, %v426_v61  ;;  %v628_v14 = vunpack.c.l.b16 %v516_v8 }
  0xd3   : > { %1185 = vst [vmem:[%s1343_s7 + $0x10] sm:$0xff] %v1117_v6   ;;  %v613_v7 = vunpack.c.l.b16 %v501_v5 }
  0xd5   : > { %v642_v9 = vpack.c.b16 %v613_v7, %v612_v4 }
  0xd6   : > { %v468_v10 = vpop.f32.mrf.mxu2 }
  0xd7   : > { %v517_v11 = vpack.c.bf16 %v468_v10, %v468_v10  ;;  %v1157_v12 = vpack.c.bf16 %v468_v10, %v466_v2  ;;  %738 = vmatmul.bf16.gmra.mxu1 %v642_v9 }
  0xd8   : > { %v431_v13 = vpop.f32.mrf.mxu0 }
  0xd9   : > { %1193 = vst [vmem:[%s1343_s7 + $0x50] sm:$0xff] %v1157_v12   ;;  %v629_v15 = vunpack.c.l.b16 %v517_v11  ;;  %v502_v17 = vpack.c.bf16 %v431_v13, %v431_v13 }
  0xdb   : > { %v650_v16 = vpack.c.b16 %v629_v15, %v628_v14  ;;  %v614_v20 = vunpack.c.l.b16 %v502_v17 }
  0xdd   : > { %778 = vmatmul.bf16.gmra.mxu3 %v650_v16 }
  0xde   : > { %v471_v18 = vpop.f32.mrf.mxu2 }
  0xdf   : > { %v518_v24 = vpack.c.bf16 %v471_v18, %v471_v18 }
  0xe0   : > { %v433_v19 = vpop.f32.mrf.mxu0 }
  0xe1   : > { %v503_v21 = vpack.c.bf16 %v433_v19, %v433_v19  ;;  %v1122_v22 = vpack.c.bf16 %v433_v19, %v431_v13  ;;  %v630_v30 = vunpack.c.l.b16 %v518_v24 }
  0xe3   : > { %1186 = vst [vmem:[%s1343_s7 + $0x18] sm:$0xff] %v1122_v22   ;;  %v615_v23 = vunpack.c.l.b16 %v503_v21 }
  0xe5   : > { %v643_v25 = vpack.c.b16 %v615_v23, %v614_v20 }
  0xe6   : > { %v473_v26 = vpop.f32.mrf.mxu2 }
  0xe7   : > { %v519_v27 = vpack.c.bf16 %v473_v26, %v473_v26  ;;  %v1162_v28 = vpack.c.bf16 %v473_v26, %v471_v18  ;;  %743 = vmatmul.bf16.gmra.mxu1 %v643_v25 }
  0xe8   : > { %v436_v29 = vpop.f32.mrf.mxu0 }
  0xe9   : > { %1194 = vst [vmem:[%s1343_s7 + $0x58] sm:$0xff] %v1162_v28   ;;  %v631_v31 = vunpack.c.l.b16 %v519_v27  ;;  %v504_v33 = vpack.c.bf16 %v436_v29, %v436_v29 }
  0xeb   : > { %v651_v32 = vpack.c.b16 %v631_v31, %v630_v30  ;;  %v616_v36 = vunpack.c.l.b16 %v504_v33 }
  0xed   : > { %783 = vmatmul.bf16.gmra.mxu3 %v651_v32 }
  0xee   : > { %v476_v34 = vpop.f32.mrf.mxu2 }
  0xef   : > { %v520_v40 = vpack.c.bf16 %v476_v34, %v476_v34 }
  0xf0   : > { %v438_v35 = vpop.f32.mrf.mxu0 }
  0xf1   : > { %v505_v37 = vpack.c.bf16 %v438_v35, %v438_v35  ;;  %v1127_v38 = vpack.c.bf16 %v438_v35, %v436_v29  ;;  %v632_v46 = vunpack.c.l.b16 %v520_v40 }
  0xf3   : > { %1187 = vst [vmem:[%s1343_s7 + $0x20] sm:$0xff] %v1127_v38   ;;  %v617_v39 = vunpack.c.l.b16 %v505_v37 }
  0xf5   : > { %v644_v41 = vpack.c.b16 %v617_v39, %v616_v36 }
  0xf6   : > { %v478_v42 = vpop.f32.mrf.mxu2 }
  0xf7   : > { %v521_v43 = vpack.c.bf16 %v478_v42, %v478_v42  ;;  %v1167_v44 = vpack.c.bf16 %v478_v42, %v476_v34  ;;  %748 = vmatmul.bf16.gmra.mxu1 %v644_v41 }
  0xf8   : > { %v441_v45 = vpop.f32.mrf.mxu0 }
  0xf9   : > { %1195 = vst [vmem:[%s1343_s7 + $0x60] sm:$0xff] %v1167_v44   ;;  %v633_v47 = vunpack.c.l.b16 %v521_v43  ;;  %v506_v49 = vpack.c.bf16 %v441_v45, %v441_v45 }
  0xfb   : > { %v652_v48 = vpack.c.b16 %v633_v47, %v632_v46  ;;  %v618_v52 = vunpack.c.l.b16 %v506_v49 }
  0xfd   : > { %788 = vmatmul.bf16.gmra.mxu3 %v652_v48 }
  0xfe   : > { %v481_v50 = vpop.f32.mrf.mxu2 }
  0xff   : > { %v522_v56 = vpack.c.bf16 %v481_v50, %v481_v50 }
 0x100   : > { %v443_v51 = vpop.f32.mrf.mxu0 }
 0x101   : > { %v507_v53 = vpack.c.bf16 %v443_v51, %v443_v51  ;;  %v1132_v54 = vpack.c.bf16 %v443_v51, %v441_v45  ;;  %v634_v62 = vunpack.c.l.b16 %v522_v56 }
 0x103   : > { %1188 = vst [vmem:[%s1343_s7 + $0x28] sm:$0xff] %v1132_v54   ;;  %v619_v55 = vunpack.c.l.b16 %v507_v53 }
 0x105   : > { %v645_v57 = vpack.c.b16 %v619_v55, %v618_v52 }
 0x106   : > { %v483_v58 = vpop.f32.mrf.mxu2 }
 0x107   : > { %v523_v59 = vpack.c.bf16 %v483_v58, %v483_v58  ;;  %v1172_v60 = vpack.c.bf16 %v483_v58, %v481_v50  ;;  %753 = vmatmul.bf16.gmra.mxu1 %v645_v57 }
 0x108   : > { %v446_v61 = vpop.f32.mrf.mxu0 }
 0x109   : > { %1196 = vst [vmem:[%s1343_s7 + $0x68] sm:$0xff] %v1172_v60   ;;  %v635_v63 = vunpack.c.l.b16 %v523_v59  ;;  %v508_v1 = vpack.c.bf16 %v446_v61, %v446_v61 }
 0x10b   : > { %v653_v0 = vpack.c.b16 %v635_v63, %v634_v62  ;;  %v620_v4 = vunpack.c.l.b16 %v508_v1 }
 0x10d   : > { %793 = vmatmul.bf16.gmra.mxu3 %v653_v0 }
 0x10e   : > { %v486_v2 = vpop.f32.mrf.mxu2 }
 0x10f   : > { %v524_v8 = vpack.c.bf16 %v486_v2, %v486_v2 }
 0x110   : > { %v448_v3 = vpop.f32.mrf.mxu0 }
 0x111   : > { %v509_v5 = vpack.c.bf16 %v448_v3, %v448_v3  ;;  %v1137_v6 = vpack.c.bf16 %v448_v3, %v446_v61  ;;  %v636_v14 = vunpack.c.l.b16 %v524_v8 }
 0x113   : > { %1189 = vst [vmem:[%s1343_s7 + $0x30] sm:$0xff] %v1137_v6   ;;  %v621_v7 = vunpack.c.l.b16 %v509_v5 }
 0x115   : > { %v646_v9 = vpack.c.b16 %v621_v7, %v620_v4 }
 0x116   : > { %v488_v10 = vpop.f32.mrf.mxu2 }
 0x117   : > { %v525_v11 = vpack.c.bf16 %v488_v10, %v488_v10  ;;  %v1177_v12 = vpack.c.bf16 %v488_v10, %v486_v2  ;;  %758 = vmatmul.bf16.gmra.mxu1 %v646_v9 }
 0x118   : > { %v451_v13 = vpop.f32.mrf.mxu0 }
 0x119   : > { %1197 = vst [vmem:[%s1343_s7 + $0x70] sm:$0xff] %v1177_v12   ;;  %v637_v15 = vunpack.c.l.b16 %v525_v11  ;;  %v510_v17 = vpack.c.bf16 %v451_v13, %v451_v13 }
 0x11b   : > { %v654_v16 = vpack.c.b16 %v637_v15, %v636_v14  ;;  %v622_v20 = vunpack.c.l.b16 %v510_v17 }
 0x11d   : > { %798 = vmatmul.bf16.gmra.mxu3 %v654_v16 }
 0x11e   : > { %v491_v18 = vpop.f32.mrf.mxu2 }
 0x11f   : > { %v526_v24 = vpack.c.bf16 %v491_v18, %v491_v18 }
 0x120   : > { %v453_v19 = vpop.f32.mrf.mxu0 }
 0x121   : > { %v511_v21 = vpack.c.bf16 %v453_v19, %v453_v19  ;;  %v1142_v22 = vpack.c.bf16 %v453_v19, %v451_v13  ;;  %v638_v29 = vunpack.c.l.b16 %v526_v24 }
 0x123   : > { %1190 = vst [vmem:[%s1343_s7 + $0x38] sm:$0xff] %v1142_v22   ;;  %v623_v23 = vunpack.c.l.b16 %v511_v21 }
 0x125   : > { %v647_v25 = vpack.c.b16 %v623_v23, %v622_v20 }
 0x126   : > { %v493_v26 = vpop.f32.mrf.mxu2 }
 0x127   : > { %v527_v27 = vpack.c.bf16 %v493_v26, %v493_v26  ;;  %v1182_v28 = vpack.c.bf16 %v493_v26, %v491_v18  ;;  %763 = vmatmul.bf16.gmra.mxu1 %v647_v25 }
 0x129   : > { %1198 = vst [vmem:[%s1343_s7 + $0x78] sm:$0xff] %v1182_v28   ;;  %v639_v30 = vunpack.c.l.b16 %v527_v27 }
 0x12b   : > { %v655_v31 = vpack.c.b16 %v639_v30, %v638_v29 }
 0x12d   : > { %803 = vmatmul.bf16.gmra.mxu3 %v655_v31 }
 0x134   : > { %v729_v32 = vpop.f32.mrf.mxu1 }
 0x135   : > { %809 = vst [vmem:[%s1365_s10] sm:$0xff] %v729_v32 }
 0x13c   : > { %v731_v33 = vpop.f32.mrf.mxu1 }
 0x13d   : > { %810 = vst [vmem:[%s1365_s10 + $0x8] sm:$0xff] %v731_v33 }
 0x140   : > { %v769_v34 = vpop.f32.mrf.mxu3 }
 0x141   : > { %825 = vst [vmem:[%s1365_s10 + $0x80] sm:$0xff] %v769_v34 }
 0x144   : > { %v734_v35 = vpop.f32.mrf.mxu1 }
 0x145   : > { %811 = vst [vmem:[%s1365_s10 + $0x10] sm:$0xff] %v734_v35 }
 0x148   : > { %v771_v36 = vpop.f32.mrf.mxu3 }
 0x149   : > { %826 = vst [vmem:[%s1365_s10 + $0x88] sm:$0xff] %v771_v36 }
 0x14c   : > { %v736_v37 = vpop.f32.mrf.mxu1 }
 0x14d   : > { %812 = vst [vmem:[%s1365_s10 + $0x18] sm:$0xff] %v736_v37 }
 0x150   : > { %v774_v38 = vpop.f32.mrf.mxu3 }
 0x151   : > { %827 = vst [vmem:[%s1365_s10 + $0x90] sm:$0xff] %v774_v38 }
 0x154   : > { %v739_v39 = vpop.f32.mrf.mxu1 }
 0x155   : > { %813 = vst [vmem:[%s1365_s10 + $0x20] sm:$0xff] %v739_v39 }
 0x158   : > { %v776_v40 = vpop.f32.mrf.mxu3 }
 0x159   : > { %828 = vst [vmem:[%s1365_s10 + $0x98] sm:$0xff] %v776_v40 }
 0x15c   : > { %v741_v41 = vpop.f32.mrf.mxu1 }
 0x15d   : > { %814 = vst [vmem:[%s1365_s10 + $0x28] sm:$0xff] %v741_v41 }
 0x160   : > { %v779_v42 = vpop.f32.mrf.mxu3 }
 0x161   : > { %829 = vst [vmem:[%s1365_s10 + $0xa0] sm:$0xff] %v779_v42 }
 0x164   : > { %v744_v43 = vpop.f32.mrf.mxu1 }
 0x165   : > { %815 = vst [vmem:[%s1365_s10 + $0x30] sm:$0xff] %v744_v43 }
 0x168   : > { %v781_v44 = vpop.f32.mrf.mxu3 }
 0x169   : > { %830 = vst [vmem:[%s1365_s10 + $0xa8] sm:$0xff] %v781_v44 }
 0x16c   : > { %v746_v45 = vpop.f32.mrf.mxu1 }
 0x16d   : > { %816 = vst [vmem:[%s1365_s10 + $0x38] sm:$0xff] %v746_v45 }
 0x170   : > { %v784_v46 = vpop.f32.mrf.mxu3 }
 0x171   : > { %831 = vst [vmem:[%s1365_s10 + $0xb0] sm:$0xff] %v784_v46 }
 0x174   : > { %v749_v47 = vpop.f32.mrf.mxu1 }
 0x175   : > { %817 = vst [vmem:[%s1365_s10 + $0x40] sm:$0xff] %v749_v47 }
 0x178   : > { %v786_v48 = vpop.f32.mrf.mxu3 }
 0x179   : > { %832 = vst [vmem:[%s1365_s10 + $0xb8] sm:$0xff] %v786_v48 }
 0x17c   : > { %v751_v49 = vpop.f32.mrf.mxu1 }
 0x17d   : > { %818 = vst [vmem:[%s1365_s10 + $0x48] sm:$0xff] %v751_v49 }
 0x180   : > { %v789_v50 = vpop.f32.mrf.mxu3 }
 0x181   : > { %833 = vst [vmem:[%s1365_s10 + $0xc0] sm:$0xff] %v789_v50 }
 0x184   : > { %v754_v51 = vpop.f32.mrf.mxu1 }
 0x185   : > { %819 = vst [vmem:[%s1365_s10 + $0x50] sm:$0xff] %v754_v51 }
 0x188   : > { %v791_v52 = vpop.f32.mrf.mxu3 }
 0x189   : > { %834 = vst [vmem:[%s1365_s10 + $0xc8] sm:$0xff] %v791_v52 }
 0x18c   : > { %v756_v53 = vpop.f32.mrf.mxu1 }
 0x18d   : > { %820 = vst [vmem:[%s1365_s10 + $0x58] sm:$0xff] %v756_v53 }
 0x190   : > { %v794_v54 = vpop.f32.mrf.mxu3 }
 0x191   : > { %835 = vst [vmem:[%s1365_s10 + $0xd0] sm:$0xff] %v794_v54 }
 0x194   : > { %v759_v55 = vpop.f32.mrf.mxu1 }
 0x195   : > { %821 = vst [vmem:[%s1365_s10 + $0x60] sm:$0xff] %v759_v55 }
 0x198   : > { %v796_v56 = vpop.f32.mrf.mxu3 }
 0x199   : > { %836 = vst [vmem:[%s1365_s10 + $0xd8] sm:$0xff] %v796_v56 }
 0x19c   : > { %v761_v57 = vpop.f32.mrf.mxu1 }
 0x19d   : > { %822 = vst [vmem:[%s1365_s10 + $0x68] sm:$0xff] %v761_v57 }
 0x1a0   : > { %v799_v58 = vpop.f32.mrf.mxu3 }
 0x1a1   : > { %837 = vst [vmem:[%s1365_s10 + $0xe0] sm:$0xff] %v799_v58 }
 0x1a4   : > { %v764_v59 = vpop.f32.mrf.mxu1 }
 0x1a5   : > { %823 = vst [vmem:[%s1365_s10 + $0x70] sm:$0xff] %v764_v59 }
 0x1a8   : > { %v801_v60 = vpop.f32.mrf.mxu3 }
 0x1a9   : > { %838 = vst [vmem:[%s1365_s10 + $0xe8] sm:$0xff] %v801_v60 }
 0x1ac   : > { %v766_v61 = vpop.f32.mrf.mxu1 }
 0x1ad   : > { %824 = vst [vmem:[%s1365_s10 + $0x78] sm:$0xff] %v766_v61 }
 0x1b0   : > { %v804_v62 = vpop.f32.mrf.mxu3 }
 0x1b1   : > { %839 = vst [vmem:[%s1365_s10 + $0xf0] sm:$0xff] %v804_v62 }
 0x1b8   : > { %v806_v63 = vpop.f32.mrf.mxu3 }
 0x1b9   : > { %840 = vst [vmem:[%s1365_s10 + $0xf8] sm:$0xff] %v806_v63 }
 0x1ba PF: > { %s15_s15 = sadd.s32 1, %s1229_s15  }
 0x1bb   : > { %p12_p4 = scmp.ge.s32.totalorder %s15_s15, 4  }
 0x1bd   :  { %14 = sbr.rel (!%p12_p4) target bundleno = 1 (0x1), region = 74 }

// kernel: gat_layer.3
= control target key start
LH: loop header
LB: loop body
LE: loop exit
PB: predicated region body
PF: predicated region fallthrough
CT: control target
= control target key end

     0   :  { %s3968_s15 = smov 0   ;;  %s3970_s16 = smov 0   ;;  %s5893_s0 = inlined_call_operand.vmem [shape: f32[512,1], index: 0, kind: input, shape index: {}]   ;;  %s5894_s1 = inlined_call_operand.vmem [shape: f32[1,512], index: 1, kind: input, shape index: {}]   ;;  %s5895_s2 = inlined_call_operand.vmem [shape: s8[512,512], index: 2, kind: input, shape index: {}]   ;;  %s5896_s3 = inlined_call_operand.vmem [shape: bf16[512,128], index: 3, kind: input, shape index: {}]   ;;  %s5897_s4 = inlined_call_operand.vmem [shape: f32[512,128], index: 4, kind: output, shape index: {}]  }
   0x1   :  { %s3972_s17 = smov 0   ;;  %s3974_s18 = smov 0  }
   0x2   :  { %s3976_s19 = smov 0   ;;  %s3978_s20 = smov 0  }
   0x3   :  { %s3980_s21 = smov 0  }
   0x4 LB: > { %s23_s22 = sadd.s32 1, %s3929_s19  ;;  %s26_s23 = sadd.s32 1, %s3933_s20  ;;  %s3937_s21 = sphi %s3980_s21, %s14_s21   ;;  %s3933_s20 = sphi %s3978_s20, %s6234_s20   ;;  %s3929_s19 = sphi %s3976_s19, %s6233_s19   ;;  %s3925_s18 = sphi %s3974_s18, %s6232_s18   ;;  %s3921_s17 = sphi %s3972_s17, %s6231_s17   ;;  %s3917_s16 = sphi %s3970_s16, %s6230_s16   ;;  %s3913_s15 = sphi %s3968_s15, %s6229_s15  }
   0x5   : > { %p24_p0 = scmp.ge.s32.totalorder %s23_s22, 2  ;;  %p94_p1 = scmp.ne.s32.totalorder %s3917_s16, %s3913_s15 }
   0x6   : > { %p95_p2 = scmp.eq.s32.totalorder %s3937_s21, 0  ;;  %s87_s27 = sadd.s32 1, %s3917_s16 }
   0x7   : > { %s6236_s22 = smov (%p24_p0, %s23_s22), 0  ;;  %s6238_s23 = smov (!%p24_p0, %s26_s23), %s3933_s20 }
   0x8   : > { %p96_p3 = por %p95_p2, %p94_p1  ;;  %p28_p4 = scmp.ge.s32.totalorder %s6238_s23, 2 }
   0x9   : > { %s83_s24 = ssub.s32 %s3929_s19, %s6236_s22  ;;  %p3349_p6 = scmp.ge.s32.totalorder %s3937_s21, 4 }
   0xa   : > { %s6240_s23 = smov (%p28_p4, %s6238_s23), 0 }
   0xb   : > { %s82_s25 = ssub.s32 %s3933_s20, %s6240_s23  ;;  %170 = sbr.rel (%p3349_p6) target bundleno = 39 (0x27), region = 20 }
   0xc   : > { %s84_s26 = sor.u32 %s83_s24, %s82_s25 }
   0xd   : > { %p85_p5 = scmp.eq.s32.totalorder %s84_s26, 0 }
   0xf   : > { %s4019_s28 = scalar_select %p85_p5, %s3917_s16, %s87_s27  }
  0x10   : > { %190 = sbr.rel (!%p96_p3) target bundleno = 39 (0x27), region = 32  ;;  %s192_s29 = sand.u32 (%p96_p3), 1, %s3917_s16  }
  0x11   : > { %s3352_s30 = sshll.u32 (%p96_p3), %s3929_s19, 1  ;;  %s3350_s5 = sshll.u32 (%p96_p3), %s192_s29, 7 }
  0x12   : > { %s3464_s6 = sshll.u32 (%p96_p3), %s3933_s20, 5  ;;  %s194_s12 = scalar_lea.vmem (%p96_p3), [#allocation5], %s3350_s5 }
  0x13   : > { %s198_s7 = sadd.s32 (%p96_p3), %s3464_s6, %s3352_s30 }
  0x14   : > { %s3354_s8 = sshll.u32 (%p96_p3), %s198_s7, 3 }
  0x15   : > { %s4028_s11 = scalar_lea.vmem %s5895_s2, %s3354_s8 }
  0x16   : > { %v213_v0 = vld [vmem:[%s4028_s11] sm:$0xff]  ;;  %v215_v1 = vld [vmem:[%s4028_s11 + $0x8] sm:$0xff] }
  0x17   : > { %v217_v2 = vld [vmem:[%s4028_s11 + $0x20] sm:$0xff]  ;;  %214 = vst [vmem:[%s194_s12] sm:$0xff] %v213_v0  ;;  %v219_v3 = vld [vmem:[%s4028_s11 + $0x28] sm:$0xff] }
  0x18   : > { %216 = vst [vmem:[%s194_s12 + $0x8] sm:$0xff] %v215_v1  ;;  %v221_v4 = vld [vmem:[%s4028_s11 + $0x40] sm:$0xff]  ;;  %v223_v5 = vld [vmem:[%s4028_s11 + $0x48] sm:$0xff] }
  0x19   : > { %218 = vst [vmem:[%s194_s12 + $0x10] sm:$0xff] %v217_v2  ;;  %v225_v6 = vld [vmem:[%s4028_s11 + $0x60] sm:$0xff]  ;;  %v227_v7 = vld [vmem:[%s4028_s11 + $0x68] sm:$0xff] }
  0x1a   : > { %220 = vst [vmem:[%s194_s12 + $0x18] sm:$0xff] %v219_v3  ;;  %v229_v8 = vld [vmem:[%s4028_s11 + $0x80] sm:$0xff]  ;;  %v231_v9 = vld [vmem:[%s4028_s11 + $0x88] sm:$0xff] }
  0x1b   : > { %222 = vst [vmem:[%s194_s12 + $0x20] sm:$0xff] %v221_v4  ;;  %v233_v10 = vld [vmem:[%s4028_s11 + $0xa0] sm:$0xff]  ;;  %v235_v11 = vld [vmem:[%s4028_s11 + $0xa8] sm:$0xff] }
  0x1c   : > { %224 = vst [vmem:[%s194_s12 + $0x28] sm:$0xff] %v223_v5  ;;  %v237_v12 = vld [vmem:[%s4028_s11 + $0xc0] sm:$0xff]  ;;  %v239_v13 = vld [vmem:[%s4028_s11 + $0xc8] sm:$0xff] }
  0x1d   : > { %226 = vst [vmem:[%s194_s12 + $0x30] sm:$0xff] %v225_v6  ;;  %v241_v14 = vld [vmem:[%s4028_s11 + $0xe0] sm:$0xff]  ;;  %v243_v15 = vld [vmem:[%s4028_s11 + $0xe8] sm:$0xff] }
  0x1e   : > { %228 = vst [vmem:[%s194_s12 + $0x38] sm:$0xff] %v227_v7 }
  0x1f   : > { %230 = vst [vmem:[%s194_s12 + $0x40] sm:$0xff] %v229_v8 }
  0x20   : > { %232 = vst [vmem:[%s194_s12 + $0x48] sm:$0xff] %v231_v9 }
  0x21   : > { %234 = vst [vmem:[%s194_s12 + $0x50] sm:$0xff] %v233_v10 }
  0x22   : > { %236 = vst [vmem:[%s194_s12 + $0x58] sm:$0xff] %v235_v11 }
  0x23   : > { %238 = vst [vmem:[%s194_s12 + $0x60] sm:$0xff] %v237_v12 }
  0x24   : > { %240 = vst [vmem:[%s194_s12 + $0x68] sm:$0xff] %v239_v13 }
  0x25   : > { %242 = vst [vmem:[%s194_s12 + $0x70] sm:$0xff] %v241_v14 }
  0x26   : > { %244 = vst [vmem:[%s194_s12 + $0x78] sm:$0xff] %v243_v15 }
  0x27 PF: > { %p3355_p7 = scmp.ge.s32.totalorder %s3937_s21, 1  ;;  %p249_p8 = scmp.lt.s32.totalorder %s3937_s21, 5 }
  0x29   : > { %p250_p9 = pnand %p3355_p7, %p249_p8 }
  0x2b   : > { %253 = sbr.rel (%p250_p9) target bundleno = 1337 (0x539), region = 55 }
  0x30   : > { %s256_s13 = sand.u32 1, %s3913_s15   ;;  %s3357_s14 = sshll.u32 %s3925_s18, 5 }
  0x31   : > { %s3356_s24 = sshll.u32 %s256_s13, 7  ;;  %p291_p10 = scmp.lt.s32.totalorder %s3357_s14, 63 }
  0x32   : > { %s3359_s25 = sshll.u32 %s3921_s17, 1  ;;  %s4067_s9 = scalar_lea.vmem [#allocation5], %s3356_s24 }
  0x33   : > { %s6242_s14 = smov (!%p291_p10, %s3357_s14), 63  ;;  %p297_p11 = scmp.lt.s32.totalorder %s3359_s25, 3 }
  0x34   : > { %s3358_s26 = sshll.u32 %s6242_s14, 3  ;;  %p3362_p12 = scmp.ne.s32.totalorder %s3921_s17, 0 }
  0x35   : > { %s4054_s30 = scalar_lea.vmem %s5893_s0, %s3358_s26  ;;  %s4059_s7 = scalar_lea.vmem %s5897_s4, %s3358_s26 }
  0x36   : > { %s6244_s25 = smov (!%p297_p11, %s3359_s25), 3  ;;  %314 = sbr.rel (%p3362_p12) target bundleno = 156 (0x9c), region = 63 }
  0x37   : > { %s299_s8 = scalar_lea.vmem %s5894_s1, %s6244_s25 }
  0x3b   : > { %vm315_vm0 = vcmask 7168   ;;  %v3939_v16 = vmov -inf   ;;  %v3940_v17 = vmov 0.0  }
  0x3c   : > { %316 = vst.msk [vmem:[#allocation2] sm:$0xff] %vm315_vm0, %v3939_v16 }
  0x3d   : > { %317 = vst.msk [vmem:[#allocation2 + $0x8] sm:$0xff] %vm315_vm0, %v3939_v16 }
  0x3e   : > { %318 = vst.msk [vmem:[#allocation2 + $0x10] sm:$0xff] %vm315_vm0, %v3939_v16 }
  0x3f   : > { %319 = vst.msk [vmem:[#allocation2 + $0x18] sm:$0xff] %vm315_vm0, %v3939_v16 }
  0x40   : > { %320 = vst.msk [vmem:[#allocation2 + $0x20] sm:$0xff] %vm315_vm0, %v3939_v16 }
  0x41   : > { %321 = vst.msk [vmem:[#allocation2 + $0x28] sm:$0xff] %vm315_vm0, %v3939_v16 }
  0x42   : > { %322 = vst.msk [vmem:[#allocation2 + $0x30] sm:$0xff] %vm315_vm0, %v3939_v16 }
  0x43   : > { %323 = vst.msk [vmem:[#allocation2 + $0x38] sm:$0xff] %vm315_vm0, %v3939_v16 }
  0x44   : > { %324 = vst.msk [vmem:[#allocation2 + $0x40] sm:$0xff] %vm315_vm0, %v3939_v16 }
  0x45   : > { %325 = vst.msk [vmem:[#allocation2 + $0x48] sm:$0xff] %vm315_vm0, %v3939_v16 }
  0x46   : > { %326 = vst.msk [vmem:[#allocation2 + $0x50] sm:$0xff] %vm315_vm0, %v3939_v16 }
  0x47   : > { %327 = vst.msk [vmem:[#allocation2 + $0x58] sm:$0xff] %vm315_vm0, %v3939_v16 }
  0x48   : > { %328 = vst.msk [vmem:[#allocation2 + $0x60] sm:$0xff] %vm315_vm0, %v3939_v16 }
  0x49   : > { %329 = vst.msk [vmem:[#allocation2 + $0x68] sm:$0xff] %vm315_vm0, %v3939_v16 }
  0x4a   : > { %330 = vst.msk [vmem:[#allocation2 + $0x70] sm:$0xff] %vm315_vm0, %v3939_v16 }
  0x4b   : > { %331 = vst.msk [vmem:[#allocation2 + $0x78] sm:$0xff] %vm315_vm0, %v3939_v16 }
  0x4c   : > { %332 = vst.msk [vmem:[#allocation2 + $0x80] sm:$0xff] %vm315_vm0, %v3939_v16 }
  0x4d   : > { %333 = vst.msk [vmem:[#allocation2 + $0x88] sm:$0xff] %vm315_vm0, %v3939_v16 }
  0x4e   : > { %334 = vst.msk [vmem:[#allocation2 + $0x90] sm:$0xff] %vm315_vm0, %v3939_v16 }
  0x4f   : > { %335 = vst.msk [vmem:[#allocation2 + $0x98] sm:$0xff] %vm315_vm0, %v3939_v16 }
  0x50   : > { %336 = vst.msk [vmem:[#allocation2 + $0xa0] sm:$0xff] %vm315_vm0, %v3939_v16 }
  0x51   : > { %337 = vst.msk [vmem:[#allocation2 + $0xa8] sm:$0xff] %vm315_vm0, %v3939_v16 }
  0x52   : > { %338 = vst.msk [vmem:[#allocation2 + $0xb0] sm:$0xff] %vm315_vm0, %v3939_v16 }
  0x53   : > { %339 = vst.msk [vmem:[#allocation2 + $0xb8] sm:$0xff] %vm315_vm0, %v3939_v16 }
  0x54   : > { %340 = vst.msk [vmem:[#allocation2 + $0xc0] sm:$0xff] %vm315_vm0, %v3939_v16 }
  0x55   : > { %341 = vst.msk [vmem:[#allocation2 + $0xc8] sm:$0xff] %vm315_vm0, %v3939_v16 }
  0x56   : > { %342 = vst.msk [vmem:[#allocation2 + $0xd0] sm:$0xff] %vm315_vm0, %v3939_v16 }
  0x57   : > { %343 = vst.msk [vmem:[#allocation2 + $0xd8] sm:$0xff] %vm315_vm0, %v3939_v16 }
  0x58   : > { %344 = vst.msk [vmem:[#allocation2 + $0xe0] sm:$0xff] %vm315_vm0, %v3939_v16 }
  0x59   : > { %345 = vst.msk [vmem:[#allocation2 + $0xe8] sm:$0xff] %vm315_vm0, %v3939_v16 }
  0x5a   : > { %346 = vst.msk [vmem:[#allocation2 + $0xf0] sm:$0xff] %vm315_vm0, %v3939_v16 }
  0x5b   : > { %347 = vst.msk [vmem:[#allocation2 + $0xf8] sm:$0xff] %vm315_vm0, %v3939_v16 }
  0x5c   : > { %348 = vst.msk [vmem:[#allocation3] sm:$0xff] %vm315_vm0, %v3940_v17 }
  0x5d   : > { %349 = vst.msk [vmem:[#allocation3 + $0x8] sm:$0xff] %vm315_vm0, %v3940_v17 }
  0x5e   : > { %350 = vst.msk [vmem:[#allocation3 + $0x10] sm:$0xff] %vm315_vm0, %v3940_v17 }
  0x5f   : > { %351 = vst.msk [vmem:[#allocation3 + $0x18] sm:$0xff] %vm315_vm0, %v3940_v17 }
  0x60   : > { %352 = vst.msk [vmem:[#allocation3 + $0x20] sm:$0xff] %vm315_vm0, %v3940_v17 }
  0x61   : > { %353 = vst.msk [vmem:[#allocation3 + $0x28] sm:$0xff] %vm315_vm0, %v3940_v17 }
  0x62   : > { %354 = vst.msk [vmem:[#allocation3 + $0x30] sm:$0xff] %vm315_vm0, %v3940_v17 }
  0x63   : > { %355 = vst.msk [vmem:[#allocation3 + $0x38] sm:$0xff] %vm315_vm0, %v3940_v17 }
  0x64   : > { %356 = vst.msk [vmem:[#allocation3 + $0x40] sm:$0xff] %vm315_vm0, %v3940_v17 }
  0x65   : > { %357 = vst.msk [vmem:[#allocation3 + $0x48] sm:$0xff] %vm315_vm0, %v3940_v17 }
  0x66   : > { %358 = vst.msk [vmem:[#allocation3 + $0x50] sm:$0xff] %vm315_vm0, %v3940_v17 }
  0x67   : > { %359 = vst.msk [vmem:[#allocation3 + $0x58] sm:$0xff] %vm315_vm0, %v3940_v17 }
  0x68   : > { %360 = vst.msk [vmem:[#allocation3 + $0x60] sm:$0xff] %vm315_vm0, %v3940_v17 }
  0x69   : > { %361 = vst.msk [vmem:[#allocation3 + $0x68] sm:$0xff] %vm315_vm0, %v3940_v17 }
  0x6a   : > { %362 = vst.msk [vmem:[#allocation3 + $0x70] sm:$0xff] %vm315_vm0, %v3940_v17 }
  0x6b   : > { %363 = vst.msk [vmem:[#allocation3 + $0x78] sm:$0xff] %vm315_vm0, %v3940_v17 }
  0x6c   : > { %364 = vst.msk [vmem:[#allocation3 + $0x80] sm:$0xff] %vm315_vm0, %v3940_v17 }
  0x6d   : > { %365 = vst.msk [vmem:[#allocation3 + $0x88] sm:$0xff] %vm315_vm0, %v3940_v17 }
  0x6e   : > { %366 = vst.msk [vmem:[#allocation3 + $0x90] sm:$0xff] %vm315_vm0, %v3940_v17 }
  0x6f   : > { %367 = vst.msk [vmem:[#allocation3 + $0x98] sm:$0xff] %vm315_vm0, %v3940_v17 }
  0x70   : > { %368 = vst.msk [vmem:[#allocation3 + $0xa0] sm:$0xff] %vm315_vm0, %v3940_v17 }
  0x71   : > { %369 = vst.msk [vmem:[#allocation3 + $0xa8] sm:$0xff] %vm315_vm0, %v3940_v17 }
  0x72   : > { %370 = vst.msk [vmem:[#allocation3 + $0xb0] sm:$0xff] %vm315_vm0, %v3940_v17 }
  0x73   : > { %371 = vst.msk [vmem:[#allocation3 + $0xb8] sm:$0xff] %vm315_vm0, %v3940_v17 }
  0x74   : > { %372 = vst.msk [vmem:[#allocation3 + $0xc0] sm:$0xff] %vm315_vm0, %v3940_v17 }
  0x75   : > { %373 = vst.msk [vmem:[#allocation3 + $0xc8] sm:$0xff] %vm315_vm0, %v3940_v17 }
  0x76   : > { %374 = vst.msk [vmem:[#allocation3 + $0xd0] sm:$0xff] %vm315_vm0, %v3940_v17 }
  0x77   : > { %375 = vst.msk [vmem:[#allocation3 + $0xd8] sm:$0xff] %vm315_vm0, %v3940_v17 }
  0x78   : > { %376 = vst.msk [vmem:[#allocation3 + $0xe0] sm:$0xff] %vm315_vm0, %v3940_v17 }
  0x79   : > { %377 = vst.msk [vmem:[#allocation3 + $0xe8] sm:$0xff] %vm315_vm0, %v3940_v17 }
  0x7a   : > { %378 = vst.msk [vmem:[#allocation3 + $0xf0] sm:$0xff] %vm315_vm0, %v3940_v17 }
  0x7b   : > { %379 = vst.msk [vmem:[#allocation3 + $0xf8] sm:$0xff] %vm315_vm0, %v3940_v17 }
  0x7c   : > { %380 = vst [vmem:[#allocation4 + $0xb0] sm:$0xff] %v3940_v17 }
  0x7d   : > { %381 = vst [vmem:[#allocation4] sm:$0xff] %v3940_v17 }
  0x7e   : > { %382 = vst [vmem:[#allocation4 + $0xd8] sm:$0xff] %v3940_v17 }
  0x7f   : > { %383 = vst [vmem:[#allocation4 + $0x18] sm:$0xff] %v3940_v17 }
  0x80   : > { %384 = vst [vmem:[#allocation4 + $0x50] sm:$0xff] %v3940_v17 }
  0x81   : > { %385 = vst [vmem:[#allocation4 + $0x68] sm:$0xff] %v3940_v17 }
  0x82   : > { %386 = vst [vmem:[#allocation4 + $0x30] sm:$0xff] %v3940_v17 }
  0x83   : > { %387 = vst [vmem:[#allocation4 + $0x48] sm:$0xff] %v3940_v17 }
  0x84   : > { %388 = vst [vmem:[#allocation4 + $0x80] sm:$0xff] %v3940_v17 }
  0x85   : > { %389 = vst [vmem:[#allocation4 + $0x88] sm:$0xff] %v3940_v17 }
  0x86   : > { %390 = vst [vmem:[#allocation4 + $0xe8] sm:$0xff] %v3940_v17 }
  0x87   : > { %391 = vst [vmem:[#allocation4 + $0xb8] sm:$0xff] %v3940_v17 }
  0x88   : > { %392 = vst [vmem:[#allocation4 + $0x60] sm:$0xff] %v3940_v17 }
  0x89   : > { %393 = vst [vmem:[#allocation4 + $0xf0] sm:$0xff] %v3940_v17 }
  0x8a   : > { %394 = vst [vmem:[#allocation4 + $0x8] sm:$0xff] %v3940_v17 }
  0x8b   : > { %395 = vst [vmem:[#allocation4 + $0x78] sm:$0xff] %v3940_v17 }
  0x8c   : > { %396 = vst [vmem:[#allocation4 + $0x38] sm:$0xff] %v3940_v17 }
  0x8d   : > { %397 = vst [vmem:[#allocation4 + $0x58] sm:$0xff] %v3940_v17 }
  0x8e   : > { %398 = vst [vmem:[#allocation4 + $0x40] sm:$0xff] %v3940_v17 }
  0x8f   : > { %399 = vst [vmem:[#allocation4 + $0xc8] sm:$0xff] %v3940_v17 }
  0x90   : > { %400 = vst [vmem:[#allocation4 + $0xe0] sm:$0xff] %v3940_v17 }
  0x91   : > { %401 = vst [vmem:[#allocation4 + $0x90] sm:$0xff] %v3940_v17 }
  0x92   : > { %402 = vst [vmem:[#allocation4 + $0x70] sm:$0xff] %v3940_v17 }
  0x93   : > { %403 = vst [vmem:[#allocation4 + $0xc0] sm:$0xff] %v3940_v17 }
  0x94   : > { %404 = vst [vmem:[#allocation4 + $0xa8] sm:$0xff] %v3940_v17 }
  0x95   : > { %405 = vst [vmem:[#allocation4 + $0xd0] sm:$0xff] %v3940_v17 }
  0x96   : > { %406 = vst [vmem:[#allocation4 + $0x10] sm:$0xff] %v3940_v17 }
  0x97   : > { %407 = vst [vmem:[#allocation4 + $0x28] sm:$0xff] %v3940_v17 }
  0x98   : > { %408 = vst [vmem:[#allocation4 + $0xa0] sm:$0xff] %v3940_v17 }
  0x99   : > { %409 = vst [vmem:[#allocation4 + $0xf8] sm:$0xff] %v3940_v17 }
  0x9a   : > { %410 = vst [vmem:[#allocation4 + $0x20] sm:$0xff] %v3940_v17 }
  0x9b   : > { %411 = vst [vmem:[#allocation4 + $0x98] sm:$0xff] %v3940_v17 }
  0x9c PF: > { %v416_v18 = vld [vmem:[%s4054_s30 + $0x20] sm:$0xff]  ;;  %v414_v19 = vld [vmem:[%s4054_s30 + $0x10] sm:$0xff]  ;;  %v5900_v21 = vmov 0   ;;  %v417_v22 = vld [vmem:[%s4054_s30 + $0x28] sm:$0xff]  ;;  %s3363_s12 = sshll.u32 %s3921_s17, 8  ;;  %p3429_p13 = scmp.ne.s32.totalorder %s3921_s17, 1 }
  0x9d   : > { %v412_v20 = vld [vmem:[%s4054_s30] sm:$0xff]  ;;  %3559 = vset.pattern.permute.xlu2 %v5900_v21  ;;  %3558 = vset.pattern.permute.xlu1 %v5900_v21  ;;  %v415_v23 = vld [vmem:[%s4054_s30 + $0x18] sm:$0xff]  ;;  %v413_v24 = vld [vmem:[%s4054_s30 + $0x8] sm:$0xff]  ;;  %s2068_s13 = sshra.s32 %s3363_s12, 3 }
  0x9e   : > { %3557 = vset.pattern.permute.xlu0 %v5900_v21  ;;  %467 = vperm.xlu2 %3559, %v416_v18   ;;  %v420_v25 = vld [vmem:[%s4054_s30 + $0x40] sm:$0xff]  ;;  %v418_v26 = vld [vmem:[%s4054_s30 + $0x30] sm:$0xff]  ;;  %v419_v27 = vld [vmem:[%s4054_s30 + $0x38] sm:$0xff]  ;;  %s3364_s14 = sshll.u32 %s2068_s13, 2 }
  0x9f   : > { %457 = vperm.xlu1 %3558, %v414_v19   ;;  %447 = vperm.xlu0 %3557, %v412_v20   ;;  %v423_v28 = vld [vmem:[%s4054_s30 + $0x58] sm:$0xff]  ;;  %v421_v29 = vld [vmem:[%s4054_s30 + $0x48] sm:$0xff]  ;;  %v422_v30 = vld [vmem:[%s4054_s30 + $0x50] sm:$0xff]  ;;  %s5237_s26 = scalar_lea.vmem %s5896_s3, %s3364_s14 }
  0xa0   : > { %v426_v31 = vld [vmem:[%s4054_s30 + $0x70] sm:$0xff]  ;;  %v424_v32 = vld [vmem:[%s4054_s30 + $0x60] sm:$0xff]  ;;  %v425_v33 = vld [vmem:[%s4054_s30 + $0x68] sm:$0xff] }
  0xa1   : > { %v429_v34 = vld [vmem:[%s4054_s30 + $0x88] sm:$0xff]  ;;  %v427_v35 = vld [vmem:[%s4054_s30 + $0x78] sm:$0xff]  ;;  %v428_v36 = vld [vmem:[%s4054_s30 + $0x80] sm:$0xff] }
  0xa2   : > { %v432_v37 = vld [vmem:[%s4054_s30 + $0xa0] sm:$0xff]  ;;  %v430_v38 = vld [vmem:[%s4054_s30 + $0x90] sm:$0xff]  ;;  %v431_v39 = vld [vmem:[%s4054_s30 + $0x98] sm:$0xff] }
  0xa3   : > { %v435_v40 = vld [vmem:[%s4054_s30 + $0xb8] sm:$0xff]  ;;  %v433_v41 = vld [vmem:[%s4054_s30 + $0xa8] sm:$0xff]  ;;  %v434_v42 = vld [vmem:[%s4054_s30 + $0xb0] sm:$0xff] }
  0xa4   : > { %v438_v43 = vld [vmem:[%s4054_s30 + $0xd0] sm:$0xff]  ;;  %v436_v44 = vld [vmem:[%s4054_s30 + $0xc0] sm:$0xff]  ;;  %v437_v45 = vld [vmem:[%s4054_s30 + $0xc8] sm:$0xff] }
  0xa5   : > { %v441_v46 = vld [vmem:[%s4054_s30 + $0xe8] sm:$0xff]  ;;  %v439_v47 = vld [vmem:[%s4054_s30 + $0xd8] sm:$0xff]  ;;  %v440_v48 = vld [vmem:[%s4054_s30 + $0xe0] sm:$0xff] }
  0xa6   : > { %472 = vperm.xlu2 %3559, %v417_v22   ;;  %v802_v49 = vld [vmem:[%s4067_s9] sm:$0xff]  ;;  %v803_v50 = vld [vmem:[%s4067_s9 + $0x8] sm:$0xff]  ;;  %v804_v55 = vld [vmem:[%s4067_s9 + $0x10] sm:$0xff] }
  0xa7   : > { %462 = vperm.xlu1 %3558, %v415_v23   ;;  %452 = vperm.xlu0 %3557, %v413_v24   ;;  %vm818_vm1 = vnez %v802_v49  ;;  %vm819_vm2 = vnez %v803_v50  ;;  %v805_v56 = vld [vmem:[%s4067_s9 + $0x18] sm:$0xff]  ;;  %vm820_vm3 = vnez %v804_v55  ;;  %v444_v4 = vld [vmem:[%s299_s8] sm:$0x3]  ;;  %v807_v14 = vld [vmem:[%s4067_s9 + $0x28] sm:$0xff] }
  0xa8   : > { %v834_v51 = vsel %vm818_vm1, 16843009, %v5900_v21  ;;  %v835_v52 = vsel %vm819_vm2, 16843009, %v5900_v21  ;;  %vm821_vm4 = vnez %v805_v56  ;;  %v4238_v57 = vsel %vm820_vm3, 16843009, %v5900_v21 }
  0xa9   : > { %v850_v53 = vunpack.c.0.s8 %v834_v51  ;;  %v851_v54 = vunpack.c.0.s8 %v835_v52  ;;  %v4241_v58 = vsel %vm821_vm4, 16843009, %v5900_v21  ;;  %v858_v60 = vunpack.c.0.s8 %v4238_v57  ;;  %v806_v9 = vld [vmem:[%s4067_s9 + $0x20] sm:$0xff] }
  0xaa   : > { %v859_v61 = vunpack.c.0.s8 %v4241_v58  ;;  %v860_v62 = vunpack.c.1.s8 %v4238_v57  ;;  %v861_v63 = vunpack.c.1.s8 %v4241_v58  ;;  %v854_v0 = vunpack.c.2.s8 %v834_v51 }
  0xab   : > { %v914_v59 = vpack.c.b16 %v851_v54, %v850_v53  ;;  %v855_v1 = vunpack.c.2.s8 %v835_v52  ;;  %v856_v2 = vunpack.c.3.s8 %v834_v51  ;;  %v857_v3 = vunpack.c.3.s8 %v835_v52 }
  0xac   : > { %v852_v8 = vunpack.c.1.s8 %v834_v51  ;;  %v853_v11 = vunpack.c.1.s8 %v835_v52  ;;  %v922_v12 = vpack.c.b16 %v859_v61, %v858_v60  ;;  %v924_v13 = vpack.c.b16 %v861_v63, %v860_v62 }
  0xad   : > { %v915_v6 = vpack.c.b8 %v914_v59, %v914_v59  ;;  %v918_v7 = vpack.c.b16 %v855_v1, %v854_v0  ;;  %v920_v10 = vpack.c.b16 %v857_v3, %v856_v2  ;;  %v4254_v15 = vperm.slane %v444_v4, 0 }
  0xae   : > { %487 = vperm.xlu2 %3559, %v420_v25   ;;  %v923_v16 = vpack.c.b8 %v922_v12, %v922_v12  ;;  %vm822_vm5 = vnez %v806_v9  ;;  %v4256_v17 = vperm.slane %v444_v4, 1  ;;  %vm823_vm6 = vnez %v807_v14 }
  0xaf   : > { %477 = vperm.xlu0 %3557, %v418_v26   ;;  %482 = vperm.xlu1 %3558, %v419_v27   ;;  %v919_v19 = vpack.c.b8 %v918_v7, %v918_v7  ;;  %vm978_vm7 = vnez %v915_v6  ;;  %v921_v20 = vpack.c.b8 %v920_v10, %v920_v10  ;;  %v916_v22 = vpack.c.b16 %v853_v11, %v852_v8 }
  0xb0   : > { %v925_v23 = vpack.c.b8 %v924_v13, %v924_v13  ;;  %v4260_v24 = vsel %vm822_vm5, 16843009, %v5900_v21  ;;  %vm982_vm8 = vnez %v923_v16  ;;  %v4264_v27 = vsel %vm823_vm6, 16843009, %v5900_v21 }
  0xb1   : > { %vm980_vm9 = vnez %v919_v19  ;;  %vm4267_vm10 = vnez %v921_v20  ;;  %v868_v13 = vunpack.c.1.s8 %v4260_v24  ;;  %v869_v14 = vunpack.c.1.s8 %v4264_v27 }
  0xb2   : > { %vm983_vm11 = vnez %v925_v23  ;;  %v809_v23 = vld [vmem:[%s4067_s9 + $0x38] sm:$0xff] }
  0xb6   : > { %502 = vperm.xlu2 %3559, %v423_v28  }
  0xb7   : > { %492 = vperm.xlu0 %3557, %v421_v29   ;;  %497 = vperm.xlu1 %3558, %v422_v30   ;;  %v1010_v29 = vsel %vm978_vm7, 16843009, %v5900_v21 }
  0xbe   : > { %517 = vperm.xlu2 %3559, %v426_v31   ;;  %v917_v31 = vpack.c.b8 %v916_v22, %v916_v22  ;;  %v808_v22 = vld [vmem:[%s4067_s9 + $0x30] sm:$0xff] }
  0xbf   : > { %507 = vperm.xlu0 %3557, %v424_v32   ;;  %512 = vperm.xlu1 %3558, %v425_v33   ;;  %v866_v32 = vunpack.c.0.s8 %v4260_v24  ;;  %vm824_vm7 = vnez %v808_v22 }
  0xc0   : > { %vm4285_vm12 = vnez %v917_v31 }
  0xc1   : > { %v1011_v4 = vsel %vm4285_vm12, 16843009, %v5900_v21 }
  0xc2   : > { %v1044_v20 = vunpack.c.0.s8 %v1011_v4 }
  0xc6   : > { %532 = vperm.xlu2 %3559, %v429_v34   ;;  %v1014_v34 = vsel %vm982_vm8, 16843009, %v5900_v21  ;;  %vm825_vm8 = vnez %v809_v23 }
  0xc7   : > { %522 = vperm.xlu0 %3557, %v427_v35   ;;  %527 = vperm.xlu1 %3558, %v428_v36   ;;  %v862_v35 = vunpack.c.2.s8 %v4238_v57  ;;  %v867_v36 = vunpack.c.0.s8 %v4264_v27 }
  0xc9   : > { %v930_v52 = vpack.c.b16 %v867_v36, %v866_v32 }
  0xcb   : > { %v931_v1 = vpack.c.b8 %v930_v52, %v930_v52 }
  0xcd   : > { %vm4317_vm2 = vnez %v931_v1 }
  0xce   : > { %547 = vperm.xlu2 %3559, %v432_v37  }
  0xcf   : > { %537 = vperm.xlu0 %3557, %v430_v38   ;;  %542 = vperm.xlu1 %3558, %v431_v39   ;;  %v1042_v39 = vunpack.c.0.s8 %v1010_v29 }
  0xd1   : > { %vm4309_vm0 = vcmp.ne.s32.totalorder %v1042_v39, 0 }
  0xd6   : > { %562 = vperm.xlu2 %3559, %v435_v40   ;;  %v1012_v40 = vsel %vm980_vm9, 16843009, %v5900_v21 }
  0xd7   : > { %552 = vperm.xlu0 %3557, %v433_v41   ;;  %557 = vperm.xlu1 %3558, %v434_v42   ;;  %v1050_v41 = vunpack.c.0.s8 %v1014_v34  ;;  %v1051_v42 = vunpack.c.1.s8 %v1014_v34  ;;  %v1046_v55 = vunpack.c.0.s8 %v1012_v40  ;;  %v1047_v60 = vunpack.c.1.s8 %v1012_v40 }
  0xd8   : > { %v873_v34 = vunpack.c.3.s8 %v4264_v27 }
  0xd9   : > { %vm1114_vm13 = vcmp.ne.s32.totalorder %v1050_v41, 0  ;;  %vm1115_vm14 = vcmp.ne.s32.totalorder %v1051_v42, 0  ;;  %vm4327_vm4 = vcmp.ne.s32.totalorder %v1046_v55, 0  ;;  %vm4331_vm5 = vcmp.ne.s32.totalorder %v1047_v60, 0 }
  0xde   : > { %577 = vperm.xlu2 %3559, %v438_v43   ;;  %v1015_v43 = vsel %vm983_vm11, 16843009, %v5900_v21  ;;  %vm4368_vm11 = vcmp.ne.s32.totalorder %v1044_v20, 0 }
  0xdf   : > { %567 = vperm.xlu0 %3557, %v436_v44   ;;  %572 = vperm.xlu1 %3558, %v437_v45   ;;  %v863_v44 = vunpack.c.2.s8 %v4241_v58  ;;  %v1043_v45 = vunpack.c.1.s8 %v1010_v29  ;;  %v1052_v59 = vunpack.c.0.s8 %v1015_v43  ;;  %v1053_v61 = vunpack.c.1.s8 %v1015_v43 }
  0xe1   : > { %v926_v51 = vpack.c.b16 %v863_v44, %v862_v35  ;;  %vm4305_vm15 = vcmp.ne.s32.totalorder %v1052_v59, 0  ;;  %vm4313_vm1 = vcmp.ne.s32.totalorder %v1053_v61, 0  ;;  %vm4323_vm3 = vcmp.ne.s32.totalorder %v1043_v45, 0 }
  0xe3   : > { %v927_v0 = vpack.c.b8 %v926_v51, %v926_v51 }
  0xe5   : > { %vm984_vm6 = vnez %v927_v0 }
  0xe6   : > { %592 = vperm.xlu2 %3559, %v441_v46   ;;  %v4283_v46 = vsel %vm4267_vm10, 16843009, %v5900_v21 }
  0xe7   : > { %582 = vperm.xlu0 %3557, %v439_v47   ;;  %587 = vperm.xlu1 %3558, %v440_v48   ;;  %v872_v48 = vunpack.c.3.s8 %v4260_v24  ;;  %v1048_v62 = vunpack.c.0.s8 %v4283_v46  ;;  %v1049_v63 = vunpack.c.1.s8 %v4283_v46 }
  0xe9   : > { %vm4360_vm9 = vcmp.ne.s32.totalorder %v1048_v62, 0  ;;  %vm4364_vm10 = vcmp.ne.s32.totalorder %v1049_v63, 0  ;;  %v936_v60 = vpack.c.b16 %v873_v34, %v872_v48  ;;  %v4380_v63 = vsel %vm824_vm7, 16843009, %v5900_v21 }
  0xea   : > { %v4392_v48 = vsel %vm825_vm8, 16843009, %v5900_v21 }
  0xf8   : > { %v468_v5 = vpop.permute.xlu2 %467 }
  0xf9   : > { %v618_v18 = vadd.f32 %v4254_v15, %v468_v5  ;;  %v619_v25 = vadd.f32 %v4256_v17, %v468_v5 }
  0xfb   : > { %v682_v28 = vmul.f32 0.01, %v618_v18  ;;  %v683_v37 = vmul.f32 0.01, %v619_v25 }
  0xfd   : > { %v746_v50 = vmax.f32 %v618_v18, %v682_v28  ;;  %v747_v56 = vmax.f32 %v619_v25, %v683_v37  ;;  %v1045_v28 = vunpack.c.1.s8 %v1011_v4  ;;  %v1016_v37 = vsel %vm984_vm6, 16843009, %v5900_v21 }
  0xfe   : > { %v1054_v51 = vunpack.c.0.s8 %v1016_v37  ;;  %v878_v18 = vunpack.c.2.s8 %v4380_v63 }
  0xff   : > { %v4301_v6 = vsel %vm1114_vm13, %v746_v50, -9e+15  ;;  %v4303_v7 = vsel %vm1115_vm14, %v747_v56, -9e+15  ;;  %v1055_v56 = vunpack.c.1.s8 %v1016_v37  ;;  %vm4374_vm12 = vcmp.ne.s32.totalorder %v1045_v28, 0 }
 0x100   : > { %v473_v26 = vpop.permute.xlu2 %472  ;;  %v1278_v29 = vmax.f32 %v4301_v6, %v4303_v7 }
 0x101   : > { %v620_v33 = vadd.f32 %v4254_v15, %v473_v26  ;;  %v621_v38 = vadd.f32 %v4256_v17, %v473_v26 }
 0x103   : > { %v684_v49 = vmul.f32 0.01, %v620_v33  ;;  %v685_v53 = vmul.f32 0.01, %v621_v38 }
 0x105   : > { %v748_v5 = vmax.f32 %v620_v33, %v684_v49  ;;  %v749_v8 = vmax.f32 %v621_v38, %v685_v53  ;;  %v1018_v33 = vsel %vm4317_vm2, 16843009, %v5900_v21  ;;  %v932_v38 = vpack.c.b16 %v869_v14, %v868_v13 }
 0x106   : > { %v1058_v45 = vunpack.c.0.s8 %v1018_v33  ;;  %v1059_v46 = vunpack.c.1.s8 %v1018_v33  ;;  %v937_v33 = vpack.c.b8 %v936_v60, %v936_v60 }
 0x107   : > { %v4343_v31 = vsel %vm4305_vm15, %v748_v5, -9e+15  ;;  %v4347_v32 = vsel %vm4313_vm1, %v749_v8, -9e+15  ;;  %v933_v59 = vpack.c.b8 %v932_v38, %v932_v38  ;;  %vm4442_vm1 = vcmp.ne.s32.totalorder %v1055_v56, 0 }
 0x108   : > { %v488_v54 = vpop.permute.xlu2 %487  ;;  %vm4382_vm13 = vcmp.ne.s32.totalorder %v1058_v45, 0  ;;  %vm4386_vm14 = vcmp.ne.s32.totalorder %v1059_v46, 0  ;;  %v1281_v37 = vmax.f32 %v4343_v31, %v4347_v32  ;;  %vm4462_vm2 = vnez %v937_v33 }
 0x109   : > { %v4293_v2 = vadd.f32 %v4254_v15, %v488_v54  ;;  %v4296_v3 = vadd.f32 %v4256_v17, %v488_v54  ;;  %vm4418_vm15 = vnez %v933_v59 }
 0x10b   : > { %v690_v25 = vmul.f32 0.01, %v4293_v2  ;;  %v691_v26 = vmul.f32 0.01, %v4296_v3 }
 0x10d   : > { %v754_v43 = vmax.f32 %v4293_v2, %v690_v25  ;;  %v755_v44 = vmax.f32 %v4296_v3, %v691_v26 }
 0x10f   : > { %v4430_v28 = vsel %vm4382_vm13, %v754_v43, -9e+15  ;;  %v875_v43 = vunpack.c.0.s8 %v4392_v48 }
 0x110   : > { %v503_v30 = vpop.permute.xlu2 %502  ;;  %6016 = vst [vmem:[#allocation6_spill] sm:$0xff] %v4430_v28 }
 0x111   : > { %v458_v35 = vpop.permute.xlu1 %457  ;;  %v448_v36 = vpop.permute.xlu0 %447  ;;  %v4395_v5 = vadd.f32 %v4254_v15, %v503_v30  ;;  %v4410_v13 = vadd.f32 %v4256_v17, %v503_v30  ;;  %v4434_v30 = vsel %vm4386_vm14, %v755_v44, -9e+15 }
 0x112   : > { %v614_v39 = vadd.f32 %v4254_v15, %v458_v35  ;;  %v615_v40 = vadd.f32 %v4256_v17, %v458_v35  ;;  %v610_v41 = vadd.f32 %v4254_v15, %v448_v36  ;;  %v611_v42 = vadd.f32 %v4256_v17, %v448_v36  ;;  %6017 = vst [vmem:[#allocation7_spill] sm:$0xff] %v4434_v30 }
 0x114   : > { %v678_v47 = vmul.f32 0.01, %v614_v39  ;;  %v679_v49 = vmul.f32 0.01, %v615_v40  ;;  %v674_v50 = vmul.f32 0.01, %v610_v41 }
 0x115   : > { %v675_v52 = vmul.f32 0.01, %v611_v42 }
 0x116   : > { %v738_v61 = vmax.f32 %v610_v41, %v674_v50  ;;  %v742_v0 = vmax.f32 %v614_v39, %v678_v47  ;;  %v743_v1 = vmax.f32 %v615_v40, %v679_v49  ;;  %v4449_v41 = vsel %vm4418_vm15, 16843009, %v5900_v21 }
 0x117   : > { %v739_v2 = vmax.f32 %v611_v42, %v675_v52  ;;  %v874_v42 = vunpack.c.0.s8 %v4380_v63  ;;  %v4457_v49 = vmul.f32 0.01, %v4395_v5  ;;  %v4460_v50 = vmul.f32 0.01, %v4410_v13  ;;  %v811_v52 = vld [vmem:[%s4067_s9 + $0x48] sm:$0xff] }
 0x118   : > { %v518_v8 = vpop.permute.xlu2 %517  ;;  %v4399_v9 = vsel %vm4309_vm0, %v738_v61, -9e+15  ;;  %v4403_v11 = vsel %vm4327_vm4, %v742_v0, -9e+15  ;;  %v4407_v12 = vsel %vm4331_vm5, %v743_v1, -9e+15  ;;  %v1060_v53 = vunpack.c.0.s8 %v4449_v41 }
 0x119   : > { %v463_v14 = vpop.permute.xlu1 %462  ;;  %v453_v20 = vpop.permute.xlu0 %452  ;;  %v4414_v22 = vsel %vm4323_vm3, %v739_v2, -9e+15  ;;  %v1272_v10 = vmax.f32 %v4403_v11, %v4407_v12  ;;  %vm4438_vm0 = vcmp.ne.s32.totalorder %v1054_v51, 0  ;;  %v4454_v44 = vadd.f32 %v4254_v15, %v518_v8 }
 0x11a   : > { %v616_v19 = vadd.f32 %v4254_v15, %v463_v14  ;;  %v617_v23 = vadd.f32 %v4256_v17, %v463_v14  ;;  %v612_v25 = vadd.f32 %v4254_v15, %v453_v20  ;;  %v613_v26 = vadd.f32 %v4256_v17, %v453_v20 }
 0x11b   : > { %v1266_v16 = vmax.f32 %v4399_v9, %v4414_v22  ;;  %1273 = vmax.xlane.f32.xlu1 %v1272_v10  ;;  %v4467_v56 = vadd.f32 %v4256_v17, %v518_v8  ;;  %v938_v4 = vpack.c.b16 %v875_v43, %v874_v42  ;;  %v4489_v8 = vmul.f32 0.01, %v4454_v44  ;;  %v810_v43 = vld [vmem:[%s4067_s9 + $0x40] sm:$0xff] }
 0x11c   : > { %v680_v34 = vmul.f32 0.01, %v616_v19  ;;  %v681_v35 = vmul.f32 0.01, %v617_v23  ;;  %v676_v36 = vmul.f32 0.01, %v612_v25  ;;  %v1290_v20 = vmax.f32 %v4430_v28, %v4434_v30 }
 0x11d   : > { %v677_v38 = vmul.f32 0.01, %v613_v26  ;;  %1267 = vmax.xlane.f32.xlu2 %v1266_v16  ;;  %v760_v62 = vmax.f32 %v4395_v5, %v4457_v49  ;;  %v1021_v10 = vsel %vm4462_vm2, 16843009, %v5900_v21  ;;  %v1061_v16 = vunpack.c.1.s8 %v4449_v41 }
 0x11e   : > { %v744_v45 = vmax.f32 %v616_v19, %v680_v34  ;;  %v745_v46 = vmax.f32 %v617_v23, %v681_v35  ;;  %v740_v47 = vmax.f32 %v612_v25, %v676_v36  ;;  %v4504_v19 = vmul.f32 0.01, %v4467_v56 }
 0x11f   : > { %v741_v51 = vmax.f32 %v613_v26, %v677_v38  ;;  %v879_v26 = vunpack.c.2.s8 %v4392_v48  ;;  %vm4508_vm3 = vcmp.ne.s32.totalorder %v1060_v53, 0  ;;  %v761_v33 = vmax.f32 %v4410_v13, %v4460_v50 }
 0x120   : > { %v533_v59 = vpop.permute.xlu2 %532  ;;  %v4471_v60 = vsel %vm4360_vm9, %v744_v45, -9e+15  ;;  %v4475_v61 = vsel %vm4364_vm10, %v745_v46, -9e+15  ;;  %v4479_v0 = vsel %vm4368_vm11, %v740_v47, -9e+15  ;;  %v939_v34 = vpack.c.b8 %v938_v4, %v938_v4 }
 0x121   : > { %v478_v1 = vpop.permute.xlu0 %477  ;;  %v1275_v2 = vmax.f32 %v4471_v60, %v4475_v61  ;;  %v4485_v3 = vsel %vm4374_vm12, %v741_v51, -9e+15  ;;  %v1064_v42 = vunpack.c.0.s8 %v1021_v10  ;;  %v1065_v45 = vunpack.c.1.s8 %v1021_v10 }
 0x122   : > { %v622_v54 = vadd.f32 %v4254_v15, %v478_v1  ;;  %v623_v55 = vadd.f32 %v4256_v17, %v478_v1  ;;  %v1269_v14 = vmax.f32 %v4479_v0, %v4485_v3  ;;  %v942_v46 = vpack.c.b16 %v879_v26, %v878_v18 }
 0x123   : > { %v880_v41 = vunpack.c.3.s8 %v4380_v63  ;;  %v881_v47 = vunpack.c.3.s8 %v4392_v48  ;;  %v4522_v51 = vadd.f32 %v4254_v15, %v533_v59  ;;  %v4534_v1 = vadd.f32 %v4256_v17, %v533_v59 }
 0x124   : > { %v686_v23 = vmul.f32 0.01, %v622_v54  ;;  %v687_v25 = vmul.f32 0.01, %v623_v55  ;;  %1270 = vmax.xlane.f32.xlu0 %v1269_v14  ;;  %vm990_vm4 = vnez %v939_v34  ;;  %vm826_vm5 = vnez %v810_v43 }
 0x125   : > { %1276 = vmax.xlane.f32.xlu2 %v1275_v2  ;;  %v944_v14 = vpack.c.b16 %v881_v47, %v880_v41  ;;  %vm4540_vm6 = vcmp.ne.s32.totalorder %v1061_v16, 0  ;;  %vm4544_vm7 = vcmp.ne.s32.totalorder %v1064_v42, 0  ;;  %vm4548_vm8 = vcmp.ne.s32.totalorder %v1065_v45, 0 }
 0x126   : > { %v750_v36 = vmax.f32 %v622_v54, %v686_v23  ;;  %v751_v38 = vmax.f32 %v623_v55, %v687_v25  ;;  %v943_v55 = vpack.c.b8 %v942_v46, %v942_v46  ;;  %vm827_vm9 = vnez %v811_v52 }
 0x127   : > { %v1022_v25 = vsel %vm990_vm4, 16843009, %v5900_v21  ;;  %v4557_v26 = vmul.f32 0.01, %v4522_v51  ;;  %v945_v16 = vpack.c.b8 %v944_v14, %v944_v14  ;;  %v4564_v34 = vsel %vm826_vm5, 16843009, %v5900_v21 }
 0x128   : > { %v4526_v13 = vsel %vm4438_vm0, %v750_v36, -9e+15  ;;  %v4530_v50 = vsel %vm4442_vm1, %v751_v38, -9e+15  ;;  %v548_v4 = vpop.permute.xlu2 %547  ;;  %vm992_vm10 = vnez %v943_v55  ;;  %v4567_v36 = vsel %vm827_vm9, 16843009, %v5900_v21 }
 0x129   : > { %v493_v2 = vpop.permute.xlu0 %492  ;;  %v1284_v53 = vmax.f32 %v4526_v13, %v4530_v50  ;;  %v4574_v45 = vsel %vm4544_vm7, %v760_v62, -9e+15  ;;  %v1066_v46 = vunpack.c.0.s8 %v1022_v25  ;;  %v1067_v43 = vunpack.c.1.s8 %v1022_v25  ;;  %v812_v55 = vld [vmem:[%s4067_s9 + $0x50] sm:$0xff] }
 0x12a   : > { %v628_v54 = vadd.f32 %v4254_v15, %v493_v2  ;;  %v629_v39 = vadd.f32 %v4256_v17, %v493_v2  ;;  %v1024_v41 = vsel %vm992_vm10, 16843009, %v5900_v21  ;;  %v884_v2 = vunpack.c.1.s8 %v4564_v34 }
 0x12b   : > { %1285 = vmax.xlane.f32.xlu1 %v1284_v53  ;;  %v885_v62 = vunpack.c.1.s8 %v4567_v36  ;;  %v4592_v53 = vadd.f32 %v4254_v15, %v548_v4  ;;  %vm993_vm11 = vnez %v945_v16  ;;  %vm4607_vm12 = vcmp.ne.s32.totalorder %v1066_v46, 0 }
 0x12c   : > { %v692_v18 = vmul.f32 0.01, %v628_v54  ;;  %v693_v23 = vmul.f32 0.01, %v629_v39  ;;  %1282 = vmax.xlane.f32.xlu0 %v1281_v37  ;;  %v4570_v37 = vmul.f32 0.01, %v4534_v1  ;;  %v1070_v10 = vunpack.c.0.s8 %v1024_v41 }
 0x12d   : > { %1279 = vmax.xlane.f32.xlu2 %v1278_v29  ;;  %v4578_v29 = vsel %vm4548_vm8, %v761_v33, -9e+15  ;;  %v4595_v33 = vadd.f32 %v4256_v17, %v548_v4  ;;  %vm1131_vm13 = vcmp.ne.s32.totalorder %v1067_v43, 0  ;;  %v1071_v35 = vunpack.c.1.s8 %v1024_v41 }
 0x12e   : > { %v756_v38 = vmax.f32 %v628_v54, %v692_v18  ;;  %v757_v42 = vmax.f32 %v629_v39, %v693_v23  ;;  %v1299_v4 = vmax.f32 %v4574_v45, %v4578_v29  ;;  %v886_v18 = vunpack.c.2.s8 %v4564_v34 }
 0x12f   : > { %v4620_v46 = vmul.f32 0.01, %v4595_v33  ;;  %vm4628_vm14 = vcmp.ne.s32.totalorder %v1070_v10, 0  ;;  %vm828_vm0 = vnez %v812_v55  ;;  %vm1135_vm2 = vcmp.ne.s32.totalorder %v1071_v35, 0 }
 0x130   : > { %v4583_v47 = vsel %vm4508_vm3, %v756_v38, -9e+15  ;;  %v4587_v52 = vsel %vm4540_vm6, %v757_v42, -9e+15  ;;  %v563_v23 = vpop.permute.xlu2 %562  ;;  %v1025_v38 = vsel %vm993_vm11, 16843009, %v5900_v21  ;;  %v948_v42 = vpack.c.b16 %v885_v62, %v884_v2 }
 0x131   : > { %6032 = vst [vmem:[#allocation8_spill] sm:$0xff] %v4583_v47  ;;  %v508_v54 = vpop.permute.xlu0 %507  ;;  %v1293_v5 = vmax.f32 %v4583_v47, %v4587_v52  ;;  %v813_v47 = vld [vmem:[%s4067_s9 + $0x58] sm:$0xff]  ;;  %v1072_v62 = vunpack.c.0.s8 %v1025_v38 }
 0x132   : > { %6033 = vst [vmem:[#allocation9_spill] sm:$0xff] %v4587_v52  ;;  %v634_v14 = vadd.f32 %v4254_v15, %v508_v54  ;;  %v635_v40 = vadd.f32 %v4256_v17, %v508_v54  ;;  %v4617_v54 = vmul.f32 0.01, %v4592_v53  ;;  %v949_v52 = vpack.c.b8 %v948_v42, %v948_v42 }
 0x133   : > { %1294 = vmax.xlane.f32.xlu1 %v1293_v5  ;;  %v887_v5 = vunpack.c.2.s8 %v4567_v36  ;;  %vm829_vm1 = vnez %v813_v47  ;;  %vm1136_vm3 = vcmp.ne.s32.totalorder %v1072_v62, 0 }
 0x134   : > { %v698_v25 = vmul.f32 0.01, %v634_v14  ;;  %v699_v16 = vmul.f32 0.01, %v635_v40  ;;  %1291 = vmax.xlane.f32.xlu0 %v1290_v20  ;;  %v4626_v20 = vadd.f32 %v4254_v15, %v563_v23  ;;  %vm995_vm15 = vnez %v949_v52 }
 0x135   : > { %v950_v21 = vpack.c.b16 %v887_v5, %v886_v18  ;;  %v6041_v52 = vmax.f32 %v4454_v44, %v4489_v8  ;;  %v6042_v44 = vmax.f32 %v4467_v56, %v4504_v19 }
 0x136   : > { %v762_v39 = vmax.f32 %v634_v14, %v698_v25  ;;  %v763_v49 = vmax.f32 %v635_v40, %v699_v16  ;;  %v1073_v40 = vunpack.c.1.s8 %v1025_v38  ;;  %v6040_v25 = vmov 0  }
 0x137   : > { %v1027_v10 = vsel %vm995_vm15, 16843009, %v6040_v25  ;;  %v4642_v16 = vadd.f32 %v4256_v17, %v563_v23  ;;  %v4653_v55 = vsel %vm4628_vm14, %v6041_v52, -9e+15  ;;  %v951_v47 = vpack.c.b8 %v950_v21, %v950_v21 }
 0x138   : > { %v4634_v43 = vsel %vm4607_vm12, %v762_v39, -9e+15  ;;  %v4636_v30 = vsel %vm1131_vm13, %v763_v49, -9e+15  ;;  %v4656_v59 = vsel %vm828_vm0, 16843009, %v6040_v25  ;;  %v1076_v42 = vunpack.c.0.s8 %v1027_v10 }
 0x139   : > { %6038 = vst [vmem:[#allocation10_spill] sm:$0xff] %v4634_v43  ;;  %v523_v41 = vpop.permute.xlu0 %522  ;;  %v1302_v14 = vmax.f32 %v4634_v43, %v4636_v30  ;;  %v4659_v35 = vsel %vm829_vm1, 16843009, %v6040_v25  ;;  %v4662_v5 = vmul.f32 0.01, %v4626_v20  ;;  %vm1137_vm4 = vcmp.ne.s32.totalorder %v1073_v40, 0 }
 0x13a   : > { %6039 = vst [vmem:[#allocation11_spill] sm:$0xff] %v4636_v30  ;;  %v640_v18 = vadd.f32 %v4254_v15, %v523_v41  ;;  %v641_v39 = vadd.f32 %v4256_v17, %v523_v41  ;;  %v4667_v8 = vsel %vm1135_vm2, %v6042_v44, -9e+15  ;;  %v4670_v21 = vmul.f32 0.01, %v4642_v16 }
 0x13b   : > { %1303 = vmax.xlane.f32.xlu1 %v1302_v14  ;;  %6043 = vst [vmem:[#allocation12_spill] sm:$0xff] %v4667_v8  ;;  %vm996_vm5 = vnez %v951_v47  ;;  %v1077_v14 = vunpack.c.1.s8 %v1027_v10  ;;  %v890_v49 = vunpack.c.0.s8 %v4656_v59  ;;  %v891_v28 = vunpack.c.0.s8 %v4659_v35 }
 0x13c   : > { %v704_v23 = vmul.f32 0.01, %v640_v18  ;;  %v705_v38 = vmul.f32 0.01, %v641_v39  ;;  %1300 = vmax.xlane.f32.xlu0 %v1299_v4  ;;  %v4672_v4 = vpop.permute.xlu1 %482  ;;  %v1028_v52 = vsel %vm996_vm5, 16843009, %v6040_v25  ;;  %v892_v40 = vunpack.c.1.s8 %v4656_v59 }
 0x13d   : > { %vm4681_vm6 = vcmp.ne.s32.totalorder %v1076_v42, 0  ;;  %v1079_v47 = vunpack.c.1.s8 %v1028_v52  ;;  %v1308_v42 = vmax.f32 %v4653_v55, %v4667_v8  ;;  %vm1141_vm7 = vcmp.ne.s32.totalorder %v1077_v14, 0 }
 0x13e   : > { %v768_v2 = vmax.f32 %v640_v18, %v704_v23  ;;  %v769_v41 = vmax.f32 %v641_v39, %v705_v38  ;;  %v1078_v39 = vunpack.c.0.s8 %v1028_v52  ;;  %v954_v23 = vpack.c.b16 %v891_v28, %v890_v49 }
 0x13f   : > { %v779_v38 = vmax.f32 %v4595_v33, %v4620_v46  ;;  %v6048_v46 = vmax.f32 %v4522_v51, %v4557_v26  ;;  %vm1143_vm9 = vcmp.ne.s32.totalorder %v1079_v47, 0  ;;  %v6049_v28 = vmax.f32 %v4534_v1, %v4570_v37  ;;  %v815_v1 = vld [vmem:[%s4067_s9 + $0x68] sm:$0xff] }
 0x140   : > { %v4677_v56 = vsel %vm1136_vm3, %v768_v2, -9e+15  ;;  %v4679_v19 = vsel %vm1137_vm4, %v769_v41, -9e+15  ;;  %v955_v30 = vpack.c.b8 %v954_v23, %v954_v23  ;;  %vm1142_vm8 = vcmp.ne.s32.totalorder %v1078_v39, 0 }
 0x141   : > { %6044 = vst [vmem:[#allocation13_spill] sm:$0xff] %v4677_v56  ;;  %v538_v18 = vpop.permute.xlu0 %537  ;;  %v1311_v10 = vmax.f32 %v4677_v56, %v4679_v19  ;;  %v4704_v52 = vsel %vm4681_vm6, %v6048_v46, -9e+15  ;;  %v4709_v41 = vsel %vm1141_vm7, %v6049_v28, -9e+15  ;;  %v896_v46 = vunpack.c.3.s8 %v4656_v59  ;;  %v814_v56 = vld [vmem:[%s4067_s9 + $0x60] sm:$0xff] }
 0x142   : > { %6045 = vst [vmem:[#allocation14_spill] sm:$0xff] %v4679_v19  ;;  %v646_v44 = vadd.f32 %v4254_v15, %v538_v18  ;;  %v647_v2 = vadd.f32 %v4256_v17, %v538_v18  ;;  %v893_v19 = vunpack.c.1.s8 %v4659_v35  ;;  %v578_v18 = vpop.permute.xlu2 %577  ;;  %vm998_vm10 = vnez %v955_v30 }
 0x143   : > { %1312 = vmax.xlane.f32.xlu1 %v1311_v10  ;;  %v4715_v39 = vadd.f32 %v4254_v15, %v578_v18  ;;  %v4726_v47 = vadd.f32 %v4256_v17, %v578_v18  ;;  %vm830_vm13 = vnez %v814_v56  ;;  %vm831_vm15 = vnez %v815_v1 }
 0x144   : > { %v710_v49 = vmul.f32 0.01, %v646_v44  ;;  %v711_v33 = vmul.f32 0.01, %v647_v2  ;;  %1309 = vmax.xlane.f32.xlu0 %v1308_v42  ;;  %v956_v14 = vpack.c.b16 %v893_v19, %v892_v40  ;;  %v1030_v42 = vsel %vm998_vm10, 16843009, %v6040_v25  ;;  %v4723_v37 = vpop.permute.xlu1 %497 }
 0x145   : > { %v1082_v51 = vunpack.c.0.s8 %v1030_v42  ;;  %v1083_v26 = vunpack.c.1.s8 %v1030_v42  ;;  %v897_v40 = vunpack.c.3.s8 %v4659_v35 }
 0x146   : > { %v774_v10 = vmax.f32 %v646_v44, %v710_v49  ;;  %v775_v23 = vmax.f32 %v647_v2, %v711_v33  ;;  %v957_v62 = vpack.c.b8 %v956_v14, %v956_v14  ;;  %v1317_v2 = vmax.f32 %v4704_v52, %v4709_v41 }
 0x147   : > { %vm1146_vm12 = vcmp.ne.s32.totalorder %v1082_v51, 0  ;;  %vm4734_vm14 = vcmp.ne.s32.totalorder %v1083_v26, 0  ;;  %v4745_v51 = vsel %vm830_vm13, 16843009, %v6040_v25  ;;  %v4748_v26 = vsel %vm831_vm15, 16843009, %v6040_v25 }
 0x148   : > { %v4717_v30 = vsel %vm1142_vm8, %v774_v10, -9e+15  ;;  %v4719_v19 = vsel %vm1143_vm9, %v775_v23, -9e+15  ;;  %vm999_vm11 = vnez %v957_v62  ;;  %v960_v10 = vpack.c.b16 %v897_v40, %v896_v46 }
 0x149   : > { %6050 = vst [vmem:[#allocation15_spill] sm:$0xff] %v4717_v30  ;;  %v553_v44 = vpop.permute.xlu0 %552  ;;  %v1320_v28 = vmax.f32 %v4717_v30, %v4719_v19  ;;  %v1031_v18 = vsel %vm999_vm11, 16843009, %v6040_v25  ;;  %v6054_v30 = vmax.f32 %v4592_v53, %v4617_v54  ;;  %v4752_v40 = vsel %vm4734_vm14, %v779_v38, -9e+15 }
 0x14a   : > { %6051 = vst [vmem:[#allocation16_spill] sm:$0xff] %v4719_v19  ;;  %v652_v49 = vadd.f32 %v4254_v15, %v553_v44  ;;  %v653_v33 = vadd.f32 %v4256_v17, %v553_v44  ;;  %v1084_v19 = vunpack.c.0.s8 %v1031_v18  ;;  %v1085_v62 = vunpack.c.1.s8 %v1031_v18 }
 0x14b   : > { %1321 = vmax.xlane.f32.xlu1 %v1320_v28  ;;  %v4742_v44 = vsel %vm1146_vm12, %v6054_v30, -9e+15  ;;  %v961_v56 = vpack.c.b8 %v960_v10, %v960_v10  ;;  %6056 = vst [vmem:[#allocation18_spill] sm:$0xff] %v4752_v40  ;;  %v898_v53 = vunpack.c.0.s8 %v4745_v51  ;;  %v899_v54 = vunpack.c.0.s8 %v4748_v26 }
 0x14c   : > { %v716_v23 = vmul.f32 0.01, %v652_v49  ;;  %v717_v42 = vmul.f32 0.01, %v653_v33  ;;  %1318 = vmax.xlane.f32.xlu0 %v1317_v2  ;;  %6055 = vst [vmem:[#allocation17_spill] sm:$0xff] %v4742_v44  ;;  %vm1148_vm0 = vcmp.ne.s32.totalorder %v1084_v19, 0 }
 0x14d   : > { %vm1149_vm1 = vcmp.ne.s32.totalorder %v1085_v62, 0  ;;  %vm1001_vm2 = vnez %v961_v56  ;;  %v962_v18 = vpack.c.b16 %v899_v54, %v898_v53  ;;  %v726_v10 = vmul.f32 0.01, %v4715_v39  ;;  %v4769_v56 = vpop.permute.xlu1 %512 }
 0x14e   : > { %v780_v28 = vmax.f32 %v652_v49, %v716_v23  ;;  %v781_v46 = vmax.f32 %v653_v33, %v717_v42  ;;  %v1033_v2 = vsel %vm1001_vm2, 16843009, %v6040_v25  ;;  %v902_v49 = vunpack.c.2.s8 %v4745_v51 }
 0x14f   : > { %v1088_v14 = vunpack.c.0.s8 %v1033_v2  ;;  %v1089_v38 = vunpack.c.1.s8 %v1033_v2  ;;  %v1326_v62 = vmax.f32 %v4742_v44, %v4752_v40  ;;  %v6059_v54 = vmax.f32 %v4626_v20, %v4662_v5 }
 0x150   : > { %v4756_v30 = vsel %vm1148_vm0, %v780_v28, -9e+15  ;;  %v4758_v1 = vsel %vm1149_vm1, %v781_v46, -9e+15  ;;  %v963_v28 = vpack.c.b8 %v962_v18, %v962_v18  ;;  %v903_v46 = vunpack.c.2.s8 %v4748_v26 }
 0x151   : > { %6057 = vst [vmem:[#allocation19_spill] sm:$0xff] %v4756_v30  ;;  %v568_v33 = vpop.permute.xlu0 %567  ;;  %v1329_v19 = vmax.f32 %v4756_v30, %v4758_v1  ;;  %vm1152_vm3 = vcmp.ne.s32.totalorder %v1088_v14, 0  ;;  %vm1153_vm4 = vcmp.ne.s32.totalorder %v1089_v38, 0  ;;  %v6061_v40 = vmax.f32 %v4642_v16, %v4670_v21  ;;  %v816_v38 = vld [vmem:[%s4067_s9 + $0x70] sm:$0xff] }
 0x152   : > { %6058 = vst [vmem:[#allocation20_spill] sm:$0xff] %v4758_v1  ;;  %v658_v23 = vadd.f32 %v4254_v15, %v568_v33  ;;  %v659_v42 = vadd.f32 %v4256_v17, %v568_v33  ;;  %v4775_v1 = vsel %vm1152_vm3, %v6059_v54, -9e+15  ;;  %v904_v33 = vunpack.c.3.s8 %v4745_v51 }
 0x153   : > { %1330 = vmax.xlane.f32.xlu1 %v1329_v19  ;;  %6060 = vst [vmem:[#allocation21_spill] sm:$0xff] %v4775_v1  ;;  %v4781_v30 = vsel %vm1153_vm4, %v6061_v40, -9e+15  ;;  %vm1002_vm5 = vnez %v963_v28  ;;  %v966_v19 = vpack.c.b16 %v903_v46, %v902_v49  ;;  %v905_v14 = vunpack.c.3.s8 %v4748_v26 }
 0x154   : > { %v722_v2 = vmul.f32 0.01, %v658_v23  ;;  %v723_v53 = vmul.f32 0.01, %v659_v42  ;;  %1327 = vmax.xlane.f32.xlu0 %v1326_v62  ;;  %6062 = vst [vmem:[#allocation22_spill] sm:$0xff] %v4781_v30  ;;  %v790_v16 = vmax.f32 %v4715_v39, %v726_v10  ;;  %v1335_v21 = vmax.f32 %v4775_v1, %v4781_v30 }
 0x155   : > { %v727_v18 = vmul.f32 0.01, %v4726_v47  ;;  %v1034_v20 = vsel %vm1002_vm5, 16843009, %v6040_v25  ;;  %v967_v8 = vpack.c.b8 %v966_v19, %v966_v19  ;;  %v968_v43 = vpack.c.b16 %v905_v14, %v904_v33  ;;  %v4801_v14 = vpop.permute.xlu1 %527 }
 0x156   : > { %v786_v62 = vmax.f32 %v658_v23, %v722_v2  ;;  %v787_v44 = vmax.f32 %v659_v42, %v723_v53  ;;  %v1090_v5 = vunpack.c.0.s8 %v1034_v20  ;;  %v1091_v54 = vunpack.c.1.s8 %v1034_v20  ;;  %v817_v2 = vld [vmem:[%s4067_s9 + $0x78] sm:$0xff] }
 0x157   : > { %vm832_vm6 = vnez %v816_v38  ;;  %vm1004_vm9 = vnez %v967_v8  ;;  %v969_v49 = vpack.c.b8 %v968_v43, %v968_v43  ;;  %v791_v39 = vmax.f32 %v4726_v47, %v727_v18 }
 0x158   : > { %vm1154_vm7 = vcmp.ne.s32.totalorder %v1090_v5, 0  ;;  %vm1155_vm8 = vcmp.ne.s32.totalorder %v1091_v54, 0  ;;  %v1036_v53 = vsel %vm1004_vm9, 16843009, %v6040_v25  ;;  %vm833_vm11 = vnez %v817_v2 }
 0x159   : > { %v583_v40 = vpop.permute.xlu0 %582  ;;  %v4792_v28 = vsel %vm1154_vm7, %v786_v62, -9e+15  ;;  %v4794_v46 = vsel %vm1155_vm8, %v787_v44, -9e+15  ;;  %vm1005_vm10 = vnez %v969_v49  ;;  %v1094_v43 = vunpack.c.0.s8 %v1036_v53  ;;  %v593_v62 = vpop.permute.xlu2 %592 }
 0x15a   : > { %v664_v23 = vadd.f32 %v4254_v15, %v583_v40  ;;  %v665_v42 = vadd.f32 %v4256_v17, %v583_v40  ;;  %6063 = vst [vmem:[#allocation23_spill] sm:$0xff] %v4792_v28  ;;  %v1338_v10 = vmax.f32 %v4792_v28, %v4794_v46  ;;  %v1095_v19 = vunpack.c.1.s8 %v1036_v53 }
 0x15b   : > { %6064 = vst [vmem:[#allocation24_spill] sm:$0xff] %v4794_v46  ;;  %v1037_v44 = vsel %vm1005_vm10, 16843009, %v6040_v25  ;;  %v4806_v47 = vsel %vm832_vm6, 16843009, %v6040_v25  ;;  %vm1158_vm12 = vcmp.ne.s32.totalorder %v1094_v43, 0  ;;  %v668_v49 = vadd.f32 %v4254_v15, %v593_v62 }
 0x15c   : > { %v728_v33 = vmul.f32 0.01, %v664_v23  ;;  %v729_v8 = vmul.f32 0.01, %v665_v42  ;;  %1336 = vmax.xlane.f32.xlu0 %v1335_v21  ;;  %1339 = vmax.xlane.f32.xlu1 %v1338_v10  ;;  %vm1159_vm13 = vcmp.ne.s32.totalorder %v1095_v19, 0  ;;  %v1096_v21 = vunpack.c.0.s8 %v1037_v44 }
 0x15d   : > { %v4808_v5 = vsel %vm1158_vm12, %v790_v16, -9e+15  ;;  %v4810_v54 = vsel %vm1159_vm13, %v791_v39, -9e+15  ;;  %v1097_v40 = vunpack.c.1.s8 %v1037_v44  ;;  %v669_v10 = vadd.f32 %v4256_v17, %v593_v62 }
 0x15e   : > { %v792_v18 = vmax.f32 %v664_v23, %v728_v33  ;;  %v793_v20 = vmax.f32 %v665_v42, %v729_v8  ;;  %6065 = vst [vmem:[#allocation25_spill] sm:$0xff] %v4808_v5  ;;  %v4815_v2 = vsel %vm833_vm11, 16843009, %v6040_v25  ;;  %v908_v38 = vunpack.c.1.s8 %v4806_v47 }
 0x15f   : > { %6066 = vst [vmem:[#allocation26_spill] sm:$0xff] %v4810_v54  ;;  %vm1160_vm14 = vcmp.ne.s32.totalorder %v1096_v21, 0  ;;  %vm1161_vm15 = vcmp.ne.s32.totalorder %v1097_v40, 0  ;;  %v909_v23 = vunpack.c.1.s8 %v4815_v2  ;;  %v1344_v16 = vmax.f32 %v4808_v5, %v4810_v54  ;;  %v4832_v21 = vpop.permute.xlu1 %542 }
 0x160   : > { %v4821_v42 = vsel %vm1160_vm14, %v792_v18, -9e+15  ;;  %v4823_v39 = vsel %vm1161_vm15, %v793_v20, -9e+15  ;;  %v624_v53 = vadd.f32 %v4254_v15, %v4672_v4  ;;  %v732_v43 = vmul.f32 0.01, %v668_v49 }
 0x161   : > { %6067 = vst [vmem:[#allocation27_spill] sm:$0xff] %v4821_v42  ;;  %v1347_v33 = vmax.f32 %v4821_v42, %v4823_v39  ;;  %v972_v8 = vpack.c.b16 %v909_v23, %v908_v38  ;;  %v733_v19 = vmul.f32 0.01, %v669_v10  ;;  %v625_v62 = vadd.f32 %v4256_v17, %v4672_v4 }
 0x162   : > { %6068 = vst [vmem:[#allocation28_spill] sm:$0xff] %v4823_v39  ;;  %v864_v18 = vunpack.c.3.s8 %v4238_v57  ;;  %v865_v20 = vunpack.c.3.s8 %v4241_v58  ;;  %v688_v40 = vmul.f32 0.01, %v624_v53  ;;  %v630_v54 = vadd.f32 %v4254_v15, %v4723_v37 }
 0x163   : > { %v973_v44 = vpack.c.b8 %v972_v8, %v972_v8  ;;  %v631_v38 = vadd.f32 %v4256_v17, %v4723_v37  ;;  %v796_v23 = vmax.f32 %v668_v49, %v732_v43  ;;  %v689_v8 = vmul.f32 0.01, %v625_v62 }
 0x164   : > { %1345 = vmax.xlane.f32.xlu0 %v1344_v16  ;;  %1348 = vmax.xlane.f32.xlu1 %v1347_v33  ;;  %v797_v16 = vmax.f32 %v669_v10, %v733_v19  ;;  %v928_v33 = vpack.c.b16 %v865_v20, %v864_v18  ;;  %v870_v30 = vunpack.c.2.s8 %v4260_v24  ;;  %v871_v58 = vunpack.c.2.s8 %v4264_v27 }
 0x165   : > { %vm1007_vm0 = vnez %v973_v44  ;;  %v694_v42 = vmul.f32 0.01, %v630_v54  ;;  %v695_v1 = vmul.f32 0.01, %v631_v38  ;;  %v752_v43 = vmax.f32 %v624_v53, %v688_v40 }
 0x166   : > { %v1039_v4 = vsel %vm1007_vm0, 16843009, %v6040_v25  ;;  %v929_v39 = vpack.c.b8 %v928_v33, %v928_v33  ;;  %v934_v49 = vpack.c.b16 %v871_v58, %v870_v30  ;;  %v753_v19 = vmax.f32 %v625_v62, %v689_v8 }
 0x167   : > { %v1100_v5 = vunpack.c.0.s8 %v1039_v4  ;;  %v1101_v57 = vunpack.c.1.s8 %v1039_v4  ;;  %v876_v20 = vunpack.c.1.s8 %v4380_v63  ;;  %v758_v30 = vmax.f32 %v630_v54, %v694_v42  ;;  %v4855_v53 = vpop.permute.xlu1 %557 }
 0x168   : > { %vm985_vm3 = vnez %v929_v39  ;;  %v935_v27 = vpack.c.b8 %v934_v49, %v934_v49  ;;  %v877_v39 = vunpack.c.1.s8 %v4392_v48  ;;  %v759_v62 = vmax.f32 %v631_v38, %v695_v1 }
 0x169   : > { %vm1164_vm1 = vcmp.ne.s32.totalorder %v1100_v5, 0  ;;  %vm1165_vm2 = vcmp.ne.s32.totalorder %v1101_v57, 0  ;;  %v1017_v24 = vsel %vm985_vm3, 16843009, %v6040_v25  ;;  %v636_v5 = vadd.f32 %v4254_v15, %v4769_v56 }
 0x16a   : > { %v4842_v46 = vsel %vm1164_vm1, %v796_v23, -9e+15  ;;  %v4844_v37 = vsel %vm1165_vm2, %v797_v16, -9e+15  ;;  %v1056_v44 = vunpack.c.0.s8 %v1017_v24  ;;  %v1057_v18 = vunpack.c.1.s8 %v1017_v24 }
 0x16b   : > { %6069 = vst [vmem:[#allocation29_spill] sm:$0xff] %v4842_v46  ;;  %v1353_v10 = vmax.f32 %v4842_v46, %v4844_v37  ;;  %v637_v23 = vadd.f32 %v4256_v17, %v4769_v56  ;;  %vm988_vm6 = vnez %v935_v27  ;;  %v940_v4 = vpack.c.b16 %v877_v39, %v876_v20 }
 0x16c   : > { %6070 = vst [vmem:[#allocation30_spill] sm:$0xff] %v4844_v37  ;;  %vm1120_vm4 = vcmp.ne.s32.totalorder %v1056_v44, 0  ;;  %vm1121_vm5 = vcmp.ne.s32.totalorder %v1057_v18, 0  ;;  %v1020_v63 = vsel %vm988_vm6, 16843009, %v6040_v25  ;;  %v643_v27 = vadd.f32 %v4256_v17, %v4801_v14 }
 0x16d   : > { %1354 = vmax.xlane.f32.xlu0 %v1353_v10  ;;  %v4857_v40 = vsel %vm1120_vm4, %v752_v43, -9e+15  ;;  %v4859_v16 = vsel %vm1121_vm5, %v753_v19, -9e+15  ;;  %v1062_v33 = vunpack.c.0.s8 %v1020_v63  ;;  %v1063_v54 = vunpack.c.1.s8 %v1020_v63 }
 0x16e   : > { %v1287_v56 = vmax.f32 %v4857_v40, %v4859_v16  ;;  %v941_v42 = vpack.c.b8 %v940_v4, %v940_v4  ;;  %v700_v48 = vmul.f32 0.01, %v636_v5  ;;  %v701_v8 = vmul.f32 0.01, %v637_v23 }
 0x16f   : > { %vm1126_vm7 = vcmp.ne.s32.totalorder %v1062_v33, 0  ;;  %vm1127_vm8 = vcmp.ne.s32.totalorder %v1063_v54, 0  ;;  %v882_v10 = vunpack.c.0.s8 %v4564_v34  ;;  %v883_v43 = vunpack.c.0.s8 %v4567_v36 }
 0x170   : > { %1288 = vmax.xlane.f32.xlu2 %v1287_v56  ;;  %v4864_v1 = vsel %vm1126_vm7, %v758_v30, -9e+15  ;;  %v4866_v38 = vsel %vm1127_vm8, %v759_v62, -9e+15  ;;  %vm991_vm9 = vnez %v941_v42  ;;  %v642_v19 = vadd.f32 %v4254_v15, %v4801_v14  ;;  %v4877_v30 = vpop.permute.xlu1 %572 }
 0x171   : > { %v1023_v57 = vsel %vm991_vm9, 16843009, %v6040_v25  ;;  %v1296_v24 = vmax.f32 %v4864_v1, %v4866_v38  ;;  %v764_v44 = vmax.f32 %v636_v5, %v700_v48  ;;  %v765_v18 = vmax.f32 %v637_v23, %v701_v8  ;;  %v442_v48 = vld [vmem:[%s4054_s30 + $0xf0] sm:$0xff] }
 0x172   : > { %v1068_v58 = vunpack.c.0.s8 %v1023_v57  ;;  %v1069_v49 = vunpack.c.1.s8 %v1023_v57  ;;  %v946_v20 = vpack.c.b16 %v883_v43, %v882_v10  ;;  %v706_v62 = vmul.f32 0.01, %v642_v19 }
 0x173   : > { %v707_v63 = vmul.f32 0.01, %v643_v27  ;;  %v888_v14 = vunpack.c.3.s8 %v4564_v34  ;;  %v889_v54 = vunpack.c.3.s8 %v4567_v36  ;;  %v648_v42 = vadd.f32 %v4254_v15, %v4832_v21 }
 0x174   : > { %vm1132_vm10 = vcmp.ne.s32.totalorder %v1068_v58, 0  ;;  %vm1133_vm11 = vcmp.ne.s32.totalorder %v1069_v49, 0  ;;  %v947_v39 = vpack.c.b8 %v946_v20, %v946_v20  ;;  %v770_v57 = vmax.f32 %v642_v19, %v706_v62 }
 0x175   : > { %v4879_v4 = vsel %vm1132_vm10, %v764_v44, -9e+15  ;;  %v4881_v56 = vsel %vm1133_vm11, %v765_v18, -9e+15  ;;  %v771_v58 = vmax.f32 %v643_v27, %v707_v63  ;;  %v649_v49 = vadd.f32 %v4256_v17, %v4832_v21 }
 0x176   : > { %6071 = vst [vmem:[#allocation31_spill] sm:$0xff] %v4881_v56  ;;  %vm994_vm12 = vnez %v947_v39  ;;  %v1305_v8 = vmax.f32 %v4879_v4, %v4881_v56  ;;  %v952_v10 = vpack.c.b16 %v889_v54, %v888_v14  ;;  %v712_v34 = vmul.f32 0.01, %v648_v42 }
 0x177   : > { %v1026_v5 = vsel %vm994_vm12, 16843009, %v6040_v25  ;;  %v894_v21 = vunpack.c.2.s8 %v4656_v59  ;;  %v895_v39 = vunpack.c.2.s8 %v4659_v35  ;;  %v654_v62 = vadd.f32 %v4254_v15, %v4855_v53  ;;  %v4908_v59 = vld [vmem:[#allocation2 + $0x10] sm:$0xff] }
 0x178   : > { %1297 = vmax.xlane.f32.xlu2 %v1296_v24  ;;  %v1074_v23 = vunpack.c.0.s8 %v1026_v5  ;;  %v1075_v33 = vunpack.c.1.s8 %v1026_v5  ;;  %v953_v43 = vpack.c.b8 %v952_v10, %v952_v10  ;;  %v4893_v36 = vpop.permute.xlu1 %587  ;;  %v713_v24 = vmul.f32 0.01, %v649_v49  ;;  %6072 = vst [vmem:[#allocation32_spill] sm:$0xff] %v4908_v59 }
 0x179   : > { %v776_v5 = vmax.f32 %v648_v42, %v712_v34  ;;  %v958_v14 = vpack.c.b16 %v895_v39, %v894_v21  ;;  %v901_v10 = vunpack.c.1.s8 %v4748_v26  ;;  %vm2034_vm3 = vcmask 7168  }
 0x17a   : > { %vm1138_vm13 = vcmp.ne.s32.totalorder %v1074_v23, 0  ;;  %vm1139_vm14 = vcmp.ne.s32.totalorder %v1075_v33, 0  ;;  %vm997_vm15 = vnez %v953_v43  ;;  %v777_v23 = vmax.f32 %v649_v49, %v713_v24 }
 0x17b   : > { %v4895_v44 = vsel %vm1138_vm13, %v770_v57, -9e+15  ;;  %v4897_v18 = vsel %vm1139_vm14, %v771_v58, -9e+15  ;;  %v1029_v19 = vsel %vm997_vm15, 16843009, %v6040_v25  ;;  %v655_v33 = vadd.f32 %v4256_v17, %v4855_v53 }
 0x17c   : > { %v1080_v27 = vunpack.c.0.s8 %v1029_v19  ;;  %v1081_v20 = vunpack.c.1.s8 %v1029_v19  ;;  %v1314_v63 = vmax.f32 %v4895_v44, %v4897_v18  ;;  %v959_v54 = vpack.c.b8 %v958_v14, %v958_v14  ;;  %v4914_v58 = vld [vmem:[#allocation2] sm:$0xff] }
 0x17d   : > { %v719_v35 = vmul.f32 0.01, %v655_v33  ;;  %v900_v53 = vunpack.c.1.s8 %v4745_v51  ;;  %v660_v43 = vadd.f32 %v4254_v15, %v4877_v30 }
 0x17e   : > { %vm1144_vm0 = vcmp.ne.s32.totalorder %v1080_v27, 0  ;;  %vm1145_vm1 = vcmp.ne.s32.totalorder %v1081_v20, 0  ;;  %vm1000_vm2 = vnez %v959_v54  ;;  %v661_v27 = vadd.f32 %v4256_v17, %v4877_v30 }
 0x17f   : > { %v4912_v57 = vsel %vm1145_vm1, %v777_v23, -9e+15  ;;  %v1032_v49 = vsel %vm1000_vm2, 16843009, %v6040_v25  ;;  %v964_v39 = vpack.c.b16 %v901_v10, %v900_v53  ;;  %v724_v23 = vmul.f32 0.01, %v660_v43 }
 0x180   : > { %1306 = vmax.xlane.f32.xlu2 %v1305_v8  ;;  %v4910_v8 = vsel %vm1144_vm0, %v776_v5, -9e+15  ;;  %6074 = vst [vmem:[#allocation34_spill] sm:$0xff] %v4912_v57  ;;  %v1086_v24 = vunpack.c.0.s8 %v1032_v49  ;;  %v1087_v19 = vunpack.c.1.s8 %v1032_v49  ;;  %v906_v53 = vunpack.c.0.s8 %v4806_v47 }
 0x181   : > { %597 = vperm.xlu0 %3557, %v442_v48   ;;  %v718_v48 = vmul.f32 0.01, %v654_v62  ;;  %6073 = vst [vmem:[#allocation33_spill] sm:$0xff] %v4910_v8  ;;  %v1323_v21 = vmax.f32 %v4910_v8, %v4912_v57  ;;  %v965_v5 = vpack.c.b8 %v964_v39, %v964_v39  ;;  %v907_v10 = vunpack.c.0.s8 %v4815_v2  ;;  %v5166_v8 = vld [vmem:[#allocation2 + $0x80] sm:$0xff] }
 0x182   : > { %vm1150_vm4 = vcmp.ne.s32.totalorder %v1086_v24, 0  ;;  %vm1151_vm5 = vcmp.ne.s32.totalorder %v1087_v19, 0  ;;  %v666_v24 = vadd.f32 %v4254_v15, %v4893_v36  ;;  %6118 = vst [vmem:[#allocation78_spill] sm:$0xff] %v5166_v8 }
 0x183   : > { %v782_v51 = vmax.f32 %v654_v62, %v718_v48  ;;  %v725_v62 = vmul.f32 0.01, %v661_v27  ;;  %vm1003_vm6 = vnez %v965_v5  ;;  %v788_v5 = vmax.f32 %v660_v43, %v724_v23  ;;  %v4970_v23 = vld [vmem:[#allocation2 + $0x28] sm:$0xff] }
 0x184   : > { %v1035_v48 = vsel %vm1003_vm6, 16843009, %v6040_v25  ;;  %6080 = vst [vmem:[#allocation40_spill] sm:$0xff] %v4970_v23 }
 0x185   : > { %v4940_v14 = vsel %vm1150_vm4, %v782_v51, -9e+15  ;;  %v1093_v49 = vunpack.c.1.s8 %v1035_v48 }
 0x186   : > { %6076 = vst [vmem:[#allocation36_spill] sm:$0xff] %v4940_v14 }
 0x187   : > { %vm1157_vm8 = vcmp.ne.s32.totalorder %v1093_v49, 0 }
 0x188   : > { %1315 = vmax.xlane.f32.xlu2 %v1314_v63  ;;  %v783_v63 = vmax.f32 %v655_v33, %v719_v35  ;;  %v4938_v33 = vld [vmem:[#allocation2 + $0x8] sm:$0xff]  ;;  %v4945_v35 = vld [vmem:[#allocation2 + $0x18] sm:$0xff] }
 0x189   : > { %6075 = vst [vmem:[#allocation35_spill] sm:$0xff] %v4938_v33 }
 0x18a   : > { %v4942_v54 = vsel %vm1151_vm5, %v783_v63, -9e+15  ;;  %v970_v63 = vpack.c.b16 %v907_v10, %v906_v53  ;;  %v730_v53 = vmul.f32 0.01, %v666_v24  ;;  %v4977_v10 = vld [vmem:[#allocation2 + $0x20] sm:$0xff] }
 0x18b   : > { %6077 = vst [vmem:[#allocation37_spill] sm:$0xff] %v4942_v54  ;;  %v1332_v51 = vmax.f32 %v4940_v14, %v4942_v54 }
 0x18c   : > { %6083 = vst [vmem:[#allocation43_spill] sm:$0xff] %v4977_v10 }
 0x18e   : > { %v1274_v42 = vpop.xlane.xlu1 %1273 }
 0x18f   : > { %v4922_v34 = vmax.f32 %v4908_v59, %v1274_v42  ;;  %v1092_v42 = vunpack.c.0.s8 %v1035_v48  ;;  %v789_v48 = vmax.f32 %v661_v27, %v725_v62  ;;  %v971_v59 = vpack.c.b8 %v970_v63, %v970_v63  ;;  %v4968_v27 = vld [vmem:[#allocation2 + $0x30] sm:$0xff] }
 0x190   : > { %v1268_v20 = vpop.xlane.xlu2 %1267  ;;  %1324 = vmax.xlane.f32.xlu2 %v1323_v21  ;;  %6079 = vst [vmem:[#allocation39_spill] sm:$0xff] %v4968_v27 }
 0x191   : > { %v4929_v26 = vmax.f32 %v4914_v58, %v1268_v20  ;;  %2700 = vst.msk [vmem:[#allocation2 + $0x10] sm:$0xff] %vm2034_vm3, %v4922_v34  ;;  %v667_v20 = vadd.f32 %v4256_v17, %v4893_v36  ;;  %vm1156_vm7 = vcmp.ne.s32.totalorder %v1092_v42, 0  ;;  %vm1006_vm9 = vnez %v971_v59 }
 0x192   : > { %v4972_v62 = vsel %vm1156_vm7, %v788_v5, -9e+15  ;;  %v4974_v42 = vsel %vm1157_vm8, %v789_v48, -9e+15  ;;  %v1038_v49 = vsel %vm1006_vm9, 16843009, %v6040_v25 }
 0x193   : > { %2698 = vst.msk [vmem:[#allocation2] sm:$0xff] %vm2034_vm3, %v4929_v26  ;;  %1492 = vperm.xlu0 %3557, %v4929_v26   ;;  %v731_v43 = vmul.f32 0.01, %v667_v20  ;;  %v1099_v63 = vunpack.c.1.s8 %v1038_v49  ;;  %v1341_v59 = vmax.f32 %v4972_v62, %v4974_v42 }
 0x194   : > { %6081 = vst [vmem:[#allocation41_spill] sm:$0xff] %v4972_v62 }
 0x195   : > { %6082 = vst [vmem:[#allocation42_spill] sm:$0xff] %v4974_v42  ;;  %v795_v5 = vmax.f32 %v667_v20, %v731_v43  ;;  %vm1163_vm11 = vcmp.ne.s32.totalorder %v1099_v63, 0  ;;  %v5143_v42 = vld [vmem:[#allocation2 + $0x50] sm:$0xff] }
 0x196   : > { %6113 = vst [vmem:[#allocation73_spill] sm:$0xff] %v5143_v42 }
 0x197   : > { %v1271_v19 = vpop.xlane.xlu0 %1270  ;;  %v5005_v20 = vsel %vm1163_vm11, %v795_v5, -9e+15  ;;  %v5024_v5 = vld [vmem:[#allocation2 + $0x58] sm:$0xff] }
 0x198   : > { %v1277_v21 = vpop.xlane.xlu2 %1276  ;;  %v4954_v39 = vmax.f32 %v4938_v33, %v1271_v19  ;;  %1333 = vmax.xlane.f32.xlu2 %v1332_v51  ;;  %v794_v51 = vmax.f32 %v666_v24, %v730_v53  ;;  %6089 = vst [vmem:[#allocation49_spill] sm:$0xff] %v5005_v20 }
 0x199   : > { %v4959_v30 = vmax.f32 %v4945_v35, %v1277_v21  ;;  %v1098_v21 = vunpack.c.0.s8 %v1038_v49  ;;  %6092 = vst [vmem:[#allocation52_spill] sm:$0xff] %v5024_v5 }
 0x19a   : > { %6078 = vst [vmem:[#allocation38_spill] sm:$0xff] %v4954_v39 }
 0x19b   : > { %2699 = vst.msk [vmem:[#allocation2 + $0x8] sm:$0xff] %vm2034_vm3, %v4954_v39  ;;  %1507 = vperm.xlu0 %3557, %v4959_v30   ;;  %vm1162_vm10 = vcmp.ne.s32.totalorder %v1098_v21, 0 }
 0x19c   : > { %2701 = vst.msk [vmem:[#allocation2 + $0x18] sm:$0xff] %vm2034_vm3, %v4959_v30  ;;  %v5003_v24 = vsel %vm1162_vm10, %v794_v51, -9e+15  ;;  %v5022_v51 = vld [vmem:[#allocation2 + $0x60] sm:$0xff] }
 0x19d   : > { %6088 = vst [vmem:[#allocation48_spill] sm:$0xff] %v5003_v24  ;;  %v1350_v63 = vmax.f32 %v5003_v24, %v5005_v20 }
 0x19e   : > { %v1286_v19 = vpop.xlane.xlu1 %1285  ;;  %6091 = vst [vmem:[#allocation51_spill] sm:$0xff] %v5022_v51 }
 0x19f   : > { %v4980_v36 = vmax.f32 %v4968_v27, %v1286_v19  ;;  %v1283_v33 = vpop.xlane.xlu0 %1282 }
 0x1a0   : > { %v1280_v37 = vpop.xlane.xlu2 %1279  ;;  %v4983_v46 = vmax.f32 %v4970_v23, %v1283_v33  ;;  %v4999_v33 = vld [vmem:[#allocation2 + $0x48] sm:$0xff]  ;;  %1342 = vmax.xlane.f32.xlu2 %v1341_v59 }
 0x1a1   : > { %v4988_v48 = vmax.f32 %v4977_v10, %v1280_v37  ;;  %2704 = vst.msk [vmem:[#allocation2 + $0x30] sm:$0xff] %vm2034_vm3, %v4980_v36  ;;  %v5001_v37 = vld [vmem:[#allocation2 + $0x40] sm:$0xff] }
 0x1a2   : > { %6084 = vst [vmem:[#allocation44_spill] sm:$0xff] %v4983_v46 }
 0x1a3   : > { %6085 = vst [vmem:[#allocation45_spill] sm:$0xff] %v4988_v48  ;;  %1517 = vperm.xlu0 %3557, %v4983_v46  }
 0x1a4   : > { %2703 = vst.msk [vmem:[#allocation2 + $0x28] sm:$0xff] %vm2034_vm3, %v4983_v46 }
 0x1a5   : > { %2702 = vst.msk [vmem:[#allocation2 + $0x20] sm:$0xff] %vm2034_vm3, %v4988_v48 }
 0x1a6   : > { %6086 = vst [vmem:[#allocation46_spill] sm:$0xff] %v4999_v33  ;;  %v1295_v53 = vpop.xlane.xlu1 %1294 }
 0x1a7   : > { %6087 = vst [vmem:[#allocation47_spill] sm:$0xff] %v5001_v37  ;;  %v5008_v43 = vmax.f32 %v4999_v33, %v1295_v53  ;;  %v1292_v19 = vpop.xlane.xlu0 %1291 }
 0x1a8   : > { %v5011_v21 = vmax.f32 %v5001_v37, %v1292_v19  ;;  %1351 = vmax.xlane.f32.xlu2 %v1350_v63  ;;  %v5039_v63 = vld [vmem:[#allocation2 + $0x78] sm:$0xff] }
 0x1a9   : > { %2707 = vst.msk [vmem:[#allocation2 + $0x48] sm:$0xff] %vm2034_vm3, %v5008_v43 }
 0x1aa   : > { %6090 = vst [vmem:[#allocation50_spill] sm:$0xff] %v5011_v21 }
 0x1ab   : > { %2706 = vst.msk [vmem:[#allocation2 + $0x40] sm:$0xff] %vm2034_vm3, %v5011_v21  ;;  %1532 = vperm.xlu0 %3557, %v5011_v21   ;;  %v5041_v21 = vld [vmem:[#allocation2 + $0x70] sm:$0xff] }
 0x1ac   : > { %6094 = vst [vmem:[#allocation54_spill] sm:$0xff] %v5039_v63 }
 0x1ad   : > { %6095 = vst [vmem:[#allocation55_spill] sm:$0xff] %v5041_v21 }
 0x1ae   : > { %v1304_v53 = vpop.xlane.xlu1 %1303 }
 0x1af   : > { %v5027_v19 = vmax.f32 %v5022_v51, %v1304_v53  ;;  %v1301_v49 = vpop.xlane.xlu0 %1300 }
 0x1b0   : > { %v5030_v46 = vmax.f32 %v5024_v5, %v1301_v49  ;;  %v5058_v5 = vld [vmem:[#allocation2 + $0x88] sm:$0xff] }
 0x1b1   : > { %2710 = vst.msk [vmem:[#allocation2 + $0x60] sm:$0xff] %vm2034_vm3, %v5027_v19 }
 0x1b2   : > { %6093 = vst [vmem:[#allocation53_spill] sm:$0xff] %v5030_v46 }
 0x1b3   : > { %2709 = vst.msk [vmem:[#allocation2 + $0x58] sm:$0xff] %vm2034_vm3, %v5030_v46  ;;  %1547 = vperm.xlu0 %3557, %v5030_v46   ;;  %v5056_v46 = vld [vmem:[#allocation2 + $0x90] sm:$0xff] }
 0x1b4   : > { %6097 = vst [vmem:[#allocation57_spill] sm:$0xff] %v5056_v46 }
 0x1b5   : > { %6098 = vst [vmem:[#allocation58_spill] sm:$0xff] %v5058_v5 }
 0x1b6   : > { %v1313_v53 = vpop.xlane.xlu1 %1312 }
 0x1b7   : > { %v5044_v37 = vmax.f32 %v5039_v63, %v1313_v53  ;;  %v1310_v49 = vpop.xlane.xlu0 %1309 }
 0x1b8   : > { %v5047_v23 = vmax.f32 %v5041_v21, %v1310_v49  ;;  %v5075_v21 = vld [vmem:[#allocation2 + $0xa0] sm:$0xff] }
 0x1b9   : > { %2713 = vst.msk [vmem:[#allocation2 + $0x78] sm:$0xff] %vm2034_vm3, %v5044_v37 }
 0x1ba   : > { %6096 = vst [vmem:[#allocation56_spill] sm:$0xff] %v5047_v23 }
 0x1bb   : > { %2712 = vst.msk [vmem:[#allocation2 + $0x70] sm:$0xff] %vm2034_vm3, %v5047_v23  ;;  %1562 = vperm.xlu0 %3557, %v5047_v23   ;;  %v5073_v23 = vld [vmem:[#allocation2 + $0xa8] sm:$0xff] }
 0x1bc   : > { %6100 = vst [vmem:[#allocation60_spill] sm:$0xff] %v5073_v23 }
 0x1bd   : > { %6101 = vst [vmem:[#allocation61_spill] sm:$0xff] %v5075_v21 }
 0x1be   : > { %v1322_v53 = vpop.xlane.xlu1 %1321 }
 0x1bf   : > { %v5061_v63 = vmax.f32 %v5056_v46, %v1322_v53  ;;  %v1319_v49 = vpop.xlane.xlu0 %1318 }
 0x1c0   : > { %v5064_v51 = vmax.f32 %v5058_v5, %v1319_v49  ;;  %v5092_v5 = vld [vmem:[#allocation2 + $0xc0] sm:$0xff] }
 0x1c1   : > { %2716 = vst.msk [vmem:[#allocation2 + $0x90] sm:$0xff] %vm2034_vm3, %v5061_v63 }
 0x1c2   : > { %6099 = vst [vmem:[#allocation59_spill] sm:$0xff] %v5064_v51 }
 0x1c3   : > { %2715 = vst.msk [vmem:[#allocation2 + $0x88] sm:$0xff] %vm2034_vm3, %v5064_v51  ;;  %1577 = vperm.xlu0 %3557, %v5064_v51   ;;  %v5090_v51 = vld [vmem:[#allocation2 + $0xb8] sm:$0xff] }
 0x1c4   : > { %6103 = vst [vmem:[#allocation63_spill] sm:$0xff] %v5090_v51 }
 0x1c5   : > { %6104 = vst [vmem:[#allocation64_spill] sm:$0xff] %v5092_v5 }
 0x1c6   : > { %v1331_v53 = vpop.xlane.xlu1 %1330 }
 0x1c7   : > { %v5078_v46 = vmax.f32 %v5073_v23, %v1331_v53  ;;  %v1328_v49 = vpop.xlane.xlu0 %1327 }
 0x1c8   : > { %v5081_v10 = vmax.f32 %v5075_v21, %v1328_v49  ;;  %v5109_v21 = vld [vmem:[#allocation2 + $0xd8] sm:$0xff] }
 0x1c9   : > { %2719 = vst.msk [vmem:[#allocation2 + $0xa8] sm:$0xff] %vm2034_vm3, %v5078_v46 }
 0x1ca   : > { %6102 = vst [vmem:[#allocation62_spill] sm:$0xff] %v5081_v10 }
 0x1cb   : > { %2718 = vst.msk [vmem:[#allocation2 + $0xa0] sm:$0xff] %vm2034_vm3, %v5081_v10  ;;  %1592 = vperm.xlu0 %3557, %v5081_v10   ;;  %v5107_v10 = vld [vmem:[#allocation2 + $0xd0] sm:$0xff] }
 0x1cc   : > { %6106 = vst [vmem:[#allocation66_spill] sm:$0xff] %v5107_v10 }
 0x1cd   : > { %6107 = vst [vmem:[#allocation67_spill] sm:$0xff] %v5109_v21 }
 0x1cf   : > { %v1337_v53 = vpop.xlane.xlu0 %1336  ;;  %v1340_v23 = vpop.xlane.xlu1 %1339 }
 0x1d0   : > { %v5095_v49 = vmax.f32 %v5090_v51, %v1337_v53  ;;  %v5098_v33 = vmax.f32 %v5092_v5, %v1340_v23 }
 0x1d2   : > { %6105 = vst [vmem:[#allocation65_spill] sm:$0xff] %v5095_v49 }
 0x1d3   : > { %2721 = vst.msk [vmem:[#allocation2 + $0xb8] sm:$0xff] %vm2034_vm3, %v5095_v49  ;;  %1607 = vperm.xlu0 %3557, %v5095_v49   ;;  %v5124_v49 = vld [vmem:[#allocation2 + $0xe8] sm:$0xff] }
 0x1d4   : > { %2722 = vst.msk [vmem:[#allocation2 + $0xc0] sm:$0xff] %vm2034_vm3, %v5098_v33 }
 0x1d5   : > { %6109 = vst [vmem:[#allocation69_spill] sm:$0xff] %v5124_v49 }
 0x1d7   : > { %v1346_v53 = vpop.xlane.xlu0 %1345  ;;  %v1349_v27 = vpop.xlane.xlu1 %1348 }
 0x1d8   : > { %v5112_v23 = vmax.f32 %v5107_v10, %v1346_v53  ;;  %v5115_v5 = vmax.f32 %v5109_v21, %v1349_v27  ;;  %v910_v27 = vunpack.c.2.s8 %v4806_v47  ;;  %v911_v21 = vunpack.c.2.s8 %v4815_v2  ;;  %v5136_v10 = vld [vmem:[#allocation2 + $0x38] sm:$0xff] }
 0x1d9   : > { %6111 = vst [vmem:[#allocation71_spill] sm:$0xff] %v5136_v10 }
 0x1da   : > { %6108 = vst [vmem:[#allocation68_spill] sm:$0xff] %v5112_v23  ;;  %v974_v20 = vpack.c.b16 %v911_v21, %v910_v27 }
 0x1db   : > { %2724 = vst.msk [vmem:[#allocation2 + $0xd0] sm:$0xff] %vm2034_vm3, %v5112_v23  ;;  %1622 = vperm.xlu0 %3557, %v5112_v23  }
 0x1dc   : > { %2725 = vst.msk [vmem:[#allocation2 + $0xd8] sm:$0xff] %vm2034_vm3, %v5115_v5 }
 0x1e0   : > { %v1355_v51 = vpop.xlane.xlu0 %1354 }
 0x1e1   : > { %v5127_v53 = vmax.f32 %v5124_v49, %v1355_v51  ;;  %v975_v51 = vpack.c.b8 %v974_v20, %v974_v20  ;;  %v5151_v49 = vld [vmem:[#allocation2 + $0x68] sm:$0xff] }
 0x1e2   : > { %6115 = vst [vmem:[#allocation75_spill] sm:$0xff] %v5151_v49 }
 0x1e3   : > { %6110 = vst [vmem:[#allocation70_spill] sm:$0xff] %v5127_v53  ;;  %1637 = vperm.xlu0 %3557, %v5127_v53   ;;  %v1289_v23 = vpop.xlane.xlu2 %1288  ;;  %vm1008_vm12 = vnez %v975_v51 }
 0x1e4   : > { %2727 = vst.msk [vmem:[#allocation2 + $0xe8] sm:$0xff] %vm2034_vm3, %v5127_v53  ;;  %v5139_v24 = vmax.f32 %v5136_v10, %v1289_v23  ;;  %v1040_v53 = vsel %vm1008_vm12, 16843009, %v6040_v25 }
 0x1e5   : > { %v1102_v27 = vunpack.c.0.s8 %v1040_v53  ;;  %v1103_v23 = vunpack.c.1.s8 %v1040_v53 }
 0x1e6   : > { %6112 = vst [vmem:[#allocation72_spill] sm:$0xff] %v5139_v24 }
 0x1e7   : > { %2705 = vst.msk [vmem:[#allocation2 + $0x38] sm:$0xff] %vm2034_vm3, %v5139_v24  ;;  %vm1166_vm13 = vcmp.ne.s32.totalorder %v1102_v27, 0  ;;  %vm1167_vm14 = vcmp.ne.s32.totalorder %v1103_v23, 0 }
 0x1eb   : > { %v1298_v62 = vpop.xlane.xlu2 %1297 }
 0x1ec   : > { %v5146_v59 = vmax.f32 %v5143_v42, %v1298_v62 }
 0x1ee   : > { %6114 = vst [vmem:[#allocation74_spill] sm:$0xff] %v5146_v59 }
 0x1ef   : > { %2708 = vst.msk [vmem:[#allocation2 + $0x50] sm:$0xff] %vm2034_vm3, %v5146_v59 }
 0x1f3   : > { %v598_v21 = vpop.permute.xlu0 %597  ;;  %v1307_v28 = vpop.xlane.xlu2 %1306 }
 0x1f4   : > { %v670_v10 = vadd.f32 %v4254_v15, %v598_v21  ;;  %v671_v20 = vadd.f32 %v4256_v17, %v598_v21  ;;  %v5156_v62 = vmax.f32 %v5151_v49, %v1307_v28 }
 0x1f6   : > { %v734_v54 = vmul.f32 0.01, %v670_v10  ;;  %v735_v51 = vmul.f32 0.01, %v671_v20  ;;  %6116 = vst [vmem:[#allocation76_spill] sm:$0xff] %v5156_v62 }
 0x1f7   : > { %2711 = vst.msk [vmem:[#allocation2 + $0x68] sm:$0xff] %vm2034_vm3, %v5156_v62 }
 0x1f8   : > { %v798_v42 = vmax.f32 %v670_v10, %v734_v54  ;;  %v799_v14 = vmax.f32 %v671_v20, %v735_v51  ;;  %v5173_v10 = vld [vmem:[#allocation2 + $0x98] sm:$0xff] }
 0x1f9   : > { %6120 = vst [vmem:[#allocation80_spill] sm:$0xff] %v5173_v10 }
 0x1fa   : > { %v5160_v53 = vsel %vm1166_vm13, %v798_v42, -9e+15  ;;  %v5162_v57 = vsel %vm1167_vm14, %v799_v14, -9e+15 }
 0x1fb   : > { %6117 = vst [vmem:[#allocation77_spill] sm:$0xff] %v5162_v57  ;;  %v1356_v21 = vmax.f32 %v5160_v53, %v5162_v57  ;;  %v1316_v56 = vpop.xlane.xlu2 %1315 }
 0x1fc   : > { %v5169_v28 = vmax.f32 %v5166_v8, %v1316_v56 }
 0x1fd   : > { %1357 = vmax.xlane.f32.xlu1 %v1356_v21  ;;  %v5182_v21 = vld [vmem:[#allocation2 + $0xb0] sm:$0xff] }
 0x1fe   : > { %6119 = vst [vmem:[#allocation79_spill] sm:$0xff] %v5169_v28 }
 0x1ff   : > { %2714 = vst.msk [vmem:[#allocation2 + $0x80] sm:$0xff] %vm2034_vm3, %v5169_v28 }
 0x200   : > { %6122 = vst [vmem:[#allocation82_spill] sm:$0xff] %v5182_v21 }
 0x203   : > { %v1325_v27 = vpop.xlane.xlu2 %1324 }
 0x204   : > { %v5178_v51 = vmax.f32 %v5173_v10, %v1325_v27  ;;  %v3480_v10 = vld [vmem:[%s5237_s26 + $0x78] sm:$0xff] }
 0x205   : > { %v1493_v54 = vpop.permute.xlu0 %1492  ;;  %2545 = vmatpush.bf16.msra.mxu1 %v3480_v10  ;;  %3489 = vmatpush.bf16.msra.mxu3 %v3480_v10  ;;  %v3469_v10 = vld [vmem:[%s5237_s26 + $0x20] sm:$0xff] }
 0x206   : > { %v1650_v42 = vsub.f32 %v4399_v9, %v1493_v54  ;;  %v1651_v14 = vsub.f32 %v4414_v22, %v1493_v54  ;;  %6121 = vst [vmem:[#allocation81_spill] sm:$0xff] %v5178_v51 }
 0x207   : > { %2717 = vst.msk [vmem:[#allocation2 + $0x98] sm:$0xff] %vm2034_vm3, %v5178_v51 }
 0x208   : > { %v1714_v23 = vmul.f32 1.442695, %v1650_v42  ;;  %v1716_v20 = vmul.f32 1.442695, %v1651_v14 }
 0x20a   : > { %3560 = vpow2.f32 %v1714_v23 }
 0x20b   : > { %3562 = vpow2.f32 %v1716_v20  ;;  %v1334_v22 = vpop.xlane.xlu2 %1333 }
 0x20c   : > { %v5189_v27 = vmax.f32 %v5182_v21, %v1334_v22  ;;  %v3472_v21 = vld [vmem:[%s5237_s26 + $0x38] sm:$0xff] }
 0x20d   : > { %v1508_v56 = vpop.permute.xlu0 %1507  ;;  %2456 = vmatpush.bf16.msra.mxu0 %v3472_v21  ;;  %3481 = vmatpush.bf16.msra.mxu2 %v3472_v21  ;;  %v3477_v21 = vld [vmem:[%s5237_s26 + $0x60] sm:$0xff] }
 0x20e   : > { %v1656_v8 = vsub.f32 %v4471_v60, %v1508_v56  ;;  %v1657_v9 = vsub.f32 %v4475_v61, %v1508_v56  ;;  %6123 = vst [vmem:[#allocation83_spill] sm:$0xff] %v5189_v27  ;;  %v443_v60 = vld [vmem:[%s4054_s30 + $0xf8] sm:$0xff]  ;;  %v5198_v61 = vld [vmem:[#allocation2 + $0xc8] sm:$0xff] }
 0x20f   : > { %2720 = vst.msk [vmem:[#allocation2 + $0xb0] sm:$0xff] %vm2034_vm3, %v5189_v27 }
 0x210   : > { %v5186_v54 = vpop.eup %3560  ;;  %v1726_v42 = vmul.f32 1.442695, %v1656_v8  ;;  %v1728_v14 = vmul.f32 1.442695, %v1657_v9  ;;  %6124 = vst [vmem:[#allocation84_spill] sm:$0xff] %v5198_v61 }
 0x211   : > { %v5191_v23 = vpop.eup %3562 }
 0x212   : > { %3564 = vpow2.f32 %v1726_v42  ;;  %v1906_v20 = vadd.f32 %v5191_v23, %v5186_v54 }
 0x213   : > { %3566 = vpow2.f32 %v1728_v14  ;;  %v1343_v56 = vpop.xlane.xlu2 %1342  ;;  %v5211_v14 = vld [vmem:[#allocation2 + $0xe0] sm:$0xff] }
 0x214   : > { %1907 = vadd.xlane.f32.xlu0 %v1906_v20  ;;  %v5203_v9 = vmax.f32 %v5198_v61, %v1343_v56  ;;  %6126 = vst [vmem:[#allocation86_spill] sm:$0xff] %v5211_v14 }
 0x215   : > { %v5220_v56 = vpop.permute.xlu0 %1517 }
 0x216   : > { %602 = vperm.xlu1 %3558, %v443_v60   ;;  %6125 = vst [vmem:[#allocation85_spill] sm:$0xff] %v5203_v9 }
 0x217   : > { %2723 = vst.msk [vmem:[#allocation2 + $0xc8] sm:$0xff] %vm2034_vm3, %v5203_v9 }
 0x218   : > { %v5200_v8 = vpop.eup %3564 }
 0x219   : > { %v5205_v22 = vpop.eup %3566 }
 0x21a   : > { %v1915_v42 = vadd.f32 %v5205_v22, %v5200_v8 }
 0x21b   : > { %v1352_v20 = vpop.xlane.xlu2 %1351 }
 0x21c   : > { %1916 = vadd.xlane.f32.xlu0 %v1915_v42  ;;  %v5215_v60 = vmax.f32 %v5211_v14, %v1352_v20 }
 0x21d   : > { %v5224_v42 = vpop.permute.xlu0 %1532 }
 0x21e   : > { %1497 = vperm.xlu1 %3558, %v4954_v39   ;;  %6127 = vst [vmem:[#allocation87_spill] sm:$0xff] %v5215_v60  ;;  %v3475_v39 = vld [vmem:[%s5237_s26 + $0x50] sm:$0xff] }
 0x21f   : > { %2726 = vst.msk [vmem:[#allocation2 + $0xe0] sm:$0xff] %vm2034_vm3, %v5215_v60 }
 0x225   : > { %v5227_v61 = vpop.permute.xlu0 %1547 }
 0x226   : > { %1512 = vperm.xlu1 %3558, %v4988_v48   ;;  %v913_v48 = vunpack.c.3.s8 %v4815_v2 }
 0x22d   : > { %v5230_v20 = vpop.permute.xlu0 %1562 }
 0x22e   : > { %1527 = vperm.xlu1 %3558, %v5139_v24   ;;  %v5256_v24 = vld [vmem:[#allocation2 + $0xf0] sm:$0xff] }
 0x22f   : > { %6128 = vst [vmem:[#allocation88_spill] sm:$0xff] %v5256_v24 }
 0x235   : > { %v5239_v14 = vpop.permute.xlu0 %1577 }
 0x236   : > { %1542 = vperm.xlu1 %3558, %v5146_v59  }
 0x23d   : > { %v5247_v49 = vpop.permute.xlu0 %1592 }
 0x23e   : > { %1557 = vperm.xlu1 %3558, %v5156_v62   ;;  %v3478_v62 = vld [vmem:[%s5237_s26 + $0x68] sm:$0xff] }
 0x245   : > { %v5252_v59 = vpop.permute.xlu0 %1607 }
 0x246   : > { %1572 = vperm.xlu1 %3558, %v5169_v28   ;;  %v3479_v28 = vld [vmem:[%s5237_s26 + $0x70] sm:$0xff] }
 0x247   : > { %2546 = vmatpush.bf16.msra.mxu1 %v3479_v28  ;;  %3490 = vmatpush.bf16.msra.mxu3 %v3479_v28 }
 0x24b   : > { %2547 = vmatpush.bf16.msra.mxu1 %v3478_v62  ;;  %3491 = vmatpush.bf16.msra.mxu3 %v3478_v62  ;;  %v912_v62 = vunpack.c.3.s8 %v4806_v47 }
 0x24e   : > { %1587 = vperm.xlu1 %3558, %v5178_v51   ;;  %v3471_v51 = vld [vmem:[%s5237_s26 + $0x30] sm:$0xff] }
 0x24f   : > { %2457 = vmatpush.bf16.msra.mxu0 %v3471_v51  ;;  %3482 = vmatpush.bf16.msra.mxu2 %v3471_v51  ;;  %v3468_v51 = vld [vmem:[%s5237_s26 + $0x18] sm:$0xff] }
 0x250   : > { %2548 = vmatpush.bf16.msra.mxu1 %v3477_v21  ;;  %3492 = vmatpush.bf16.msra.mxu3 %v3477_v21  ;;  %v6130_v21 = vsub.f32 %v4914_v58, %v4929_v26  ;;  %v3473_v58 = vld [vmem:[%s5237_s26 + $0x40] sm:$0xff]  ;;  %v6131_v26 = vsub.f32 %v4945_v35, %v4959_v30 }
 0x256   : > { %1602 = vperm.xlu1 %3558, %v5189_v27   ;;  %v3470_v27 = vld [vmem:[%s5237_s26 + $0x28] sm:$0xff] }
 0x257   : > { %2458 = vmatpush.bf16.msra.mxu0 %v3470_v27  ;;  %3483 = vmatpush.bf16.msra.mxu2 %v3470_v27  ;;  %v5263_v27 = vpop.permute.xlu0 %1622 }
 0x258   : > { %6129 = vst [vmem:[#allocation89_spill] sm:$0xff] %v5263_v27  ;;  %v3474_v27 = vld [vmem:[%s5237_s26 + $0x48] sm:$0xff] }
 0x25b   : > { %2459 = vmatpush.bf16.msra.mxu0 %v3469_v10  ;;  %3484 = vmatpush.bf16.msra.mxu2 %v3469_v10  ;;  %v3467_v10 = vld [vmem:[%s5237_s26 + $0x10] sm:$0xff] }
 0x25e   : > { %1617 = vperm.xlu1 %3558, %v5203_v9   ;;  %v3476_v9 = vld [vmem:[%s5237_s26 + $0x58] sm:$0xff] }
 0x25f   : > { %2460 = vmatpush.bf16.msra.mxu0 %v3468_v51  ;;  %2549 = vmatpush.bf16.msra.mxu1 %v3476_v9  ;;  %v5276_v47 = vpop.permute.xlu0 %1637 }
 0x260   : > { %3485 = vmatpush.bf16.msra.mxu2 %v3468_v51  ;;  %3493 = vmatpush.bf16.msra.mxu3 %v3476_v9  ;;  %v976_v51 = vpack.c.b16 %v913_v48, %v912_v62  ;;  %v3465_v9 = vld [vmem:[%s5237_s26] sm:$0xff] }
 0x262   : > { %v977_v2 = vpack.c.b8 %v976_v51, %v976_v51 }
 0x263   : > { %2461 = vmatpush.bf16.msra.mxu0 %v3467_v10  ;;  %2550 = vmatpush.bf16.msra.mxu1 %v3475_v39 }
 0x264   : > { %3486 = vmatpush.bf16.msra.mxu2 %v3467_v10  ;;  %3494 = vmatpush.bf16.msra.mxu3 %v3475_v39  ;;  %v1842_v39 = vld [vmem:[#allocation3] sm:$0xff]  ;;  %vm1009_vm15 = vnez %v977_v2 }
 0x266   : > { %1632 = vperm.xlu1 %3558, %v5215_v60  }
 0x267   : > { %2551 = vmatpush.bf16.msra.mxu1 %v3474_v27 }
 0x268   : > { %3495 = vmatpush.bf16.msra.mxu3 %v3474_v27  ;;  %v1041_v27 = vsel %vm1009_vm15, 16843009, %v6040_v25 }
 0x269   : > { %v1104_v30 = vunpack.c.0.s8 %v1041_v27  ;;  %v1105_v35 = vunpack.c.1.s8 %v1041_v27 }
 0x26b   : > { %2552 = vmatpush.bf16.msra.mxu1 %v3473_v58  ;;  %vm1168_vm0 = vcmp.ne.s32.totalorder %v1104_v30, 0  ;;  %vm1169_vm1 = vcmp.ne.s32.totalorder %v1105_v35, 0  ;;  %v1660_v30 = vsub.f32 %v4343_v31, %v5220_v56 }
 0x26c   : > { %3496 = vmatpush.bf16.msra.mxu3 %v3473_v58  ;;  %v1845_v58 = vld [vmem:[#allocation3 + $0x18] sm:$0xff] }
 0x270   : > { %v1358_v28 = vpop.xlane.xlu1 %1357 }
 0x271   : > { %v5261_v60 = vmax.f32 %v5256_v24, %v1358_v28  ;;  %v1426_v28 = vmul.f32 1.442695, %v6130_v21  ;;  %v3466_v24 = vld [vmem:[%s5237_s26 + $0x8] sm:$0xff]  ;;  %v1432_v21 = vmul.f32 1.442695, %v6131_v26 }
 0x272   : > { %2462 = vmatpush.bf16.msra.mxu0 %v3466_v24  ;;  %3487 = vmatpush.bf16.msra.mxu2 %v3466_v24 }
 0x273   : > { %2728 = vst.msk [vmem:[#allocation2 + $0xf0] sm:$0xff] %vm2034_vm3, %v5261_v60  ;;  %3568 = vpow2.f32 %v1426_v28 }
 0x274   : > { %3570 = vpow2.f32 %v1432_v21 }
 0x276   : > { %2463 = vmatpush.bf16.msra.mxu0 %v3465_v9  ;;  %3488 = vmatpush.bf16.msra.mxu2 %v3465_v9 }
 0x279   : > { %v5283_v57 = vpop.eup %3568 }
 0x27a   : > { %v1874_v48 = vmul.f32 %v5283_v57, %v1842_v39  ;;  %v5288_v28 = vpop.eup %3570 }
 0x27b   : > { %v1877_v21 = vmul.f32 %v5288_v28, %v1845_v58 }
 0x287   : > { %v1908_v24 = vpop.xlane.xlu0 %1907 }
 0x288   : > { %v2002_v62 = vadd.f32 %v1908_v24, %v1874_v48  ;;  %v603_v10 = vpop.permute.xlu1 %602 }
 0x289   : > { %v672_v51 = vadd.f32 %v4254_v15, %v603_v10  ;;  %v673_v9 = vadd.f32 %v4256_v17, %v603_v10 }
 0x28a   : > { %2035 = vst.msk [vmem:[#allocation3] sm:$0xff] %vm2034_vm3, %v2002_v62 }
 0x28b   : > { %v736_v2 = vmul.f32 0.01, %v672_v51  ;;  %v737_v26 = vmul.f32 0.01, %v673_v9 }
 0x28d   : > { %v800_v25 = vmax.f32 %v672_v51, %v736_v2  ;;  %v801_v39 = vmax.f32 %v673_v9, %v737_v26  ;;  %v1661_v9 = vsub.f32 %v4347_v32, %v5220_v56  ;;  %v1734_v2 = vmul.f32 1.442695, %v1660_v30 }
 0x28f   : > { %v1917_v48 = vpop.xlane.xlu0 %1916  ;;  %v5293_v62 = vsel %vm1168_vm0, %v800_v25, -9e+15  ;;  %v5295_v27 = vsel %vm1169_vm1, %v801_v39, -9e+15  ;;  %v1736_v26 = vmul.f32 1.442695, %v1661_v9 }
 0x290   : > { %v2005_v24 = vadd.f32 %v1917_v48, %v1877_v21  ;;  %v1498_v15 = vpop.permute.xlu1 %1497  ;;  %v1359_v17 = vmax.f32 %v5293_v62, %v5295_v27 }
 0x291   : > { %v1652_v10 = vsub.f32 %v4479_v0, %v1498_v15  ;;  %v1653_v58 = vsub.f32 %v4485_v3, %v1498_v15 }
 0x292   : > { %2038 = vst.msk [vmem:[#allocation3 + $0x18] sm:$0xff] %vm2034_vm3, %v2005_v24  ;;  %1360 = vmax.xlane.f32.xlu2 %v1359_v17 }
 0x293   : > { %v1718_v35 = vmul.f32 1.442695, %v1652_v10  ;;  %v1720_v51 = vmul.f32 1.442695, %v1653_v58  ;;  %v1672_v10 = vsub.f32 %v4574_v45, %v5227_v61 }
 0x295   : > { %3572 = vpow2.f32 %v1718_v35  ;;  %v1758_v35 = vmul.f32 1.442695, %v1672_v10 }
 0x296   : > { %3574 = vpow2.f32 %v1720_v51 }
 0x297   : > { %3576 = vpow2.f32 %v1734_v2 }
 0x298   : > { %v1513_v21 = vpop.permute.xlu1 %1512  ;;  %3578 = vpow2.f32 %v1736_v26 }
 0x299   : > { %v1658_v25 = vsub.f32 %v4301_v6, %v1513_v21  ;;  %v1659_v0 = vsub.f32 %v4303_v7, %v1513_v21 }
 0x29b   : > { %v3573_v39 = vpop.eup %3572  ;;  %v1730_v3 = vmul.f32 1.442695, %v1658_v25  ;;  %v1732_v48 = vmul.f32 1.442695, %v1659_v0 }
 0x29c   : > { %v3575_v24 = vpop.eup %3574  ;;  %v2328_v31 = vpack.c.bf16 %v3573_v39, %v5186_v54 }
 0x29d   : > { %3580 = vpow2.f32 %v1730_v3  ;;  %v2329_v32 = vpack.c.bf16 %v3575_v24, %v5191_v23  ;;  %v5310_v56 = vadd.f32 %v3575_v24, %v3573_v39  ;;  %v5314_v6 = vpop.eup %3576  ;;  %v1673_v23 = vsub.f32 %v4578_v29, %v5227_v61 }
 0x29e   : > { %3582 = vpow2.f32 %v1732_v48  ;;  %2464 = vmatmul.bf16.vlgmr.msra.gmra.mxu0 %v2328_v31  ;;  %v5316_v7 = vpop.eup %3578  ;;  %v1685_v39 = vsub.f32 %v4709_v41, %v5239_v14 }
 0x29f   : > { %2553 = vmatmul.bf16.vlgmr.msra.gmra.mxu1 %v2329_v32  ;;  %v1760_v51 = vmul.f32 1.442695, %v1673_v23  ;;  %3584 = vpow2.f32 %v1758_v35 }
 0x2a0   : > { %v5312_v15 = vpop.permute.xlu1 %1527  ;;  %v1784_v31 = vmul.f32 1.442695, %v1685_v39 }
 0x2a1   : > { %3586 = vpow2.f32 %v1760_v51 }
 0x2a3   : > { %v5318_v17 = vpop.eup %3580 }
 0x2a4   : > { %v5322_v54 = vpop.eup %3582  ;;  %v2332_v58 = vpack.c.bf16 %v5314_v6, %v5318_v17 }
 0x2a5   : > { %v2333_v30 = vpack.c.bf16 %v5316_v7, %v5322_v54  ;;  %v5335_v61 = vpop.eup %3584 }
 0x2a7   : > { %v5337_v25 = vpop.eup %3586 }
 0x2a8   : > { %v1543_v9 = vpop.permute.xlu1 %1542 }
 0x2a9   : > { %v1670_v2 = vsub.f32 %v4864_v1, %v1543_v9  ;;  %v1671_v26 = vsub.f32 %v4866_v38, %v1543_v9  ;;  %v1684_v1 = vsub.f32 %v4704_v52, %v5239_v14 }
 0x2aa   : > { %1502 = vperm.xlu2 %3559, %v4922_v34  }
 0x2ab   : > { %v1754_v45 = vmul.f32 1.442695, %v1670_v2  ;;  %v1756_v21 = vmul.f32 1.442695, %v1671_v26  ;;  %v1782_v24 = vmul.f32 1.442695, %v1684_v1 }
 0x2ac   : > { %v5370_v26 = vld [vmem:[#allocation2 + $0xf8] sm:$0xff]  ;;  %v6151_v1 = vld [vmem:[#allocation18_spill] sm:$0xff] }
 0x2ad   : > { %3588 = vpow2.f32 %v1754_v45 }
 0x2ae   : > { %3590 = vpow2.f32 %v1756_v21 }
 0x2af   : > { %3592 = vpow2.f32 %v1782_v24 }
 0x2b0   : > { %v5333_v29 = vpop.permute.xlu1 %1557  ;;  %3594 = vpow2.f32 %v1784_v31 }
 0x2b2   : > { %1522 = vperm.xlu2 %3559, %v4980_v36  }
 0x2b3   : > { %v5340_v0 = vpop.eup %3588 }
 0x2b4   : > { %v5344_v38 = vpop.eup %3590  ;;  %v2338_v3 = vpack.c.bf16 %v5335_v61, %v5340_v0 }
 0x2b5   : > { %v5355_v41 = vpop.eup %3592 }
 0x2b6   : > { %v5357_v14 = vpop.eup %3594 }
 0x2b8   : > { %v1573_v32 = vpop.permute.xlu1 %1572 }
 0x2b9   : > { %v1682_v10 = vsub.f32 %v4895_v44, %v1573_v32  ;;  %v1683_v23 = vsub.f32 %v4897_v18, %v1573_v32 }
 0x2ba   : > { %1537 = vperm.xlu2 %3559, %v5008_v43  }
 0x2bb   : > { %v1778_v52 = vmul.f32 1.442695, %v1682_v10  ;;  %v1780_v35 = vmul.f32 1.442695, %v1683_v23 }
 0x2bd   : > { %3596 = vpow2.f32 %v1778_v52 }
 0x2be   : > { %3598 = vpow2.f32 %v1780_v35 }
 0x2c2   : > { %1552 = vperm.xlu2 %3559, %v5027_v19  }
 0x2c3   : > { %v3597_v51 = vpop.eup %3596 }
 0x2c4   : > { %v3599_v9 = vpop.eup %3598  ;;  %v2344_v44 = vpack.c.bf16 %v5355_v41, %v3597_v51 }
 0x2c5   : > { %v2345_v18 = vpack.c.bf16 %v5357_v14, %v3599_v9  ;;  %v5362_v2 = vadd.f32 %v3599_v9, %v3597_v51  ;;  %v1664_v51 = vsub.f32 %v4857_v40, %v5312_v15 }
 0x2c6   : > { %2504 = vmatmul.bf16.vlgmr.msra.gmra.mxu2 %v2344_v44  ;;  %v1665_v44 = vsub.f32 %v4859_v16, %v5312_v15 }
 0x2c7   : > { %2593 = vmatmul.bf16.vlgmr.msra.gmra.mxu3 %v2345_v18 }
 0x2ca   : > { %1567 = vperm.xlu2 %3559, %v5044_v37  }
 0x2d2   : > { %1582 = vperm.xlu2 %3559, %v5061_v63  }
 0x2da   : > { %1597 = vperm.xlu2 %3559, %v5078_v46  }
 0x2e2   : > { %1612 = vperm.xlu2 %3559, %v5098_v33  }
 0x2ea   : > { %1627 = vperm.xlu2 %3559, %v5115_v5  }
 0x2f2   : > { %1642 = vperm.xlu2 %3559, %v5261_v60  }
 0x305   : > { %v1361_v45 = vpop.xlane.xlu2 %1360 }
 0x306   : > { %v5373_v21 = vmax.f32 %v5370_v26, %v1361_v45 }
 0x308   : > { %2729 = vst.msk [vmem:[#allocation2 + $0xf8] sm:$0xff] %vm2034_vm3, %v5373_v21  ;;  %1647 = vperm.xlu1 %3558, %v5373_v21  }
 0x30d   : > { %v1503_v39 = vpop.permute.xlu2 %1502 }
 0x30e   : > { %v1654_v24 = vsub.f32 %v4403_v11, %v1503_v39  ;;  %v1655_v31 = vsub.f32 %v4407_v12, %v1503_v39  ;;  %v1744_v39 = vmul.f32 1.442695, %v1665_v44 }
 0x310   : > { %v1722_v32 = vmul.f32 1.442695, %v1654_v24  ;;  %v1724_v10 = vmul.f32 1.442695, %v1655_v31  ;;  %v6132_v31 = vld [vmem:[#allocation8_spill] sm:$0xff] }
 0x312   : > { %3600 = vpow2.f32 %v1722_v32 }
 0x313   : > { %3602 = vpow2.f32 %v1724_v10  ;;  %v6133_v10 = vld [vmem:[#allocation9_spill] sm:$0xff] }
 0x315   : > { %v1523_v23 = vpop.permute.xlu2 %1522 }
 0x316   : > { %v1662_v52 = vsub.f32 %v4526_v13, %v1523_v23  ;;  %v1663_v35 = vsub.f32 %v4530_v50, %v1523_v23  ;;  %v1742_v50 = vmul.f32 1.442695, %v1664_v51 }
 0x318   : > { %v5386_v9 = vpop.eup %3600  ;;  %v1738_v11 = vmul.f32 1.442695, %v1662_v52  ;;  %v1740_v18 = vmul.f32 1.442695, %v1663_v35 }
 0x319   : > { %v5390_v12 = vpop.eup %3602  ;;  %v2330_v45 = vpack.c.bf16 %v5200_v8, %v5386_v9 }
 0x31a   : > { %3604 = vpow2.f32 %v1738_v11  ;;  %v2331_v13 = vpack.c.bf16 %v5205_v22, %v5390_v12  ;;  %v1678_v11 = vsub.f32 %v4653_v55, %v5230_v20  ;;  %v6137_v55 = vld [vmem:[#allocation12_spill] sm:$0xff] }
 0x31b   : > { %3606 = vpow2.f32 %v1740_v18  ;;  %1910 = vadd.xlane.f32.xlu2 %v5310_v56  ;;  %v2465_v40 = vpop.f32.mrf.mxu0  ;;  %2469 = vmatmul.bf16.gmra.mxu0 %v2330_v45  ;;  %v1918_v56 = vadd.f32 %v5322_v54, %v5318_v17  ;;  %v6141_v17 = vld [vmem:[#allocation7_spill] sm:$0xff]  ;;  %v6142_v54 = vld [vmem:[#allocation33_spill] sm:$0xff] }
 0x31c   : > { %v2554_v24 = vpop.f32.mrf.mxu1  ;;  %2558 = vmatmul.bf16.gmra.mxu1 %v2331_v13  ;;  %3608 = vpow2.f32 %v1742_v50  ;;  %v1676_v13 = vsub.f32 %v4879_v4, %v5333_v29  ;;  %v6134_v50 = vld [vmem:[#allocation10_spill] sm:$0xff] }
 0x31d   : > { %v5397_v16 = vadd.f32 %v2554_v24, %v2465_v40  ;;  %v1538_v15 = vpop.permute.xlu2 %1537  ;;  %3610 = vpow2.f32 %v1744_v39  ;;  %v6135_v39 = vld [vmem:[#allocation11_spill] sm:$0xff] }
 0x31e   : > { %v1668_v32 = vsub.f32 %v6132_v31, %v1538_v15  ;;  %v1669_v8 = vsub.f32 %v6133_v10, %v1538_v15  ;;  %v6136_v15 = vld [vmem:[#allocation31_spill] sm:$0xff] }
 0x31f   : > { %v1677_v31 = vsub.f32 %v6136_v15, %v5333_v29  ;;  %v1588_v29 = vpop.permute.xlu1 %1587  ;;  %v6140_v15 = vld [vmem:[#allocation14_spill] sm:$0xff] }
 0x320   : > { %v5401_v23 = vpop.eup %3604  ;;  %v1750_v22 = vmul.f32 1.442695, %v1668_v32  ;;  %v1752_v52 = vmul.f32 1.442695, %v1669_v8 }
 0x321   : > { %v5403_v35 = vpop.eup %3606 }
 0x322   : > { %3612 = vpow2.f32 %v1750_v22  ;;  %v1924_v51 = vadd.f32 %v5403_v35, %v5401_v23  ;;  %v5409_v44 = vpop.eup %3608 }
 0x323   : > { %3614 = vpow2.f32 %v1752_v52  ;;  %1919 = vadd.xlane.f32.xlu2 %v1918_v56  ;;  %v5413_v45 = vpop.eup %3610  ;;  %v1679_v52 = vsub.f32 %v6137_v55, %v5230_v20  ;;  %v1770_v56 = vmul.f32 1.442695, %v1678_v11 }
 0x324   : > { %1925 = vadd.xlane.f32.xlu0 %v1924_v51  ;;  %v1927_v4 = vadd.f32 %v5413_v45, %v5409_v44  ;;  %v1766_v51 = vmul.f32 1.442695, %v1676_v13  ;;  %v6138_v13 = vld [vmem:[#allocation6_spill] sm:$0xff] }
 0x325   : > { %v1553_v18 = vpop.permute.xlu2 %1552  ;;  %v1772_v20 = vmul.f32 1.442695, %v1679_v52  ;;  %v1912_v52 = vadd.f32 %v5390_v12, %v5386_v9 }
 0x326   : > { %v1674_v40 = vsub.f32 %v6134_v50, %v1553_v18  ;;  %v1675_v24 = vsub.f32 %v6135_v39, %v1553_v18  ;;  %v1768_v50 = vmul.f32 1.442695, %v1677_v31  ;;  %v6139_v39 = vld [vmem:[#allocation13_spill] sm:$0xff] }
 0x328   : > { %v5421_v32 = vpop.eup %3612  ;;  %v1762_v10 = vmul.f32 1.442695, %v1674_v40  ;;  %v1764_v8 = vmul.f32 1.442695, %v1675_v24  ;;  %v1666_v40 = vsub.f32 %v6138_v13, %v5224_v42 }
 0x329   : > { %v5423_v22 = vpop.eup %3614 }
 0x32a   : > { %3616 = vpow2.f32 %v1762_v10  ;;  %v1933_v18 = vadd.f32 %v5423_v22, %v5421_v32 }
 0x32b   : > { %3618 = vpow2.f32 %v1764_v8  ;;  %1928 = vadd.xlane.f32.xlu2 %v1927_v4  ;;  %2474 = vmatmul.bf16.gmra.mxu0 %v2332_v58  ;;  %v1667_v58 = vsub.f32 %v6141_v17, %v5224_v42  ;;  %v6143_v4 = vld [vmem:[#allocation34_spill] sm:$0xff] }
 0x32c   : > { %1934 = vadd.xlane.f32.xlu0 %v1933_v18  ;;  %2563 = vmatmul.bf16.gmra.mxu1 %v2333_v30  ;;  %3620 = vpow2.f32 %v1770_v56  ;;  %v1688_v30 = vsub.f32 %v6142_v54, %v1588_v29  ;;  %v1936_v18 = vadd.f32 %v5344_v38, %v5340_v0 }
 0x32d   : > { %v1568_v11 = vpop.permute.xlu2 %1567  ;;  %3622 = vpow2.f32 %v1766_v51  ;;  %v1689_v51 = vsub.f32 %v6143_v4, %v1588_v29  ;;  %v1748_v13 = vmul.f32 1.442695, %v1667_v58  ;;  %v1603_v58 = vpop.permute.xlu1 %1602 }
 0x32e   : > { %v1680_v24 = vsub.f32 %v6139_v39, %v1568_v11  ;;  %v1681_v31 = vsub.f32 %v6140_v15, %v1568_v11  ;;  %3624 = vpow2.f32 %v1768_v50  ;;  %v1746_v11 = vmul.f32 1.442695, %v1666_v40  ;;  %v6144_v40 = vld [vmem:[#allocation15_spill] sm:$0xff]  ;;  %v6145_v15 = vld [vmem:[#allocation16_spill] sm:$0xff] }
 0x32f   : > { %3626 = vpow2.f32 %v1772_v20  ;;  %v1790_v12 = vmul.f32 1.442695, %v1688_v30  ;;  %v1792_v29 = vmul.f32 1.442695, %v1689_v51  ;;  %v1921_v30 = vadd.f32 %v5316_v7, %v5314_v6 }
 0x330   : > { %v5443_v10 = vpop.eup %3616  ;;  %v1774_v8 = vmul.f32 1.442695, %v1680_v24  ;;  %v1776_v55 = vmul.f32 1.442695, %v1681_v31  ;;  %v2334_v51 = vpack.c.bf16 %v5409_v44, %v5401_v23  ;;  %v2335_v6 = vpack.c.bf16 %v5413_v45, %v5403_v35  ;;  %v6149_v45 = vld [vmem:[#allocation36_spill] sm:$0xff] }
 0x331   : > { %v5448_v56 = vpop.eup %3618  ;;  %v1691_v7 = vsub.f32 %v6151_v1, %v5247_v49  ;;  %v6153_v1 = vld [vmem:[#allocation24_spill] sm:$0xff] }
 0x332   : > { %3628 = vpow2.f32 %v1774_v8  ;;  %1913 = vadd.xlane.f32.xlu1 %v1912_v52  ;;  %v1942_v42 = vadd.f32 %v5448_v56, %v5443_v10  ;;  %v5455_v50 = vpop.eup %3620 }
 0x333   : > { %3630 = vpow2.f32 %v1776_v55  ;;  %1937 = vadd.xlane.f32.xlu2 %v1936_v18  ;;  %v5457_v9 = vpop.eup %3622 }
 0x334   : > { %1943 = vadd.xlane.f32.xlu0 %v1942_v42  ;;  %v5459_v20 = vpop.eup %3624  ;;  %3632 = vpow2.f32 %v1746_v11 }
 0x335   : > { %v1583_v39 = vpop.permute.xlu2 %1582  ;;  %v5463_v17 = vpop.eup %3626  ;;  %3634 = vpow2.f32 %v1748_v13  ;;  %v1945_v4 = vadd.f32 %v5459_v20, %v5457_v9 }
 0x336   : > { %v1686_v24 = vsub.f32 %v6144_v40, %v1583_v39  ;;  %v1687_v31 = vsub.f32 %v6145_v15, %v1583_v39  ;;  %3636 = vpow2.f32 %v1790_v12  ;;  %v6146_v12 = vld [vmem:[#allocation17_spill] sm:$0xff]  ;;  %v6147_v39 = vld [vmem:[#allocation19_spill] sm:$0xff] }
 0x337   : > { %3638 = vpow2.f32 %v1792_v29  ;;  %v1690_v29 = vsub.f32 %v6146_v12, %v5247_v49  ;;  %v1618_v12 = vpop.permute.xlu1 %1617 }
 0x338   : > { %v5465_v54 = vpop.eup %3628  ;;  %v1786_v8 = vmul.f32 1.442695, %v1686_v24  ;;  %v1788_v55 = vmul.f32 1.442695, %v1687_v31  ;;  %v6148_v24 = vld [vmem:[#allocation20_spill] sm:$0xff]  ;;  %v1694_v31 = vsub.f32 %v6149_v45, %v1603_v58  ;;  %v6152_v45 = vld [vmem:[#allocation23_spill] sm:$0xff] }
 0x339   : > { %v5469_v52 = vpop.eup %3630  ;;  %v1794_v48 = vmul.f32 1.442695, %v1690_v29 }
 0x33a   : > { %3640 = vpow2.f32 %v1786_v8  ;;  %1922 = vadd.xlane.f32.xlu1 %v1921_v30  ;;  %v1951_v11 = vadd.f32 %v5469_v52, %v5465_v54  ;;  %v3633_v42 = vpop.eup %3632 }
 0x33b   : > { %3642 = vpow2.f32 %v1788_v55  ;;  %1946 = vadd.xlane.f32.xlu2 %v1945_v4  ;;  %2479 = vmatmul.bf16.gmra.mxu0 %v2334_v51  ;;  %v3635_v23 = vpop.eup %3634  ;;  %v6150_v55 = vld [vmem:[#allocation37_spill] sm:$0xff] }
 0x33c   : > { %1952 = vadd.xlane.f32.xlu0 %v1951_v11  ;;  %2568 = vmatmul.bf16.gmra.mxu1 %v2335_v6  ;;  %v3637_v13 = vpop.eup %3636  ;;  %v1695_v30 = vsub.f32 %v6150_v55, %v1603_v58  ;;  %v1930_v11 = vadd.f32 %v3635_v23, %v3633_v42  ;;  %v6154_v55 = vld [vmem:[#allocation41_spill] sm:$0xff] }
 0x33d   : > { %v1598_v44 = vpop.permute.xlu2 %1597  ;;  %v3639_v35 = vpop.eup %3638 }
 0x33e   : > { %v1692_v40 = vsub.f32 %v6147_v39, %v1598_v44  ;;  %v1693_v15 = vsub.f32 %v6148_v24, %v1598_v44  ;;  %v1802_v24 = vmul.f32 1.442695, %v1694_v31  ;;  %v1804_v58 = vmul.f32 1.442695, %v1695_v30 }
 0x33f   : > { %v1939_v31 = vadd.f32 %v5337_v25, %v5335_v61 }
 0x340   : > { %v3641_v8 = vpop.eup %3640  ;;  %v1798_v4 = vmul.f32 1.442695, %v1692_v40  ;;  %v1800_v51 = vmul.f32 1.442695, %v1693_v15  ;;  %v1796_v40 = vmul.f32 1.442695, %v1691_v7 }
 0x341   : > { %v3643_v6 = vpop.eup %3642  ;;  %v2346_v18 = vpack.c.bf16 %v3637_v13, %v3641_v8 }
 0x342   : > { %3644 = vpow2.f32 %v1798_v4  ;;  %1931 = vadd.xlane.f32.xlu1 %v1930_v11  ;;  %v1960_v39 = vadd.f32 %v3643_v6, %v3641_v8  ;;  %v2347_v44 = vpack.c.bf16 %v3639_v35, %v3643_v6  ;;  %v1700_v4 = vsub.f32 %v6154_v55, %v1618_v12 }
 0x343   : > { %3646 = vpow2.f32 %v1800_v51  ;;  %1955 = vadd.xlane.f32.xlu2 %v5362_v2  ;;  %2509 = vmatmul.bf16.gmra.mxu2 %v2346_v18  ;;  %v6155_v2 = vld [vmem:[#allocation42_spill] sm:$0xff]  ;;  %v2336_v6 = vpack.c.bf16 %v5421_v32, %v3633_v42 }
 0x344   : > { %1961 = vadd.xlane.f32.xlu0 %v1960_v39  ;;  %2598 = vmatmul.bf16.gmra.mxu3 %v2347_v44  ;;  %3648 = vpow2.f32 %v1794_v48  ;;  %v1701_v18 = vsub.f32 %v6155_v2, %v1618_v12  ;;  %v1963_v48 = vadd.f32 %v3639_v35, %v3637_v13  ;;  %v6156_v35 = vld [vmem:[#allocation21_spill] sm:$0xff]  ;;  %v1948_v2 = vadd.f32 %v5463_v17, %v5455_v50 }
 0x345   : > { %v1613_v15 = vpop.permute.xlu2 %1612  ;;  %3650 = vpow2.f32 %v1802_v24  ;;  %v2337_v24 = vpack.c.bf16 %v5423_v22, %v3635_v23  ;;  %v1696_v22 = vsub.f32 %v6156_v35, %v5252_v59  ;;  %v6157_v23 = vld [vmem:[#allocation27_spill] sm:$0xff] }
 0x346   : > { %v1698_v49 = vsub.f32 %v6152_v45, %v1613_v15  ;;  %v1699_v29 = vsub.f32 %v6153_v1, %v1613_v15  ;;  %3652 = vpow2.f32 %v1804_v58  ;;  %v1814_v15 = vmul.f32 1.442695, %v1700_v4  ;;  %v6158_v1 = vld [vmem:[#allocation28_spill] sm:$0xff] }
 0x347   : > { %3654 = vpow2.f32 %v1796_v40  ;;  %v1816_v58 = vmul.f32 1.442695, %v1701_v18  ;;  %v1633_v40 = vpop.permute.xlu1 %1632  ;;  %v6159_v4 = vld [vmem:[#allocation48_spill] sm:$0xff] }
 0x348   : > { %v3645_v8 = vpop.eup %3644  ;;  %v1810_v30 = vmul.f32 1.442695, %v1698_v49  ;;  %v1812_v51 = vmul.f32 1.442695, %v1699_v29 }
 0x349   : > { %v3647_v11 = vpop.eup %3646  ;;  %v2505_v7 = vpop.f32.mrf.mxu2 }
 0x34a   : > { %3656 = vpow2.f32 %v1810_v30  ;;  %v2594_v39 = vpop.f32.mrf.mxu3  ;;  %1940 = vadd.xlane.f32.xlu1 %v1939_v31  ;;  %v1969_v44 = vadd.f32 %v3647_v11, %v3645_v8  ;;  %v5502_v12 = vpop.eup %3648  ;;  %v1706_v31 = vsub.f32 %v6159_v4, %v1633_v40  ;;  %v6160_v30 = vld [vmem:[#allocation49_spill] sm:$0xff] }
 0x34b   : > { %3658 = vpow2.f32 %v1812_v51  ;;  %v5500_v45 = vadd.f32 %v2594_v39, %v2505_v7  ;;  %1964 = vadd.xlane.f32.xlu2 %v1963_v48  ;;  %2484 = vmatmul.bf16.gmra.mxu0 %v2336_v6  ;;  %v5504_v13 = vpop.eup %3650  ;;  %v1707_v51 = vsub.f32 %v6160_v30, %v1633_v40  ;;  %v6161_v39 = vld [vmem:[#allocation22_spill] sm:$0xff]  ;;  %v1957_v30 = vadd.f32 %v5357_v14, %v5355_v41 }
 0x34c   : > { %1970 = vadd.xlane.f32.xlu0 %v1969_v44  ;;  %2573 = vmatmul.bf16.gmra.mxu1 %v2337_v24  ;;  %v5506_v42 = vpop.eup %3652  ;;  %3660 = vpow2.f32 %v1814_v15  ;;  %v1697_v44 = vsub.f32 %v6161_v39, %v5252_v59  ;;  %v2348_v15 = vpack.c.bf16 %v3645_v8, %v5502_v12  ;;  %v1826_v40 = vmul.f32 1.442695, %v1706_v31 }
 0x34d   : > { %v1628_v32 = vpop.permute.xlu2 %1627  ;;  %v3655_v55 = vpop.eup %3654  ;;  %3662 = vpow2.f32 %v1816_v58  ;;  %v1972_v24 = vadd.f32 %v5506_v42, %v5504_v13  ;;  %v6163_v41 = vpack.c.bf16 %v5337_v25, %v5344_v38 }
 0x34e   : > { %v1704_v49 = vsub.f32 %v6157_v23, %v1628_v32  ;;  %v1705_v29 = vsub.f32 %v6158_v1, %v1628_v32  ;;  %v1806_v32 = vmul.f32 1.442695, %v1696_v22  ;;  %v2349_v35 = vpack.c.bf16 %v3647_v11, %v3655_v55  ;;  %v6162_v22 = vld [vmem:[#allocation77_spill] sm:$0xff] }
 0x34f   : > { %v1828_v23 = vmul.f32 1.442695, %v1707_v51  ;;  %v1966_v61 = vadd.f32 %v3655_v55, %v5502_v12  ;;  %v6167_v12 = vld [vmem:[#allocation29_spill] sm:$0xff] }
 0x350   : > { %v5515_v18 = vpop.eup %3656  ;;  %v1822_v7 = vmul.f32 1.442695, %v1704_v49  ;;  %v1824_v48 = vmul.f32 1.442695, %v1705_v29  ;;  %v1808_v49 = vmul.f32 1.442695, %v1697_v44  ;;  %v1708_v55 = vsub.f32 %v6167_v12, %v5276_v47 }
 0x351   : > { %v5518_v6 = vpop.eup %3658  ;;  %v6164_v44 = vld [vmem:[#allocation89_spill] sm:$0xff] }
 0x352   : > { %3664 = vpow2.f32 %v1822_v7  ;;  %1949 = vadd.xlane.f32.xlu1 %v1948_v2  ;;  %v1978_v58 = vadd.f32 %v5518_v6, %v5515_v18  ;;  %v5527_v59 = vpop.eup %3660 }
 0x353   : > { %3666 = vpow2.f32 %v1824_v48  ;;  %1973 = vadd.xlane.f32.xlu2 %v1972_v24  ;;  %2514 = vmatmul.bf16.gmra.mxu2 %v2348_v15  ;;  %v5529_v29 = vpop.eup %3662  ;;  %v6165_v24 = vld [vmem:[#allocation25_spill] sm:$0xff] }
 0x354   : > { %1979 = vadd.xlane.f32.xlu0 %v1978_v58  ;;  %2603 = vmatmul.bf16.gmra.mxu3 %v2349_v35  ;;  %3668 = vpow2.f32 %v1806_v32  ;;  %v1981_v7 = vadd.f32 %v5529_v29, %v5527_v59  ;;  %v1702_v15 = vsub.f32 %v6165_v24, %v6164_v44  ;;  %v6166_v58 = vld [vmem:[#allocation26_spill] sm:$0xff] }
 0x355   : > { %v1643_v1 = vpop.permute.xlu2 %1642  ;;  %3670 = vpow2.f32 %v1826_v40  ;;  %v1703_v35 = vsub.f32 %v6166_v58, %v6164_v44 }
 0x356   : > { %v1710_v8 = vsub.f32 %v5160_v53, %v1643_v1  ;;  %v1711_v4 = vsub.f32 %v6162_v22, %v1643_v1  ;;  %3672 = vpow2.f32 %v1828_v23 }
 0x357   : > { %3674 = vpow2.f32 %v1808_v49  ;;  %v1820_v1 = vmul.f32 1.442695, %v1703_v35 }
 0x358   : > { %v5533_v11 = vpop.eup %3664  ;;  %v1834_v31 = vmul.f32 1.442695, %v1710_v8  ;;  %v1836_v2 = vmul.f32 1.442695, %v1711_v4  ;;  %v6168_v8 = vld [vmem:[#allocation30_spill] sm:$0xff] }
 0x359   : > { %v5537_v51 = vpop.eup %3666  ;;  %v6169_v4 = vld [vmem:[#allocation38_spill] sm:$0xff] }
 0x35a   : > { %3676 = vpow2.f32 %v1834_v31  ;;  %1958 = vadd.xlane.f32.xlu1 %v1957_v30  ;;  %v1987_v53 = vadd.f32 %v5537_v51, %v5533_v11  ;;  %v3669_v48 = vpop.eup %3668  ;;  %v6170_v31 = vld [vmem:[#allocation35_spill] sm:$0xff]  ;;  %v1830_v30 = vmul.f32 1.442695, %v1708_v55  ;;  %v6178_v55 = vld [vmem:[#allocation72_spill] sm:$0xff] }
 0x35b   : > { %3678 = vpow2.f32 %v1836_v2  ;;  %1982 = vadd.xlane.f32.xlu2 %v1981_v7  ;;  %2489 = vmatmul.bf16.gmra.mxu0 %v2338_v3  ;;  %v5549_v14 = vpop.eup %3670  ;;  %v2350_v38 = vpack.c.bf16 %v3669_v48, %v5504_v13  ;;  %v1818_v3 = vmul.f32 1.442695, %v1702_v15  ;;  %v1709_v13 = vsub.f32 %v6168_v8, %v5276_v47  ;;  %v6179_v8 = vld [vmem:[#allocation71_spill] sm:$0xff] }
 0x35c   : > { %1988 = vadd.xlane.f32.xlu0 %v1987_v53  ;;  %2578 = vmatmul.bf16.gmra.mxu1 %v6163_v41  ;;  %v5551_v39 = vpop.eup %3672  ;;  %v1395_v2 = vsub.f32 %v6170_v31, %v6169_v4  ;;  %v2341_v7 = vpack.c.bf16 %v5459_v20, %v5448_v56 }
 0x35d   : > { %v3675_v32 = vpop.eup %3674  ;;  %v1990_v25 = vadd.f32 %v5551_v39, %v5549_v14  ;;  %3680 = vpow2.f32 %v1818_v3  ;;  %v1832_v53 = vmul.f32 1.442695, %v1709_v13  ;;  %v6176_v3 = vld [vmem:[#allocation43_spill] sm:$0xff]  ;;  %v1401_v13 = vsub.f32 %v6179_v8, %v6178_v55 }
 0x35e   : > { %v2351_v49 = vpack.c.bf16 %v3675_v32, %v5506_v42  ;;  %3682 = vpow2.f32 %v1820_v1  ;;  %v1975_v22 = vadd.f32 %v3675_v32, %v3669_v48  ;;  %v2340_v42 = vpack.c.bf16 %v5457_v9, %v5443_v10  ;;  %v6171_v32 = vld [vmem:[#allocation39_spill] sm:$0xff] }
 0x35f   : > { %v1428_v24 = vmul.f32 1.442695, %v1395_v2  ;;  %3684 = vpow2.f32 %v1830_v30  ;;  %v2352_v48 = vpack.c.bf16 %v5527_v59, %v5515_v18  ;;  %v2353_v10 = vpack.c.bf16 %v5529_v29, %v5518_v6 }
 0x360   : > { %v5557_v40 = vpop.eup %3676  ;;  %3686 = vpow2.f32 %v1832_v53  ;;  %v1400_v58 = vsub.f32 %v6171_v32, %v4980_v36  ;;  %v6172_v59 = vpack.c.bf16 %v5465_v54, %v5455_v50  ;;  %v6173_v6 = vpack.c.bf16 %v5469_v52, %v5463_v17  ;;  %v6174_v36 = vld [vmem:[#allocation46_spill] sm:$0xff]  ;;  %v6175_v54 = vld [vmem:[#allocation45_spill] sm:$0xff] }
 0x361   : > { %v5560_v0 = vpop.eup %3678  ;;  %3688 = vpow2.f32 %v1428_v24  ;;  %v1398_v17 = vsub.f32 %v6176_v3, %v6175_v54  ;;  %v1440_v30 = vmul.f32 1.442695, %v1401_v13  ;;  %v6180_v53 = vld [vmem:[#allocation54_spill] sm:$0xff]  ;;  %v6185_v54 = vld [vmem:[#allocation76_spill] sm:$0xff]  ;;  %v6186_v3 = vld [vmem:[#allocation75_spill] sm:$0xff] }
 0x362   : > { %1967 = vadd.xlane.f32.xlu1 %v1966_v61  ;;  %v1996_v23 = vadd.f32 %v5560_v0, %v5557_v40  ;;  %v1438_v29 = vmul.f32 1.442695, %v1400_v58  ;;  %v6182_v32 = vld [vmem:[#allocation74_spill] sm:$0xff] }
 0x363   : > { %1991 = vadd.xlane.f32.xlu2 %v1990_v25  ;;  %2519 = vmatmul.bf16.gmra.mxu2 %v2350_v38  ;;  %v3681_v41 = vpop.eup %3680  ;;  %v1434_v12 = vmul.f32 1.442695, %v1398_v17  ;;  %v1407_v17 = vsub.f32 %v6186_v3, %v6185_v54  ;;  %v1855_v3 = vld [vmem:[#allocation3 + $0x68] sm:$0xff] }
 0x364   : > { %1997 = vadd.xlane.f32.xlu0 %v1996_v23  ;;  %2608 = vmatmul.bf16.gmra.mxu3 %v2351_v49  ;;  %v3683_v44 = vpop.eup %3682 }
 0x365   : > { %v1984_v47 = vadd.f32 %v3683_v44, %v3681_v41  ;;  %v3685_v9 = vpop.eup %3684  ;;  %v2355_v50 = vpack.c.bf16 %v5537_v51, %v3683_v44  ;;  %v1843_v51 = vld [vmem:[#allocation3 + $0x8] sm:$0xff] }
 0x366   : > { %v3687_v56 = vpop.eup %3686  ;;  %v2356_v44 = vpack.c.bf16 %v3685_v9, %v5549_v14 }
 0x367   : > { %v3689_v20 = vpop.eup %3688  ;;  %v1993_v15 = vadd.f32 %v3687_v56, %v3685_v9 }
 0x368   : > { %v1875_v4 = vmul.f32 %v3689_v20, %v1843_v51 }
 0x36a   : > { %1976 = vadd.xlane.f32.xlu1 %v1975_v22 }
 0x36b   : > { %2494 = vmatmul.bf16.gmra.mxu0 %v2340_v42 }
 0x36c   : > { %2583 = vmatmul.bf16.gmra.mxu1 %v2341_v7  ;;  %v5609_v7 = vpop.f32.mrf.mxu0 }
 0x372   : > { %1985 = vadd.xlane.f32.xlu1 %v1984_v47  ;;  %v6181_v47 = vld [vmem:[#allocation32_spill] sm:$0xff] }
 0x373   : > { %2524 = vmatmul.bf16.gmra.mxu2 %v2352_v48  ;;  %v1396_v48 = vsub.f32 %v6181_v47, %v4922_v34 }
 0x374   : > { %2613 = vmatmul.bf16.gmra.mxu3 %v2353_v10  ;;  %v2357_v10 = vpack.c.bf16 %v3687_v56, %v5551_v39 }
 0x378   : > { %2143 = vperm.xlu0 %3557, %v3689_v20   ;;  %v1846_v20 = vld [vmem:[#allocation3 + $0x20] sm:$0xff] }
 0x37a   : > { %v1648_v35 = vpop.permute.xlu1 %1647  ;;  %1994 = vadd.xlane.f32.xlu1 %v1993_v15  ;;  %v1848_v15 = vld [vmem:[#allocation3 + $0x30] sm:$0xff] }
 0x37b   : > { %v1712_v61 = vsub.f32 %v5293_v62, %v1648_v35  ;;  %v1713_v18 = vsub.f32 %v5295_v27, %v1648_v35  ;;  %2499 = vmatmul.bf16.gmra.mxu0 %v6172_v59  ;;  %v1403_v62 = vsub.f32 %v6174_v36, %v5008_v43  ;;  %v2354_v27 = vpack.c.bf16 %v5533_v11, %v3681_v41  ;;  %v6177_v43 = vld [vmem:[#allocation51_spill] sm:$0xff] }
 0x37c   : > { %2588 = vmatmul.bf16.gmra.mxu1 %v6173_v6  ;;  %v1406_v11 = vsub.f32 %v6177_v43, %v5027_v19  ;;  %v1409_v41 = vsub.f32 %v6180_v53, %v5044_v37  ;;  %v5613_v19 = vpop.f32.mrf.mxu1  ;;  %v6183_v37 = vld [vmem:[#allocation73_spill] sm:$0xff] }
 0x37d   : > { %v1838_v25 = vmul.f32 1.442695, %v1712_v61  ;;  %v1840_v38 = vmul.f32 1.442695, %v1713_v18  ;;  %v1444_v23 = vmul.f32 1.442695, %v1403_v62  ;;  %v1404_v58 = vsub.f32 %v6183_v37, %v6182_v32 }
 0x37e   : > { %v1450_v22 = vmul.f32 1.442695, %v1406_v11  ;;  %v1456_v35 = vmul.f32 1.442695, %v1409_v41  ;;  %v1430_v18 = vmul.f32 1.442695, %v1396_v48 }
 0x37f   : > { %3690 = vpow2.f32 %v1838_v25 }
 0x380   : > { %3692 = vpow2.f32 %v1840_v38  ;;  %2153 = vperm.xlu0 %3557, %v5288_v28  }
 0x381   : > { %3694 = vpow2.f32 %v1438_v29  ;;  %v1446_v29 = vmul.f32 1.442695, %v1404_v58 }
 0x382   : > { %3696 = vpow2.f32 %v1444_v23 }
 0x383   : > { %2529 = vmatmul.bf16.gmra.mxu2 %v2354_v27  ;;  %3698 = vpow2.f32 %v1434_v12  ;;  %v1849_v27 = vld [vmem:[#allocation3 + $0x38] sm:$0xff] }
 0x384   : > { %2618 = vmatmul.bf16.gmra.mxu3 %v2355_v50  ;;  %3700 = vpow2.f32 %v1450_v22  ;;  %v1851_v50 = vld [vmem:[#allocation3 + $0x48] sm:$0xff] }
 0x385   : > { %v5599_v52 = vpop.eup %3690  ;;  %3702 = vpow2.f32 %v1440_v30  ;;  %v6190_v30 = vld [vmem:[#allocation60_spill] sm:$0xff] }
 0x386   : > { %v5601_v49 = vpop.eup %3692  ;;  %3704 = vpow2.f32 %v1456_v35  ;;  %v1415_v53 = vsub.f32 %v6190_v30, %v5078_v46  ;;  %v1854_v46 = vld [vmem:[#allocation3 + $0x60] sm:$0xff]  ;;  %v6193_v35 = vld [vmem:[#allocation47_spill] sm:$0xff] }
 0x387   : > { %v3695_v1 = vpop.eup %3694  ;;  %v1999_v28 = vadd.f32 %v5601_v49, %v5599_v52  ;;  %3706 = vpow2.f32 %v1430_v18  ;;  %v2359_v48 = vpack.c.bf16 %v5601_v49, %v5560_v0 }
 0x388   : > { %2168 = vperm.xlu0 %3557, %v3695_v1   ;;  %v3697_v2 = vpop.eup %3696  ;;  %v1880_v9 = vmul.f32 %v3695_v1, %v1848_v15  ;;  %3708 = vpow2.f32 %v1446_v29  ;;  %v6192_v15 = vld [vmem:[#allocation78_spill] sm:$0xff] }
 0x389   : > { %2000 = vadd.xlane.f32.xlu2 %v1999_v28  ;;  %v3699_v24 = vpop.eup %3698  ;;  %v6187_v28 = vld [vmem:[#allocation40_spill] sm:$0xff]  ;;  %v1883_v51 = vmul.f32 %v3697_v2, %v1851_v50 }
 0x38a   : > { %v1878_v61 = vmul.f32 %v3699_v24, %v1846_v20  ;;  %v3701_v59 = vpop.eup %3700  ;;  %v6191_v20 = vld [vmem:[#allocation79_spill] sm:$0xff] }
 0x38b   : > { %v3703_v36 = vpop.eup %3702  ;;  %v1410_v32 = vsub.f32 %v6192_v15, %v6191_v20  ;;  %v1886_v0 = vmul.f32 %v3701_v59, %v1854_v46  ;;  %v1850_v46 = vld [vmem:[#allocation3 + $0x40] sm:$0xff] }
 0x38c   : > { %v1881_v1 = vmul.f32 %v3703_v36, %v1849_v27  ;;  %v5634_v55 = vpop.eup %3704  ;;  %v1847_v27 = vld [vmem:[#allocation3 + $0x28] sm:$0xff] }
 0x38d   : > { %v3707_v22 = vpop.eup %3706 }
 0x38e   : > { %v1911_v31 = vpop.xlane.xlu2 %1910 }
 0x38f   : > { %v2003_v42 = vadd.f32 %v1911_v31, %v1875_v4  ;;  %v1452_v4 = vmul.f32 1.442695, %v1407_v17  ;;  %v1857_v17 = vld [vmem:[#allocation3 + $0x78] sm:$0xff] }
 0x390   : > { %2183 = vperm.xlu0 %3557, %v3697_v2   ;;  %v2358_v2 = vpack.c.bf16 %v5599_v52, %v5557_v40  ;;  %v1468_v52 = vmul.f32 1.442695, %v1415_v53 }
 0x391   : > { %2036 = vst.msk [vmem:[#allocation3 + $0x8] sm:$0xff] %vm2034_vm3, %v2003_v42 }
 0x393   : > { %2534 = vmatmul.bf16.gmra.mxu2 %v2356_v44  ;;  %2138 = vperm.xlu1 %3558, %v5283_v57   ;;  %v6184_v57 = vld [vmem:[#allocation57_spill] sm:$0xff]  ;;  %v1844_v44 = vld [vmem:[#allocation3 + $0x10] sm:$0xff] }
 0x394   : > { %2623 = vmatmul.bf16.gmra.mxu3 %v2357_v10  ;;  %v1412_v25 = vsub.f32 %v6184_v57, %v5061_v63  ;;  %v6188_v63 = vld [vmem:[#allocation44_spill] sm:$0xff]  ;;  %v1876_v40 = vmul.f32 %v3707_v22, %v1844_v44 }
 0x395   : > { %v6189_v12 = vsub.f32 %v6187_v28, %v6188_v63  ;;  %v1852_v10 = vld [vmem:[#allocation3 + $0x50] sm:$0xff] }
 0x396   : > { %v1920_v14 = vpop.xlane.xlu2 %1919  ;;  %v1462_v23 = vmul.f32 1.442695, %v1412_v25 }
 0x397   : > { %v2006_v6 = vadd.f32 %v1920_v14, %v1878_v61  ;;  %v1926_v34 = vpop.xlane.xlu0 %1925  ;;  %v1436_v43 = vmul.f32 1.442695, %v6189_v12  ;;  %v6194_v61 = vld [vmem:[#allocation50_spill] sm:$0xff] }
 0x398   : > { %v2008_v39 = vadd.f32 %v1926_v34, %v1880_v9  ;;  %2198 = vperm.xlu0 %3557, %v3701_v59   ;;  %v2470_v56 = vpop.f32.mrf.mxu0  ;;  %3710 = vpow2.f32 %v1462_v23  ;;  %v6195_v18 = vsub.f32 %v6193_v35, %v6194_v61  ;;  %v6197_v23 = vld [vmem:[#allocation81_spill] sm:$0xff] }
 0x399   : > { %2039 = vst.msk [vmem:[#allocation3 + $0x20] sm:$0xff] %vm2034_vm3, %v2006_v6  ;;  %v2559_v38 = vpop.f32.mrf.mxu1  ;;  %3712 = vpow2.f32 %v1436_v43 }
 0x39a   : > { %2041 = vst.msk [vmem:[#allocation3 + $0x30] sm:$0xff] %vm2034_vm3, %v2008_v39  ;;  %v5627_v62 = vadd.f32 %v2559_v38, %v2470_v56  ;;  %3714 = vpow2.f32 %v1452_v4  ;;  %v1442_v14 = vmul.f32 1.442695, %v6195_v18  ;;  %v1458_v56 = vmul.f32 1.442695, %v1410_v32  ;;  %v6196_v38 = vld [vmem:[#allocation64_spill] sm:$0xff] }
 0x39b   : > { %2158 = vperm.xlu1 %3558, %v3699_v24   ;;  %v3709_v24 = vpop.eup %3708  ;;  %3716 = vpow2.f32 %v1468_v52  ;;  %v1858_v32 = vld [vmem:[#allocation3 + $0x80] sm:$0xff]  ;;  %v6203_v52 = vld [vmem:[#allocation83_spill] sm:$0xff] }
 0x39c   : > { %v1884_v58 = vmul.f32 %v3709_v24, %v1852_v10  ;;  %3718 = vpow2.f32 %v1442_v14  ;;  %v6205_v14 = vld [vmem:[#allocation55_spill] sm:$0xff] }
 0x39d   : > { %3720 = vpow2.f32 %v1458_v56 }
 0x39e   : > { %v1929_v11 = vpop.xlane.xlu2 %1928  ;;  %v5652_v49 = vpop.eup %3710 }
 0x39f   : > { %v2009_v8 = vadd.f32 %v1929_v11, %v1881_v1  ;;  %v1935_v13 = vpop.xlane.xlu0 %1934  ;;  %v3713_v39 = vpop.eup %3712  ;;  %v6198_v1 = vld [vmem:[#allocation80_spill] sm:$0xff] }
 0x3a0   : > { %v2011_v31 = vadd.f32 %v1935_v13, %v1883_v51  ;;  %2213 = vperm.xlu0 %3557, %v5634_v55   ;;  %v2472_v42 = vpop.f32.mrf.mxu0  ;;  %v3715_v50 = vpop.eup %3714  ;;  %v1413_v28 = vsub.f32 %v6198_v1, %v6197_v23  ;;  %v1879_v63 = vmul.f32 %v3713_v39, %v1847_v27  ;;  %v6199_v11 = vld [vmem:[#allocation52_spill] sm:$0xff]  ;;  %v6200_v51 = vld [vmem:[#allocation53_spill] sm:$0xff] }
 0x3a1   : > { %2042 = vst.msk [vmem:[#allocation3 + $0x38] sm:$0xff] %vm2034_vm3, %v2009_v8  ;;  %2148 = vperm.xlu2 %3559, %v3707_v22   ;;  %v2561_v41 = vpop.f32.mrf.mxu1  ;;  %v1887_v43 = vmul.f32 %v3715_v50, %v1855_v3  ;;  %v6201_v8 = vsub.f32 %v6199_v11, %v6200_v51  ;;  %v1861_v1 = vld [vmem:[#allocation3 + $0x98] sm:$0xff] }
 0x3a2   : > { %2044 = vst.msk [vmem:[#allocation3 + $0x48] sm:$0xff] %vm2034_vm3, %v2011_v31  ;;  %v5643_v47 = vadd.f32 %v2561_v41, %v2472_v42  ;;  %v1889_v31 = vmul.f32 %v5634_v55, %v1857_v17  ;;  %v5668_v42 = vpop.eup %3716  ;;  %v1853_v17 = vld [vmem:[#allocation3 + $0x58] sm:$0xff] }
 0x3a3   : > { %2539 = vmatmul.bf16.gmra.mxu2 %v2358_v2  ;;  %2173 = vperm.xlu1 %3558, %v3703_v36   ;;  %v1418_v36 = vsub.f32 %v6196_v38, %v5098_v33  ;;  %v1448_v13 = vmul.f32 1.442695, %v6201_v8  ;;  %v3719_v41 = vpop.eup %3718  ;;  %v1464_v2 = vmul.f32 1.442695, %v1413_v28  ;;  %v1863_v28 = vld [vmem:[#allocation3 + $0xa8] sm:$0xff]  ;;  %v6211_v8 = vld [vmem:[#allocation58_spill] sm:$0xff] }
 0x3a4   : > { %2628 = vmatmul.bf16.gmra.mxu3 %v2359_v48  ;;  %v6202_v48 = vld [vmem:[#allocation67_spill] sm:$0xff]  ;;  %v3721_v20 = vpop.eup %3720  ;;  %v1882_v35 = vmul.f32 %v3719_v41, %v1850_v46 }
 0x3a5   : > { %v1914_v37 = vpop.xlane.xlu1 %1913  ;;  %v1474_v33 = vmul.f32 1.442695, %v1418_v36  ;;  %v1421_v10 = vsub.f32 %v6202_v48, %v5115_v5  ;;  %v1890_v18 = vmul.f32 %v3721_v20, %v1858_v32 }
 0x3a6   : > { %v2004_v9 = vadd.f32 %v1914_v37, %v1876_v40  ;;  %v1938_v6 = vpop.xlane.xlu2 %1937  ;;  %v1860_v40 = vld [vmem:[#allocation3 + $0x90] sm:$0xff]  ;;  %v6204_v37 = vld [vmem:[#allocation82_spill] sm:$0xff] }
 0x3a7   : > { %v2012_v34 = vadd.f32 %v1938_v6, %v1884_v58  ;;  %v1944_v29 = vpop.xlane.xlu0 %1943  ;;  %3722 = vpow2.f32 %v1474_v33  ;;  %v1416_v58 = vsub.f32 %v6204_v37, %v6203_v52  ;;  %v1480_v5 = vmul.f32 1.442695, %v1421_v10  ;;  %v6210_v33 = vld [vmem:[#allocation84_spill] sm:$0xff] }
 0x3a8   : > { %2037 = vst.msk [vmem:[#allocation3 + $0x10] sm:$0xff] %vm2034_vm3, %v2004_v9  ;;  %v2014_v57 = vadd.f32 %v1944_v29, %v1886_v0  ;;  %2228 = vperm.xlu0 %3557, %v5652_v49   ;;  %v2475_v25 = vpop.f32.mrf.mxu0  ;;  %3724 = vpow2.f32 %v1448_v13  ;;  %v6206_v9 = vld [vmem:[#allocation56_spill] sm:$0xff]  ;;  %v6212_v13 = vld [vmem:[#allocation59_spill] sm:$0xff] }
 0x3a9   : > { %2045 = vst.msk [vmem:[#allocation3 + $0x50] sm:$0xff] %vm2034_vm3, %v2012_v34  ;;  %2163 = vperm.xlu2 %3559, %v3713_v39   ;;  %v2564_v59 = vpop.f32.mrf.mxu1  ;;  %3726 = vpow2.f32 %v1464_v2  ;;  %v6207_v6 = vsub.f32 %v6205_v14, %v6206_v9  ;;  %v1892_v39 = vmul.f32 %v5652_v49, %v1860_v40  ;;  %v1470_v36 = vmul.f32 1.442695, %v1416_v58  ;;  %v1856_v40 = vld [vmem:[#allocation3 + $0x70] sm:$0xff]  ;;  %v1866_v58 = vld [vmem:[#allocation3 + $0xc0] sm:$0xff] }
 0x3aa   : > { %2047 = vst.msk [vmem:[#allocation3 + $0x60] sm:$0xff] %vm2034_vm3, %v2014_v57  ;;  %v5660_v54 = vadd.f32 %v2564_v59, %v2475_v25  ;;  %3728 = vpow2.f32 %v1480_v5  ;;  %v1864_v37 = vld [vmem:[#allocation3 + $0xb0] sm:$0xff]  ;;  %v6215_v5 = vld [vmem:[#allocation86_spill] sm:$0xff] }
 0x3ab   : > { %2188 = vperm.xlu1 %3558, %v3709_v24   ;;  %v1454_v0 = vmul.f32 1.442695, %v6207_v6  ;;  %v6216_v6 = vld [vmem:[#allocation61_spill] sm:$0xff] }
 0x3ad   : > { %v1923_v12 = vpop.xlane.xlu1 %1922  ;;  %v5684_v56 = vpop.eup %3722  ;;  %3730 = vpow2.f32 %v1454_v0  ;;  %v6217_v0 = vld [vmem:[#allocation62_spill] sm:$0xff] }
 0x3ae   : > { %v2007_v22 = vadd.f32 %v1923_v12, %v1879_v63  ;;  %v1947_v4 = vpop.xlane.xlu2 %1946  ;;  %v3725_v38 = vpop.eup %3724  ;;  %3732 = vpow2.f32 %v1470_v36  ;;  %v6209_v63 = vld [vmem:[#allocation85_spill] sm:$0xff] }
 0x3af   : > { %v2015_v30 = vadd.f32 %v1947_v4, %v1887_v43  ;;  %v1953_v53 = vpop.xlane.xlu0 %1952  ;;  %v3727_v23 = vpop.eup %3726  ;;  %v1419_v12 = vsub.f32 %v6210_v33, %v6209_v63  ;;  %v1885_v43 = vmul.f32 %v3725_v38, %v1853_v17 }
 0x3b0   : > { %2040 = vst.msk [vmem:[#allocation3 + $0x28] sm:$0xff] %vm2034_vm3, %v2007_v22  ;;  %v2017_v44 = vadd.f32 %v1953_v53, %v1889_v31  ;;  %2243 = vperm.xlu0 %3557, %v5668_v42   ;;  %v2477_v24 = vpop.f32.mrf.mxu0  ;;  %v1893_v51 = vmul.f32 %v3727_v23, %v1861_v1  ;;  %v6213_v22 = vsub.f32 %v6211_v8, %v6212_v13  ;;  %v5701_v31 = vpop.f32.mrf.mxu2  ;;  %v6219_v13 = vld [vmem:[#allocation63_spill] sm:$0xff] }
 0x3b1   : > { %2048 = vst.msk [vmem:[#allocation3 + $0x68] sm:$0xff] %vm2034_vm3, %v2015_v30  ;;  %2178 = vperm.xlu2 %3559, %v3719_v41   ;;  %v2566_v55 = vpop.f32.mrf.mxu1  ;;  %v1895_v41 = vmul.f32 %v5668_v42, %v1863_v28  ;;  %v3729_v2 = vpop.eup %3728 }
 0x3b2   : > { %2050 = vst.msk [vmem:[#allocation3 + $0x78] sm:$0xff] %vm2034_vm3, %v2017_v44  ;;  %v5676_v15 = vadd.f32 %v2566_v55, %v2477_v24  ;;  %v1460_v4 = vmul.f32 1.442695, %v6213_v22  ;;  %v5704_v44 = vpop.f32.mrf.mxu3  ;;  %v1476_v55 = vmul.f32 1.442695, %v1419_v12  ;;  %v6220_v22 = vld [vmem:[#allocation65_spill] sm:$0xff] }
 0x3b3   : > { %2203 = vperm.xlu1 %3558, %v3715_v50   ;;  %v6208_v50 = vld [vmem:[#allocation88_spill] sm:$0xff]  ;;  %v3731_v10 = vpop.eup %3730 }
 0x3b4   : > { %v1424_v3 = vsub.f32 %v6208_v50, %v5261_v60  ;;  %v3733_v52 = vpop.eup %3732 }
 0x3b5   : > { %v1932_v61 = vpop.xlane.xlu1 %1931  ;;  %v1896_v9 = vmul.f32 %v3733_v52, %v1864_v37 }
 0x3b6   : > { %v2010_v34 = vadd.f32 %v1932_v61, %v1882_v35  ;;  %v1956_v29 = vpop.xlane.xlu2 %1955  ;;  %v1486_v11 = vmul.f32 1.442695, %v1424_v3  ;;  %v6214_v35 = vld [vmem:[#allocation87_spill] sm:$0xff] }
 0x3b7   : > { %v2018_v57 = vadd.f32 %v1956_v29, %v1890_v18  ;;  %v1962_v25 = vpop.xlane.xlu0 %1961  ;;  %v1422_v61 = vsub.f32 %v6215_v5, %v6214_v35  ;;  %v1888_v18 = vmul.f32 %v3731_v10, %v1856_v40  ;;  %v1872_v5 = vld [vmem:[#allocation3 + $0xf0] sm:$0xff] }
 0x3b8   : > { %2043 = vst.msk [vmem:[#allocation3 + $0x40] sm:$0xff] %vm2034_vm3, %v2010_v34  ;;  %v2020_v59 = vadd.f32 %v1962_v25, %v1892_v39  ;;  %2258 = vperm.xlu0 %3557, %v5684_v56   ;;  %v5688_v27 = vpop.f32.mrf.mxu0  ;;  %3734 = vpow2.f32 %v1486_v11  ;;  %v6218_v34 = vsub.f32 %v6216_v6, %v6217_v0  ;;  %v1869_v11 = vld [vmem:[#allocation3 + $0xd8] sm:$0xff]  ;;  %v6223_v6 = vld [vmem:[#allocation68_spill] sm:$0xff] }
 0x3b9   : > { %2051 = vst.msk [vmem:[#allocation3 + $0x80] sm:$0xff] %vm2034_vm3, %v2018_v57  ;;  %2193 = vperm.xlu2 %3559, %v3725_v38   ;;  %v5693_v49 = vpop.f32.mrf.mxu1  ;;  %3736 = vpow2.f32 %v1460_v4  ;;  %v1898_v38 = vmul.f32 %v5684_v56, %v1866_v58  ;;  %v1859_v56 = vld [vmem:[#allocation3 + $0x88] sm:$0xff]  ;;  %v6221_v4 = vsub.f32 %v6219_v13, %v6220_v22 }
 0x3ba   : > { %2053 = vst.msk [vmem:[#allocation3 + $0x90] sm:$0xff] %vm2034_vm3, %v2020_v59  ;;  %3738 = vpow2.f32 %v1476_v55  ;;  %v1466_v29 = vmul.f32 1.442695, %v6218_v34 }
 0x3bb   : > { %2218 = vperm.xlu1 %3558, %v3721_v20  }
 0x3bc   : > { %3740 = vpow2.f32 %v1466_v29 }
 0x3bd   : > { %v1941_v60 = vpop.xlane.xlu1 %1940 }
 0x3be   : > { %v2013_v30 = vadd.f32 %v1941_v60, %v1885_v43  ;;  %v1965_v53 = vpop.xlane.xlu2 %1964  ;;  %v3735_v36 = vpop.eup %3734  ;;  %v1867_v43 = vld [vmem:[#allocation3 + $0xc8] sm:$0xff] }
 0x3bf   : > { %v2021_v24 = vadd.f32 %v1965_v53, %v1893_v51  ;;  %v1971_v48 = vpop.xlane.xlu0 %1970  ;;  %v3737_v17 = vpop.eup %3736 }
 0x3c0   : > { %2046 = vst.msk [vmem:[#allocation3 + $0x58] sm:$0xff] %vm2034_vm3, %v2013_v30  ;;  %v2023_v46 = vadd.f32 %v1971_v48, %v1895_v41  ;;  %2273 = vperm.xlu0 %3557, %v3729_v2   ;;  %v2482_v20 = vpop.f32.mrf.mxu0  ;;  %v3739_v12 = vpop.eup %3738  ;;  %v1891_v60 = vmul.f32 %v3737_v17, %v1859_v56  ;;  %v1472_v30 = vmul.f32 1.442695, %v6221_v4  ;;  %v1901_v48 = vmul.f32 %v3729_v2, %v1869_v11  ;;  %v1870_v2 = vld [vmem:[#allocation3 + $0xe0] sm:$0xff] }
 0x3c1   : > { %2054 = vst.msk [vmem:[#allocation3 + $0x98] sm:$0xff] %vm2034_vm3, %v2021_v24  ;;  %2208 = vperm.xlu2 %3559, %v3731_v10   ;;  %v2571_v32 = vpop.f32.mrf.mxu1  ;;  %v1899_v8 = vmul.f32 %v3739_v12, %v1867_v43 }
 0x3c2   : > { %2056 = vst.msk [vmem:[#allocation3 + $0xa8] sm:$0xff] %vm2034_vm3, %v2023_v46  ;;  %v5709_v42 = vadd.f32 %v2571_v32, %v2482_v20  ;;  %v3741_v20 = vpop.eup %3740 }
 0x3c3   : > { %2233 = vperm.xlu1 %3558, %v3727_v23   ;;  %v1482_v23 = vmul.f32 1.442695, %v1422_v61 }
 0x3c5   : > { %v1950_v14 = vpop.xlane.xlu1 %1949  ;;  %3742 = vpow2.f32 %v1482_v23 }
 0x3c6   : > { %v2016_v39 = vadd.f32 %v1950_v14, %v1888_v18  ;;  %v1974_v57 = vpop.xlane.xlu2 %1973  ;;  %v2510_v25 = vpop.f32.mrf.mxu2  ;;  %3744 = vpow2.f32 %v1472_v30 }
 0x3c7   : > { %v2024_v59 = vadd.f32 %v1974_v57, %v1896_v9  ;;  %v2599_v50 = vpop.f32.mrf.mxu3  ;;  %v1980_v3 = vpop.xlane.xlu0 %1979  ;;  %v6222_v9 = vld [vmem:[#allocation66_spill] sm:$0xff] }
 0x3c8   : > { %2049 = vst.msk [vmem:[#allocation3 + $0x70] sm:$0xff] %vm2034_vm3, %v2016_v39  ;;  %v5718_v1 = vadd.f32 %v2599_v50, %v2510_v25  ;;  %v2026_v28 = vadd.f32 %v1980_v3, %v1898_v38  ;;  %2288 = vperm.xlu0 %3557, %v3735_v36   ;;  %v5720_v63 = vpop.f32.mrf.mxu0  ;;  %v6224_v0 = vsub.f32 %v6222_v9, %v6223_v6 }
 0x3c9   : > { %2057 = vst.msk [vmem:[#allocation3 + $0xb0] sm:$0xff] %vm2034_vm3, %v2024_v59  ;;  %2223 = vperm.xlu2 %3559, %v3737_v17   ;;  %v5723_v33 = vpop.f32.mrf.mxu1  ;;  %v1904_v25 = vmul.f32 %v3735_v36, %v1872_v5  ;;  %v6225_v17 = vsub.f32 %v5370_v26, %v5373_v21  ;;  %v6226_v21 = vld [vmem:[#allocation69_spill] sm:$0xff]  ;;  %v1871_v5 = vld [vmem:[#allocation3 + $0xe8] sm:$0xff] }
 0x3ca   : > { %2059 = vst.msk [vmem:[#allocation3 + $0xc0] sm:$0xff] %vm2034_vm3, %v2026_v28  ;;  %v1478_v34 = vmul.f32 1.442695, %v6224_v0 }
 0x3cb   : > { %2248 = vperm.xlu1 %3558, %v3733_v52   ;;  %v1862_v52 = vld [vmem:[#allocation3 + $0xa0] sm:$0xff]  ;;  %v3743_v37 = vpop.eup %3742  ;;  %v1488_v23 = vmul.f32 1.442695, %v6225_v17 }
 0x3cc   : > { %v1894_v61 = vmul.f32 %v3741_v20, %v1862_v52  ;;  %v1902_v14 = vmul.f32 %v3743_v37, %v1870_v2  ;;  %v3745_v3 = vpop.eup %3744  ;;  %3746 = vpow2.f32 %v1478_v34  ;;  %v2105_v2 = vld [vmem:[#allocation4] sm:$0xff] }
 0x3cd   : > { %v1959_v51 = vpop.xlane.xlu1 %1958  ;;  %3748 = vpow2.f32 %v1488_v23 }
 0x3ce   : > { %v2019_v53 = vadd.f32 %v1959_v51, %v1891_v60  ;;  %v1983_v41 = vpop.xlane.xlu2 %1982  ;;  %v2512_v24 = vpop.f32.mrf.mxu2  ;;  %v6227_v60 = vld [vmem:[#allocation70_spill] sm:$0xff] }
 0x3cf   : > { %v2027_v10 = vadd.f32 %v1983_v41, %v1899_v8  ;;  %v2601_v55 = vpop.f32.mrf.mxu3  ;;  %v1989_v46 = vpop.xlane.xlu0 %1988  ;;  %v6228_v51 = vsub.f32 %v6226_v21, %v6227_v60 }
 0x3d0   : > { %2052 = vst.msk [vmem:[#allocation3 + $0x88] sm:$0xff] %vm2034_vm3, %v2019_v53  ;;  %v5730_v32 = vadd.f32 %v2601_v55, %v2512_v24  ;;  %v2029_v40 = vadd.f32 %v1989_v46, %v1901_v48  ;;  %v5734_v58 = vpop.f32.mrf.mxu0  ;;  %v1868_v53 = vld [vmem:[#allocation3 + $0xd0] sm:$0xff] }
 0x3d1   : > { %2060 = vst.msk [vmem:[#allocation3 + $0xc8] sm:$0xff] %vm2034_vm3, %v2027_v10  ;;  %2238 = vperm.xlu2 %3559, %v3741_v20   ;;  %v5736_v35 = vpop.f32.mrf.mxu1  ;;  %v1484_v8 = vmul.f32 1.442695, %v6228_v51 }
 0x3d2   : > { %2062 = vst.msk [vmem:[#allocation3 + $0xd8] sm:$0xff] %vm2034_vm3, %v2029_v40  ;;  %v3747_v30 = vpop.eup %3746 }
 0x3d3   : > { %2263 = vperm.xlu1 %3558, %v3739_v12   ;;  %v1865_v12 = vld [vmem:[#allocation3 + $0xb8] sm:$0xff]  ;;  %v3749_v41 = vpop.eup %3748  ;;  %3750 = vpow2.f32 %v1484_v8  ;;  %v1900_v24 = vmul.f32 %v3747_v30, %v1868_v53 }
 0x3d4   : > { %v1897_v43 = vmul.f32 %v3745_v3, %v1865_v12  ;;  %v2106_v53 = vld [vmem:[#allocation4 + $0xd8] sm:$0xff] }
 0x3d5   : > { %v1968_v18 = vpop.xlane.xlu1 %1967 }
 0x3d6   : > { %v2022_v29 = vadd.f32 %v1968_v18, %v1894_v61  ;;  %v1992_v39 = vpop.xlane.xlu2 %1991  ;;  %v2515_v57 = vpop.f32.mrf.mxu2  ;;  %v2557_v18 = vadd.f32 %v5613_v19, %v5609_v7  ;;  %v2110_v7 = vld [vmem:[#allocation4 + $0x30] sm:$0xff]  ;;  %v1873_v19 = vld [vmem:[#allocation3 + $0xf8] sm:$0xff] }
 0x3d7   : > { %v2030_v38 = vadd.f32 %v1992_v39, %v1902_v14  ;;  %v2604_v59 = vpop.f32.mrf.mxu3  ;;  %v1998_v50 = vpop.xlane.xlu0 %1997  ;;  %v2107_v39 = vld [vmem:[#allocation4 + $0x18] sm:$0xff]  ;;  %v1905_v21 = vmul.f32 %v3749_v41, %v1873_v19 }
 0x3d8   : > { %2055 = vst.msk [vmem:[#allocation3 + $0xa0] sm:$0xff] %vm2034_vm3, %v2022_v29  ;;  %v5745_v28 = vadd.f32 %v2604_v59, %v2515_v57  ;;  %v2032_v56 = vadd.f32 %v1998_v50, %v1904_v25  ;;  %v5749_v36 = vpop.f32.mrf.mxu0 }
 0x3d9   : > { %2063 = vst.msk [vmem:[#allocation3 + $0xe0] sm:$0xff] %vm2034_vm3, %v2030_v38  ;;  %2253 = vperm.xlu2 %3559, %v3745_v3   ;;  %v5751_v11 = vpop.f32.mrf.mxu1  ;;  %v3751_v52 = vpop.eup %3750 }
 0x3da   : > { %2065 = vst.msk [vmem:[#allocation3 + $0xf0] sm:$0xff] %vm2034_vm3, %v2032_v56  ;;  %v1903_v9 = vmul.f32 %v3751_v52, %v1871_v5  ;;  %v2570_v56 = vadd.f32 %v5693_v49, %v5688_v27  ;;  %v2577_v27 = vadd.f32 %v5736_v35, %v5734_v58  ;;  %v2116_v35 = vld [vmem:[#allocation4 + $0x60] sm:$0xff] }
 0x3db   : > { %2278 = vperm.xlu1 %3558, %v3743_v37  }
 0x3dd   : > { %v1977_v26 = vpop.xlane.xlu1 %1976 }
 0x3de   : > { %v2025_v13 = vadd.f32 %v1977_v26, %v1897_v43  ;;  %v5756_v22 = vpop.f32.mrf.mxu2 }
 0x3df   : > { %v5758_v4 = vpop.f32.mrf.mxu3 }
 0x3e0   : > { %2058 = vst.msk [vmem:[#allocation3 + $0xb8] sm:$0xff] %vm2034_vm3, %v2025_v13  ;;  %v5761_v10 = vpop.f32.mrf.mxu0  ;;  %v2113_v13 = vld [vmem:[#allocation4 + $0x88] sm:$0xff] }
 0x3e1   : > { %2268 = vperm.xlu2 %3559, %v3747_v30   ;;  %v5763_v20 = vpop.f32.mrf.mxu1 }
 0x3e3   : > { %2293 = vperm.xlu1 %3558, %v3749_v41  }
 0x3e5   : > { %v1986_v48 = vpop.xlane.xlu1 %1985 }
 0x3e6   : > { %v2028_v55 = vadd.f32 %v1986_v48, %v1900_v24  ;;  %v2520_v46 = vpop.f32.mrf.mxu2  ;;  %v2104_v24 = vld [vmem:[#allocation4 + $0xb0] sm:$0xff] }
 0x3e7   : > { %v2609_v40 = vpop.f32.mrf.mxu3 }
 0x3e8   : > { %2061 = vst.msk [vmem:[#allocation3 + $0xd0] sm:$0xff] %vm2034_vm3, %v2028_v55  ;;  %v5766_v37 = vadd.f32 %v2609_v40, %v2520_v46  ;;  %v2495_v29 = vpop.f32.mrf.mxu0 }
 0x3e9   : > { %2283 = vperm.xlu2 %3559, %v3751_v52   ;;  %v2584_v57 = vpop.f32.mrf.mxu1 }
 0x3ea   : > { %v2144_v61 = vpop.permute.xlu0 %2143 }
 0x3eb   : > { %v2297_v14 = vmul.f32 %v2144_v61, %v2105_v2 }
 0x3ed   : > { %v2635_v6 = vadd.f32 %v2557_v18, %v2297_v14  ;;  %v1995_v0 = vpop.xlane.xlu1 %1994 }
 0x3ee   : > { %v2031_v34 = vadd.f32 %v1995_v0, %v1903_v9  ;;  %v5771_v25 = vpop.f32.mrf.mxu2  ;;  %v2109_v9 = vld [vmem:[#allocation4 + $0x68] sm:$0xff] }
 0x3ef   : > { %2667 = vst [vmem:[#allocation4] sm:$0xff] %v2635_v6  ;;  %v5773_v38 = vpop.f32.mrf.mxu3  ;;  %v2585_v6 = vadd.f32 %v2584_v57, %v2495_v29  ;;  %v2112_v57 = vld [vmem:[#allocation4 + $0x80] sm:$0xff] }
 0x3f0   : > { %2064 = vst.msk [vmem:[#allocation3 + $0xe8] sm:$0xff] %vm2034_vm3, %v2031_v34  ;;  %v5776_v17 = vpop.f32.mrf.mxu0  ;;  %v2108_v34 = vld [vmem:[#allocation4 + $0x50] sm:$0xff] }
 0x3f1   : > { %v5780_v12 = vpop.f32.mrf.mxu1 }
 0x3f2   : > { %v2154_v59 = vpop.permute.xlu0 %2153 }
 0x3f3   : > { %v2299_v50 = vmul.f32 %v2154_v59, %v2107_v39 }
 0x3f5   : > { %v2637_v3 = vadd.f32 %v5643_v47, %v2299_v50 }
 0x3f6   : > { %v5782_v43 = vpop.f32.mrf.mxu2 }
 0x3f7   : > { %2669 = vst [vmem:[#allocation4 + $0x18] sm:$0xff] %v2637_v3  ;;  %v5784_v60 = vpop.f32.mrf.mxu3 }
 0x3f8   : > { %v5789_v48 = vpop.f32.mrf.mxu0 }
 0x3f9   : > { %v5793_v2 = vpop.f32.mrf.mxu1 }
 0x3fa   : > { %v2169_v23 = vpop.permute.xlu0 %2168 }
 0x3fb   : > { %v2302_v26 = vmul.f32 %v2169_v23, %v2110_v7 }
 0x3fc   : > { %v2001_v51 = vpop.xlane.xlu2 %2000 }
 0x3fd   : > { %v2640_v8 = vadd.f32 %v2570_v56, %v2302_v26  ;;  %v2033_v47 = vadd.f32 %v2001_v51, %v1905_v21  ;;  %v2119_v21 = vld [vmem:[#allocation4 + $0x78] sm:$0xff] }
 0x3fe   : > { %v5791_v41 = vpop.f32.mrf.mxu2 }
 0x3ff   : > { %2672 = vst [vmem:[#allocation4 + $0x30] sm:$0xff] %v2640_v8  ;;  %v5795_v5 = vpop.f32.mrf.mxu3 }
 0x400   : > { %2066 = vst.msk [vmem:[#allocation3 + $0xf8] sm:$0xff] %vm2034_vm3, %v2033_v47  ;;  %v2502_v19 = vpop.f32.mrf.mxu0  ;;  %v2111_v47 = vld [vmem:[#allocation4 + $0x48] sm:$0xff] }
 0x402   : > { %v2184_v30 = vpop.permute.xlu0 %2183 }
 0x403   : > { %v2305_v49 = vmul.f32 %v2184_v30, %v2113_v13  ;;  %v2575_v30 = vadd.f32 %v5723_v33, %v5720_v63  ;;  %v2582_v63 = vadd.f32 %v5763_v20, %v5761_v10  ;;  %v2117_v20 = vld [vmem:[#allocation4 + $0xf0] sm:$0xff] }
 0x404   : > { %v2149_v55 = vpop.permute.xlu2 %2148 }
 0x405   : > { %v2643_v46 = vadd.f32 %v2577_v27, %v2305_v49  ;;  %v2298_v40 = vmul.f32 %v2149_v55, %v2106_v53  ;;  %v2139_v52 = vpop.permute.xlu1 %2138  ;;  %v2122_v55 = vld [vmem:[#allocation4 + $0x40] sm:$0xff] }
 0x406   : > { %v2296_v61 = vmul.f32 %v2139_v52, %v2104_v24  ;;  %v5799_v23 = vpop.f32.mrf.mxu2 }
 0x407   : > { %2675 = vst [vmem:[#allocation4 + $0x88] sm:$0xff] %v2643_v46  ;;  %v2636_v18 = vadd.f32 %v5627_v62, %v2298_v40  ;;  %v5802_v56 = vpop.f32.mrf.mxu3 }
 0x408   : > { %v2634_v58 = vadd.f32 %v5397_v16, %v2296_v61  ;;  %v2591_v16 = vpop.f32.mrf.mxu1  ;;  %v2115_v61 = vld [vmem:[#allocation4 + $0xb8] sm:$0xff] }
 0x409   : > { %2668 = vst [vmem:[#allocation4 + $0xd8] sm:$0xff] %v2636_v18  ;;  %v2592_v51 = vadd.f32 %v2591_v16, %v2502_v19 }
 0x40a   : > { %2666 = vst [vmem:[#allocation4 + $0xb0] sm:$0xff] %v2634_v58  ;;  %v2199_v14 = vpop.permute.xlu0 %2198  ;;  %v2114_v58 = vld [vmem:[#allocation4 + $0xe8] sm:$0xff] }
 0x40b   : > { %v2308_v0 = vmul.f32 %v2199_v14, %v2116_v35 }
 0x40c   : > { %v2164_v39 = vpop.permute.xlu2 %2163 }
 0x40d   : > { %v2646_v59 = vadd.f32 %v2585_v6, %v2308_v0  ;;  %v2301_v50 = vmul.f32 %v2164_v39, %v2109_v9  ;;  %v2159_v3 = vpop.permute.xlu1 %2158  ;;  %v2125_v39 = vld [vmem:[#allocation4 + $0x90] sm:$0xff] }
 0x40e   : > { %v2300_v7 = vmul.f32 %v2159_v3, %v2108_v34  ;;  %v2532_v46 = vpop.f32.mrf.mxu2  ;;  %v2607_v3 = vadd.f32 %v5758_v4, %v5756_v22  ;;  %v2128_v4 = vld [vmem:[#allocation4 + $0xa8] sm:$0xff] }
 0x40f   : > { %2678 = vst [vmem:[#allocation4 + $0x60] sm:$0xff] %v2646_v59  ;;  %v2639_v62 = vadd.f32 %v5676_v15, %v2301_v50  ;;  %v2621_v40 = vpop.f32.mrf.mxu3  ;;  %v2118_v50 = vld [vmem:[#allocation4 + $0x8] sm:$0xff] }
 0x410   : > { %v2638_v26 = vadd.f32 %v5660_v54, %v2300_v7 }
 0x411   : > { %2671 = vst [vmem:[#allocation4 + $0x68] sm:$0xff] %v2639_v62 }
 0x412   : > { %2670 = vst [vmem:[#allocation4 + $0x50] sm:$0xff] %v2638_v26  ;;  %v2214_v29 = vpop.permute.xlu0 %2213  ;;  %v2587_v26 = vadd.f32 %v5780_v12, %v5776_v17 }
 0x413   : > { %v2311_v8 = vmul.f32 %v2214_v29, %v2119_v21 }
 0x414   : > { %v2179_v13 = vpop.permute.xlu2 %2178 }
 0x415   : > { %v2649_v53 = vadd.f32 %v2592_v51, %v2311_v8  ;;  %v2304_v27 = vmul.f32 %v2179_v13, %v2112_v57  ;;  %v2174_v15 = vpop.permute.xlu1 %2173  ;;  %v2121_v51 = vld [vmem:[#allocation4 + $0x58] sm:$0xff]  ;;  %v2615_v8 = vadd.f32 %v5784_v60, %v5782_v43  ;;  %v2597_v13 = vadd.f32 %v5704_v44, %v5701_v31  ;;  %v2124_v60 = vld [vmem:[#allocation4 + $0xe0] sm:$0xff] }
 0x416   : > { %v2303_v49 = vmul.f32 %v2174_v15, %v2111_v47  ;;  %v5815_v10 = vpop.f32.mrf.mxu2 }
 0x417   : > { %2681 = vst [vmem:[#allocation4 + $0x78] sm:$0xff] %v2649_v53  ;;  %v2642_v24 = vadd.f32 %v2575_v30, %v2304_v27  ;;  %v5817_v7 = vpop.f32.mrf.mxu3 }
 0x418   : > { %v2641_v54 = vadd.f32 %v5709_v42, %v2303_v49  ;;  %v2580_v42 = vadd.f32 %v5751_v11, %v5749_v36  ;;  %v2590_v36 = vadd.f32 %v5793_v2, %v5789_v48  ;;  %v2120_v48 = vld [vmem:[#allocation4 + $0x38] sm:$0xff] }
 0x419   : > { %2674 = vst [vmem:[#allocation4 + $0x80] sm:$0xff] %v2642_v24 }
 0x41a   : > { %2673 = vst [vmem:[#allocation4 + $0x48] sm:$0xff] %v2641_v54  ;;  %v2229_v52 = vpop.permute.xlu0 %2228  ;;  %v2131_v54 = vld [vmem:[#allocation4 + $0x28] sm:$0xff] }
 0x41b   : > { %v2314_v18 = vmul.f32 %v2229_v52, %v2122_v55  ;;  %v2622_v55 = vadd.f32 %v2621_v40, %v2532_v46 }
 0x41c   : > { %v2194_v35 = vpop.permute.xlu2 %2193 }
 0x41d   : > { %v2652_v33 = vadd.f32 %v5718_v1, %v2314_v18  ;;  %v2307_v14 = vmul.f32 %v2194_v35, %v2115_v61  ;;  %v2189_v9 = vpop.permute.xlu1 %2188  ;;  %v2123_v61 = vld [vmem:[#allocation4 + $0xc8] sm:$0xff] }
 0x41e   : > { %v2306_v6 = vmul.f32 %v2189_v9, %v2114_v58  ;;  %v2537_v53 = vpop.f32.mrf.mxu2  ;;  %v2134_v9 = vld [vmem:[#allocation4 + $0x20] sm:$0xff] }
 0x41f   : > { %2684 = vst [vmem:[#allocation4 + $0x40] sm:$0xff] %v2652_v33  ;;  %v2645_v0 = vadd.f32 %v2582_v63, %v2307_v14  ;;  %v2626_v27 = vpop.f32.mrf.mxu3 }
 0x420   : > { %v2644_v34 = vadd.f32 %v2580_v42, %v2306_v6  ;;  %v2127_v6 = vld [vmem:[#allocation4 + $0xc0] sm:$0xff] }
 0x421   : > { %2677 = vst [vmem:[#allocation4 + $0xb8] sm:$0xff] %v2645_v0  ;;  %v2126_v0 = vld [vmem:[#allocation4 + $0x70] sm:$0xff] }
 0x422   : > { %2676 = vst [vmem:[#allocation4 + $0xe8] sm:$0xff] %v2644_v34  ;;  %v2244_v59 = vpop.permute.xlu0 %2243 }
 0x423   : > { %v2317_v1 = vmul.f32 %v2244_v59, %v2125_v39  ;;  %v2612_v39 = vadd.f32 %v5773_v38, %v5771_v25  ;;  %v2617_v25 = vadd.f32 %v5795_v5, %v5791_v41 }
 0x424   : > { %v2209_v19 = vpop.permute.xlu2 %2208 }
 0x425   : > { %v2655_v11 = vadd.f32 %v2607_v3, %v2317_v1  ;;  %v2310_v62 = vmul.f32 %v2209_v19, %v2118_v50  ;;  %v2204_v16 = vpop.permute.xlu1 %2203  ;;  %v2129_v19 = vld [vmem:[#allocation4 + $0xd0] sm:$0xff] }
 0x426   : > { %v2309_v21 = vmul.f32 %v2204_v16, %v2117_v20  ;;  %v2540_v33 = vpop.f32.mrf.mxu2  ;;  %v2130_v20 = vld [vmem:[#allocation4 + $0x10] sm:$0xff] }
 0x427   : > { %2687 = vst [vmem:[#allocation4 + $0x90] sm:$0xff] %v2655_v11  ;;  %v2648_v29 = vadd.f32 %v2590_v36, %v2310_v62  ;;  %v2629_v14 = vpop.f32.mrf.mxu3  ;;  %v2620_v11 = vadd.f32 %v5802_v56, %v5799_v23 }
 0x428   : > { %v2647_v22 = vadd.f32 %v2587_v26, %v2309_v21  ;;  %v2630_v46 = vadd.f32 %v2629_v14, %v2540_v33 }
 0x429   : > { %2680 = vst [vmem:[#allocation4 + $0x8] sm:$0xff] %v2648_v29  ;;  %v2133_v29 = vld [vmem:[#allocation4 + $0xf8] sm:$0xff] }
 0x42a   : > { %2679 = vst [vmem:[#allocation4 + $0xf0] sm:$0xff] %v2647_v22  ;;  %v2259_v57 = vpop.permute.xlu0 %2258 }
 0x42b   : > { %v2320_v47 = vmul.f32 %v2259_v57, %v2128_v4  ;;  %v2627_v4 = vadd.f32 %v2626_v27, %v2537_v53 }
 0x42c   : > { %v2224_v2 = vpop.permute.xlu2 %2223 }
 0x42d   : > { %v2658_v30 = vadd.f32 %v2615_v8, %v2320_v47  ;;  %v2313_v17 = vmul.f32 %v2224_v2, %v2121_v51  ;;  %v2219_v12 = vpop.permute.xlu1 %2218  ;;  %v2625_v8 = vadd.f32 %v5817_v7, %v5815_v10 }
 0x42e   : > { %v2312_v15 = vmul.f32 %v2219_v12, %v2120_v48  ;;  %v2542_v41 = vpop.f32.mrf.mxu2  ;;  %v2135_v48 = vld [vmem:[#allocation4 + $0x98] sm:$0xff] }
 0x42f   : > { %2690 = vst [vmem:[#allocation4 + $0xa8] sm:$0xff] %v2658_v30  ;;  %v2651_v49 = vadd.f32 %v2597_v13, %v2313_v17  ;;  %v2631_v5 = vpop.f32.mrf.mxu3 }
 0x430   : > { %v2650_v24 = vadd.f32 %v5500_v45, %v2312_v15  ;;  %v2632_v13 = vadd.f32 %v2631_v5, %v2542_v41 }
 0x431   : > { %2683 = vst [vmem:[#allocation4 + $0x58] sm:$0xff] %v2651_v49 }
 0x432   : > { %2682 = vst [vmem:[#allocation4 + $0x38] sm:$0xff] %v2650_v24  ;;  %v2274_v43 = vpop.permute.xlu0 %2273 }
 0x433   : > { %v2323_v52 = vmul.f32 %v2274_v43, %v2131_v54 }
 0x434   : > { %v2239_v18 = vpop.permute.xlu2 %2238 }
 0x435   : > { %v2661_v31 = vadd.f32 %v2622_v55, %v2323_v52  ;;  %v2316_v44 = vmul.f32 %v2239_v18, %v2124_v60  ;;  %v2234_v58 = vpop.permute.xlu1 %2233 }
 0x436   : > { %v2315_v35 = vmul.f32 %v2234_v58, %v2123_v61 }
 0x437   : > { %2693 = vst [vmem:[#allocation4 + $0x28] sm:$0xff] %v2661_v31  ;;  %v2654_v63 = vadd.f32 %v5745_v28, %v2316_v44 }
 0x438   : > { %v2653_v45 = vadd.f32 %v5730_v32, %v2315_v35 }
 0x439   : > { %2686 = vst [vmem:[#allocation4 + $0xe0] sm:$0xff] %v2654_v63 }
 0x43a   : > { %2685 = vst [vmem:[#allocation4 + $0xc8] sm:$0xff] %v2653_v45  ;;  %v2289_v42 = vpop.permute.xlu0 %2288 }
 0x43b   : > { %v2326_v40 = vmul.f32 %v2289_v42, %v2134_v9 }
 0x43c   : > { %v2254_v34 = vpop.permute.xlu2 %2253 }
 0x43d   : > { %v2664_v59 = vadd.f32 %v2630_v46, %v2326_v40  ;;  %v2319_v50 = vmul.f32 %v2254_v34, %v2127_v6  ;;  %v2249_v3 = vpop.permute.xlu1 %2248 }
 0x43e   : > { %v2318_v28 = vmul.f32 %v2249_v3, %v2126_v0 }
 0x43f   : > { %2696 = vst [vmem:[#allocation4 + $0x20] sm:$0xff] %v2664_v59  ;;  %v2657_v1 = vadd.f32 %v2612_v39, %v2319_v50 }
 0x440   : > { %v2656_v32 = vadd.f32 %v5766_v37, %v2318_v28  ;;  %v2132_v37 = vld [vmem:[#allocation4 + $0xa0] sm:$0xff] }
 0x441   : > { %2689 = vst [vmem:[#allocation4 + $0xc0] sm:$0xff] %v2657_v1 }
 0x442   : > { %2688 = vst [vmem:[#allocation4 + $0x70] sm:$0xff] %v2656_v32 }
 0x444   : > { %v2269_v36 = vpop.permute.xlu2 %2268 }
 0x445   : > { %v2322_v62 = vmul.f32 %v2269_v36, %v2130_v20  ;;  %v2264_v16 = vpop.permute.xlu1 %2263 }
 0x446   : > { %v2321_v38 = vmul.f32 %v2264_v16, %v2129_v19 }
 0x447   : > { %v2660_v26 = vadd.f32 %v2620_v11, %v2322_v62 }
 0x448   : > { %v2659_v21 = vadd.f32 %v2617_v25, %v2321_v38 }
 0x449   : > { %2692 = vst [vmem:[#allocation4 + $0x10] sm:$0xff] %v2660_v26 }
 0x44a   : > { %2691 = vst [vmem:[#allocation4 + $0xd0] sm:$0xff] %v2659_v21 }
 0x44c   : > { %v2284_v22 = vpop.permute.xlu2 %2283 }
 0x44d   : > { %v2325_v57 = vmul.f32 %v2284_v22, %v2133_v29  ;;  %v2279_v51 = vpop.permute.xlu1 %2278 }
 0x44e   : > { %v2324_v23 = vmul.f32 %v2279_v51, %v2132_v37 }
 0x44f   : > { %v2663_v56 = vadd.f32 %v2627_v4, %v2325_v57 }
 0x450   : > { %v2662_v47 = vadd.f32 %v2625_v8, %v2324_v23 }
 0x451   : > { %2695 = vst [vmem:[#allocation4 + $0xf8] sm:$0xff] %v2663_v56 }
 0x452   : > { %2694 = vst [vmem:[#allocation4 + $0xa0] sm:$0xff] %v2662_v47 }
 0x455   : > { %v2294_v2 = vpop.permute.xlu1 %2293 }
 0x456   : > { %v2327_v30 = vmul.f32 %v2294_v2, %v2135_v48  ;;  %2733 = sbr.rel (%p3429_p13) target bundleno = 1337 (0x539), region = 67 }
 0x458   : > { %v2665_v17 = vadd.f32 %v2632_v13, %v2327_v30 }
 0x45a   : > { %2697 = vst [vmem:[#allocation4 + $0x98] sm:$0xff] %v2665_v17 }
 0x45b   : > { %v2770_v12 = vld [vmem:[#allocation3 + $0x20] sm:$0xff]  ;;  %v2768_v53 = vld [vmem:[#allocation3 + $0x10] sm:$0xff]  ;;  %v3942_v10 = vmov 0   ;;  %v2771_v7 = vld [vmem:[#allocation3 + $0x28] sm:$0xff] }
 0x45c   : > { %v2766_v27 = vld [vmem:[#allocation3] sm:$0xff]  ;;  %3754 = vset.pattern.permute.xlu2 %v3942_v10  ;;  %3753 = vset.pattern.permute.xlu1 %v3942_v10  ;;  %3755 = vrcp.f32 %v2770_v12  ;;  %v2769_v15 = vld [vmem:[#allocation3 + $0x18] sm:$0xff]  ;;  %v2767_v49 = vld [vmem:[#allocation3 + $0x8] sm:$0xff] }
 0x45d   : > { %3752 = vset.pattern.permute.xlu0 %v3942_v10  ;;  %3757 = vrcp.f32 %v2768_v53  ;;  %v2774_v60 = vld [vmem:[#allocation3 + $0x40] sm:$0xff]  ;;  %v2773_v52 = vld [vmem:[#allocation3 + $0x38] sm:$0xff]  ;;  %v2772_v18 = vld [vmem:[#allocation3 + $0x30] sm:$0xff] }
 0x45e   : > { %3759 = vrcp.f32 %v2766_v27  ;;  %v2777_v44 = vld [vmem:[#allocation3 + $0x58] sm:$0xff]  ;;  %v2776_v35 = vld [vmem:[#allocation3 + $0x50] sm:$0xff]  ;;  %v2775_v33 = vld [vmem:[#allocation3 + $0x48] sm:$0xff] }
 0x45f   : > { %3761 = vrcp.f32 %v2771_v7  ;;  %v2780_v45 = vld [vmem:[#allocation3 + $0x70] sm:$0xff]  ;;  %v2779_v42 = vld [vmem:[#allocation3 + $0x68] sm:$0xff]  ;;  %v2778_v46 = vld [vmem:[#allocation3 + $0x60] sm:$0xff] }
 0x460   : > { %3763 = vrcp.f32 %v2769_v15  ;;  %v2783_v0 = vld [vmem:[#allocation3 + $0x88] sm:$0xff]  ;;  %v2782_v39 = vld [vmem:[#allocation3 + $0x80] sm:$0xff]  ;;  %v2781_v50 = vld [vmem:[#allocation3 + $0x78] sm:$0xff] }
 0x461   : > { %3765 = vrcp.f32 %v2767_v49  ;;  %v2786_v28 = vld [vmem:[#allocation3 + $0xa0] sm:$0xff]  ;;  %v2785_v32 = vld [vmem:[#allocation3 + $0x98] sm:$0xff]  ;;  %v2784_v19 = vld [vmem:[#allocation3 + $0x90] sm:$0xff] }
 0x462   : > { %v3756_v24 = vpop.eup %3755  ;;  %3767 = vrcp.f32 %v2774_v60  ;;  %v2789_v11 = vld [vmem:[#allocation3 + $0xb8] sm:$0xff]  ;;  %v2788_v16 = vld [vmem:[#allocation3 + $0xb0] sm:$0xff]  ;;  %v2787_v38 = vld [vmem:[#allocation3 + $0xa8] sm:$0xff] }
 0x463   : > { %v3758_v54 = vpop.eup %3757  ;;  %2852 = vperm.xlu2 %3754, %v3756_v24   ;;  %3769 = vrcp.f32 %v2773_v52  ;;  %v2792_v21 = vld [vmem:[#allocation3 + $0xd0] sm:$0xff]  ;;  %v2791_v37 = vld [vmem:[#allocation3 + $0xc8] sm:$0xff]  ;;  %v2790_v4 = vld [vmem:[#allocation3 + $0xc0] sm:$0xff] }
 0x464   : > { %v3760_v43 = vpop.eup %3759  ;;  %2842 = vperm.xlu1 %3753, %v3758_v54   ;;  %3771 = vrcp.f32 %v2772_v18  ;;  %v2795_v51 = vld [vmem:[#allocation3 + $0xe8] sm:$0xff]  ;;  %v2794_v23 = vld [vmem:[#allocation3 + $0xe0] sm:$0xff]  ;;  %v2793_v47 = vld [vmem:[#allocation3 + $0xd8] sm:$0xff] }
 0x465   : > { %2832 = vperm.xlu0 %3752, %v3760_v43   ;;  %v3762_v55 = vpop.eup %3761  ;;  %3773 = vrcp.f32 %v2777_v44  ;;  %v2797_v48 = vld [vmem:[#allocation3 + $0xf8] sm:$0xff]  ;;  %v2796_v13 = vld [vmem:[#allocation3 + $0xf0] sm:$0xff]  ;;  %v2739_v49 = vld [vmem:[#allocation4 + $0x68] sm:$0xff] }
 0x466   : > { %v3764_v61 = vpop.eup %3763  ;;  %3775 = vrcp.f32 %v2776_v35  ;;  %v2738_v53 = vld [vmem:[#allocation4 + $0x50] sm:$0xff] }
 0x467   : > { %v3766_v31 = vpop.eup %3765  ;;  %3777 = vrcp.f32 %v2775_v33 }
 0x468   : > { %v3768_v58 = vpop.eup %3767  ;;  %3779 = vrcp.f32 %v2780_v45  ;;  %v2736_v45 = vld [vmem:[#allocation4 + $0xd8] sm:$0xff] }
 0x469   : > { %v3770_v63 = vpop.eup %3769  ;;  %3781 = vrcp.f32 %v2779_v42 }
 0x46a   : > { %v3772_v14 = vpop.eup %3771  ;;  %3783 = vrcp.f32 %v2778_v46 }
 0x46b   : > { %2857 = vperm.xlu2 %3754, %v3762_v55   ;;  %v3774_v9 = vpop.eup %3773  ;;  %3785 = vrcp.f32 %v2783_v0 }
 0x46c   : > { %2847 = vperm.xlu1 %3753, %v3764_v61   ;;  %v3776_v6 = vpop.eup %3775  ;;  %3787 = vrcp.f32 %v2782_v39  ;;  %v2742_v61 = vld [vmem:[#allocation4 + $0x80] sm:$0xff] }
 0x46d   : > { %2837 = vperm.xlu0 %3752, %v3766_v31   ;;  %v3778_v40 = vpop.eup %3777  ;;  %3789 = vrcp.f32 %v2781_v50 }
 0x46e   : > { %v3780_v34 = vpop.eup %3779  ;;  %3791 = vrcp.f32 %v2786_v28 }
 0x46f   : > { %v3782_v59 = vpop.eup %3781  ;;  %3793 = vrcp.f32 %v2785_v32 }
 0x470   : > { %v3784_v3 = vpop.eup %3783  ;;  %3795 = vrcp.f32 %v2784_v19  ;;  %v2748_v19 = vld [vmem:[#allocation4 + $0x8] sm:$0xff] }
 0x471   : > { %v3786_v1 = vpop.eup %3785  ;;  %3797 = vrcp.f32 %v2789_v11  ;;  %v2737_v11 = vld [vmem:[#allocation4 + $0x18] sm:$0xff] }
 0x472   : > { %v3788_v20 = vpop.eup %3787  ;;  %3799 = vrcp.f32 %v2788_v16 }
 0x473   : > { %2872 = vperm.xlu2 %3754, %v3768_v58   ;;  %v3790_v36 = vpop.eup %3789  ;;  %3801 = vrcp.f32 %v2787_v38 }
 0x474   : > { %2867 = vperm.xlu1 %3753, %v3770_v63   ;;  %v3792_v62 = vpop.eup %3791  ;;  %3803 = vrcp.f32 %v2792_v21 }
 0x475   : > { %2862 = vperm.xlu0 %3752, %v3772_v14   ;;  %v3794_v25 = vpop.eup %3793  ;;  %3805 = vrcp.f32 %v2791_v37  ;;  %v2745_v14 = vld [vmem:[#allocation4 + $0xb8] sm:$0xff] }
 0x476   : > { %v3796_v26 = vpop.eup %3795  ;;  %3807 = vrcp.f32 %v2790_v4 }
 0x477   : > { %v3798_v29 = vpop.eup %3797  ;;  %3809 = vrcp.f32 %v2795_v51 }
 0x478   : > { %v3800_v22 = vpop.eup %3799  ;;  %3811 = vrcp.f32 %v2794_v23 }
 0x479   : > { %v3802_v57 = vpop.eup %3801  ;;  %3813 = vrcp.f32 %v2793_v47 }
 0x47a   : > { %v3804_v8 = vpop.eup %3803  ;;  %3815 = vrcp.f32 %v2797_v48 }
 0x47b   : > { %2887 = vperm.xlu2 %3754, %v3774_v9   ;;  %v3806_v56 = vpop.eup %3805  ;;  %3817 = vrcp.f32 %v2796_v13  ;;  %v2741_v13 = vld [vmem:[#allocation4 + $0x48] sm:$0xff] }
 0x47c   : > { %2882 = vperm.xlu1 %3753, %v3776_v6   ;;  %v3808_v41 = vpop.eup %3807  ;;  %v2734_v6 = vld [vmem:[#allocation4 + $0xb0] sm:$0xff] }
 0x47d   : > { %2877 = vperm.xlu0 %3752, %v3778_v40   ;;  %v3810_v5 = vpop.eup %3809 }
 0x47e   : > { %v3812_v2 = vpop.eup %3811 }
 0x47f   : > { %v3814_v30 = vpop.eup %3813 }
 0x480   : > { %v3816_v17 = vpop.eup %3815 }
 0x481   : > { %v3818_v12 = vpop.eup %3817 }
 0x483   : > { %2902 = vperm.xlu2 %3754, %v3780_v34  }
 0x484   : > { %2897 = vperm.xlu1 %3753, %v3782_v59  }
 0x485   : > { %2892 = vperm.xlu0 %3752, %v3784_v3  }
 0x48b   : > { %2917 = vperm.xlu2 %3754, %v3786_v1  }
 0x48c   : > { %2912 = vperm.xlu1 %3753, %v3788_v20  }
 0x48d   : > { %2907 = vperm.xlu0 %3752, %v3790_v36  }
 0x493   : > { %2932 = vperm.xlu2 %3754, %v3792_v62  }
 0x494   : > { %2927 = vperm.xlu1 %3753, %v3794_v25   ;;  %v2735_v25 = vld [vmem:[#allocation4] sm:$0xff] }
 0x495   : > { %2922 = vperm.xlu0 %3752, %v3796_v26  }
 0x49b   : > { %2947 = vperm.xlu2 %3754, %v3798_v29  }
 0x49c   : > { %2942 = vperm.xlu1 %3753, %v3800_v22  }
 0x49d   : > { %2937 = vperm.xlu0 %3752, %v3802_v57  }
 0x4a3   : > { %2962 = vperm.xlu2 %3754, %v3804_v8  }
 0x4a4   : > { %2957 = vperm.xlu1 %3753, %v3806_v56  }
 0x4a5   : > { %2952 = vperm.xlu0 %3752, %v3808_v41   ;;  %v2751_v41 = vld [vmem:[#allocation4 + $0x58] sm:$0xff] }
 0x4ab   : > { %2977 = vperm.xlu2 %3754, %v3810_v5  }
 0x4ac   : > { %2972 = vperm.xlu1 %3753, %v3812_v2  }
 0x4ad   : > { %2967 = vperm.xlu0 %3752, %v3814_v30  }
 0x4b4   : > { %2987 = vperm.xlu1 %3753, %v3816_v17  }
 0x4b5   : > { %2982 = vperm.xlu0 %3752, %v3818_v12  }
 0x4bd   : > { %v2853_v27 = vpop.permute.xlu2 %2852 }
 0x4be   : > { %v2994_v10 = vmul.f32 %v2853_v27, %v2738_v53  ;;  %v2740_v53 = vld [vmem:[#allocation4 + $0x30] sm:$0xff] }
 0x4c0   : > { %v3058_v7 = vmin.f32 %v2994_v10, 0.0  ;;  %vm3026_vm2 = vcmp.gt.f32.partialorder %v2994_v10, 0.0 }
 0x4c2   : > { %v3094_v15 = vmul.f32 1.442695, %v3058_v7 }
 0x4c4   : > { %3819 = vpow2.f32 %v3094_v15 }
 0x4c5   : > { %v2858_v24 = vpop.permute.xlu2 %2857 }
 0x4c6   : > { %v2995_v54 = vmul.f32 %v2858_v24, %v2739_v49 }
 0x4c8   : > { %v3059_v43 = vmin.f32 %v2995_v54, 0.0  ;;  %vm3027_vm3 = vcmp.gt.f32.partialorder %v2995_v54, 0.0 }
 0x4ca   : > { %v3820_v60 = vpop.eup %3819  ;;  %v3096_v55 = vmul.f32 1.442695, %v3059_v43 }
 0x4cb   : > { %v3434_v52 = vadd.f32 -1.0, %v3820_v60 }
 0x4cc   : > { %3821 = vpow2.f32 %v3096_v55 }
 0x4cd   : > { %v3186_v18 = vsel %vm3026_vm2, %v2994_v10, %v3434_v52  ;;  %v2873_v31 = vpop.permute.xlu2 %2872 }
 0x4ce   : > { %3218 = vst [vmem:[%s4059_s7 + $0x20] sm:$0xff] %v3186_v18  ;;  %v2998_v44 = vmul.f32 %v2873_v31, %v2742_v61 }
 0x4d0   : > { %v3062_v58 = vmin.f32 %v2998_v44, 0.0  ;;  %vm3030_vm4 = vcmp.gt.f32.partialorder %v2998_v44, 0.0 }
 0x4d2   : > { %v3822_v35 = vpop.eup %3821  ;;  %v3102_v63 = vmul.f32 1.442695, %v3062_v58  ;;  %v2754_v58 = vld [vmem:[#allocation4 + $0xe0] sm:$0xff] }
 0x4d3   : > { %v3435_v33 = vadd.f32 -1.0, %v3822_v35 }
 0x4d4   : > { %3823 = vpow2.f32 %v3102_v63 }
 0x4d5   : > { %v3187_v9 = vsel %vm3027_vm3, %v2995_v54, %v3435_v33  ;;  %v2888_v42 = vpop.permute.xlu2 %2887 }
 0x4d6   : > { %3219 = vst [vmem:[%s4059_s7 + $0x28] sm:$0xff] %v3187_v9  ;;  %v3001_v46 = vmul.f32 %v2888_v42, %v2745_v14  ;;  %v2843_v40 = vpop.permute.xlu1 %2842  ;;  %v2744_v14 = vld [vmem:[#allocation4 + $0xe8] sm:$0xff] }
 0x4d7   : > { %v2992_v0 = vmul.f32 %v2843_v40, %v2736_v45  ;;  %v2833_v34 = vpop.permute.xlu0 %2832 }
 0x4d8   : > { %v3065_v39 = vmin.f32 %v3001_v46, 0.0  ;;  %v2990_v59 = vmul.f32 %v2833_v34, %v2734_v6  ;;  %vm3033_vm5 = vcmp.gt.f32.partialorder %v3001_v46, 0.0  ;;  %v2743_v6 = vld [vmem:[#allocation4 + $0x88] sm:$0xff] }
 0x4d9   : > { %v3056_v50 = vmin.f32 %v2992_v0, 0.0  ;;  %vm3024_vm6 = vcmp.gt.f32.partialorder %v2992_v0, 0.0 }
 0x4da   : > { %v3824_v3 = vpop.eup %3823  ;;  %v3108_v28 = vmul.f32 1.442695, %v3065_v39  ;;  %v3054_v1 = vmin.f32 %v2990_v59, 0.0  ;;  %vm3022_vm7 = vcmp.gt.f32.partialorder %v2990_v59, 0.0 }
 0x4db   : > { %v3438_v32 = vadd.f32 -1.0, %v3824_v3  ;;  %v3090_v20 = vmul.f32 1.442695, %v3056_v50 }
 0x4dc   : > { %3825 = vpow2.f32 %v3108_v28  ;;  %v3086_v36 = vmul.f32 1.442695, %v3054_v1 }
 0x4dd   : > { %v3190_v62 = vsel %vm3030_vm4, %v2998_v44, %v3438_v32  ;;  %3827 = vpow2.f32 %v3090_v20  ;;  %v2903_v16 = vpop.permute.xlu2 %2902 }
 0x4de   : > { %3222 = vst [vmem:[%s4059_s7 + $0x40] sm:$0xff] %v3190_v62  ;;  %3829 = vpow2.f32 %v3086_v36  ;;  %v3004_v38 = vmul.f32 %v2903_v16, %v2748_v19  ;;  %v2848_v26 = vpop.permute.xlu1 %2847  ;;  %v2757_v62 = vld [vmem:[#allocation4 + $0xc0] sm:$0xff] }
 0x4df   : > { %v2993_v21 = vmul.f32 %v2848_v26, %v2737_v11  ;;  %v2838_v29 = vpop.permute.xlu0 %2837  ;;  %v2747_v26 = vld [vmem:[#allocation4 + $0xf0] sm:$0xff] }
 0x4e0   : > { %v3068_v37 = vmin.f32 %v3004_v38, 0.0  ;;  %v2991_v22 = vmul.f32 %v2838_v29, %v2735_v25  ;;  %vm3036_vm8 = vcmp.gt.f32.partialorder %v3004_v38, 0.0 }
 0x4e1   : > { %v3057_v4 = vmin.f32 %v2993_v21, 0.0  ;;  %vm3025_vm9 = vcmp.gt.f32.partialorder %v2993_v21, 0.0 }
 0x4e2   : > { %v3826_v57 = vpop.eup %3825  ;;  %v3114_v51 = vmul.f32 1.442695, %v3068_v37  ;;  %v3055_v8 = vmin.f32 %v2991_v22, 0.0  ;;  %vm3023_vm10 = vcmp.gt.f32.partialorder %v2991_v22, 0.0 }
 0x4e3   : > { %v3828_v23 = vpop.eup %3827  ;;  %v3441_v56 = vadd.f32 -1.0, %v3826_v57  ;;  %v3092_v47 = vmul.f32 1.442695, %v3057_v4 }
 0x4e4   : > { %v3830_v5 = vpop.eup %3829  ;;  %v3432_v48 = vadd.f32 -1.0, %v3828_v23  ;;  %3831 = vpow2.f32 %v3114_v51  ;;  %v3088_v2 = vmul.f32 1.442695, %v3055_v8 }
 0x4e5   : > { %v3193_v30 = vsel %vm3033_vm5, %v3001_v46, %v3441_v56  ;;  %v3430_v17 = vadd.f32 -1.0, %v3830_v5  ;;  %3833 = vpow2.f32 %v3092_v47  ;;  %v2918_v12 = vpop.permute.xlu2 %2917 }
 0x4e6   : > { %3225 = vst [vmem:[%s4059_s7 + $0x58] sm:$0xff] %v3193_v30  ;;  %v3184_v27 = vsel %vm3024_vm6, %v2992_v0, %v3432_v48  ;;  %3835 = vpow2.f32 %v3088_v2  ;;  %v3007_v10 = vmul.f32 %v2918_v12, %v2751_v41  ;;  %v2868_v7 = vpop.permute.xlu1 %2867 }
 0x4e7   : > { %3216 = vst [vmem:[%s4059_s7 + $0x10] sm:$0xff] %v3184_v27  ;;  %v3182_v15 = vsel %vm3022_vm7, %v2990_v59, %v3430_v17  ;;  %v2997_v49 = vmul.f32 %v2868_v7, %v2741_v13  ;;  %v2863_v24 = vpop.permute.xlu0 %2862 }
 0x4e8   : > { %3214 = vst [vmem:[%s4059_s7] sm:$0xff] %v3182_v15  ;;  %v3071_v54 = vmin.f32 %v3007_v10, 0.0  ;;  %v2996_v43 = vmul.f32 %v2863_v24, %v2740_v53  ;;  %vm3039_vm11 = vcmp.gt.f32.partialorder %v3007_v10, 0.0  ;;  %v2760_v53 = vld [vmem:[#allocation4 + $0x10] sm:$0xff]  ;;  %v2750_v15 = vld [vmem:[#allocation4 + $0x38] sm:$0xff] }
 0x4e9   : > { %v3061_v60 = vmin.f32 %v2997_v49, 0.0  ;;  %vm3029_vm12 = vcmp.gt.f32.partialorder %v2997_v49, 0.0 }
 0x4ea   : > { %v3832_v55 = vpop.eup %3831  ;;  %v3120_v52 = vmul.f32 1.442695, %v3071_v54  ;;  %v3060_v61 = vmin.f32 %v2996_v43, 0.0  ;;  %vm3028_vm13 = vcmp.gt.f32.partialorder %v2996_v43, 0.0 }
 0x4eb   : > { %v3834_v18 = vpop.eup %3833  ;;  %v3444_v31 = vadd.f32 -1.0, %v3832_v55  ;;  %v3100_v44 = vmul.f32 1.442695, %v3061_v60 }
 0x4ec   : > { %v3836_v35 = vpop.eup %3835  ;;  %v3433_v63 = vadd.f32 -1.0, %v3834_v18  ;;  %3837 = vpow2.f32 %v3120_v52  ;;  %v3098_v33 = vmul.f32 1.442695, %v3060_v61 }
 0x4ed   : > { %v3196_v45 = vsel %vm3036_vm8, %v3004_v38, %v3444_v31  ;;  %v3431_v9 = vadd.f32 -1.0, %v3836_v35  ;;  %3839 = vpow2.f32 %v3100_v44  ;;  %v2933_v42 = vpop.permute.xlu2 %2932 }
 0x4ee   : > { %3228 = vst [vmem:[%s4059_s7 + $0x70] sm:$0xff] %v3196_v45  ;;  %v3185_v46 = vsel %vm3025_vm9, %v2993_v21, %v3433_v63  ;;  %3841 = vpow2.f32 %v3098_v33  ;;  %v3010_v40 = vmul.f32 %v2933_v42, %v2754_v58  ;;  %v2883_v0 = vpop.permute.xlu1 %2882 }
 0x4ef   : > { %3217 = vst [vmem:[%s4059_s7 + $0x18] sm:$0xff] %v3185_v46  ;;  %v3183_v34 = vsel %vm3023_vm10, %v2991_v22, %v3431_v9  ;;  %v3000_v39 = vmul.f32 %v2883_v0, %v2744_v14  ;;  %v2878_v59 = vpop.permute.xlu0 %2877  ;;  %v2746_v22 = vld [vmem:[#allocation4 + $0x60] sm:$0xff] }
 0x4f0   : > { %3215 = vst [vmem:[%s4059_s7 + $0x8] sm:$0xff] %v3183_v34  ;;  %v3074_v50 = vmin.f32 %v3010_v40, 0.0  ;;  %v2999_v3 = vmul.f32 %v2878_v59, %v2743_v6  ;;  %vm3042_vm14 = vcmp.gt.f32.partialorder %v3010_v40, 0.0  ;;  %v2763_v6 = vld [vmem:[#allocation4 + $0xf8] sm:$0xff]  ;;  %v2753_v34 = vld [vmem:[#allocation4 + $0xc8] sm:$0xff] }
 0x4f1   : > { %v3064_v28 = vmin.f32 %v3000_v39, 0.0  ;;  %vm3032_vm15 = vcmp.gt.f32.partialorder %v3000_v39, 0.0 }
 0x4f2   : > { %v3838_v1 = vpop.eup %3837  ;;  %v3126_v32 = vmul.f32 1.442695, %v3074_v50  ;;  %v3063_v20 = vmin.f32 %v2999_v3, 0.0  ;;  %vm3031_vm0 = vcmp.gt.f32.partialorder %v2999_v3, 0.0 }
 0x4f3   : > { %v3840_v19 = vpop.eup %3839  ;;  %v3447_v36 = vadd.f32 -1.0, %v3838_v1  ;;  %v3106_v11 = vmul.f32 1.442695, %v3064_v28 }
 0x4f4   : > { %v3842_v16 = vpop.eup %3841  ;;  %v3437_v25 = vadd.f32 -1.0, %v3840_v19  ;;  %3843 = vpow2.f32 %v3126_v32  ;;  %v3104_v38 = vmul.f32 1.442695, %v3063_v20 }
 0x4f5   : > { %v3199_v21 = vsel %vm3039_vm11, %v3007_v10, %v3447_v36  ;;  %v3436_v29 = vadd.f32 -1.0, %v3842_v16  ;;  %3845 = vpow2.f32 %v3106_v11  ;;  %v2948_v37 = vpop.permute.xlu2 %2947 }
 0x4f6   : > { %3231 = vst [vmem:[%s4059_s7 + $0x88] sm:$0xff] %v3199_v21  ;;  %v3189_v4 = vsel %vm3029_vm12, %v2997_v49, %v3437_v25  ;;  %3847 = vpow2.f32 %v3104_v38  ;;  %v3013_v57 = vmul.f32 %v2948_v37, %v2757_v62  ;;  %v2898_v51 = vpop.permute.xlu1 %2897 }
 0x4f7   : > { %3221 = vst [vmem:[%s4059_s7 + $0x38] sm:$0xff] %v3189_v4  ;;  %v3188_v8 = vsel %vm3028_vm13, %v2996_v43, %v3436_v29  ;;  %v3003_v23 = vmul.f32 %v2898_v51, %v2747_v26  ;;  %v2893_v56 = vpop.permute.xlu0 %2892  ;;  %v2749_v43 = vld [vmem:[#allocation4 + $0x78] sm:$0xff]  ;;  %v2756_v51 = vld [vmem:[#allocation4 + $0x70] sm:$0xff] }
 0x4f8   : > { %3220 = vst [vmem:[%s4059_s7 + $0x30] sm:$0xff] %v3188_v8  ;;  %v3077_v47 = vmin.f32 %v3013_v57, 0.0  ;;  %v3002_v41 = vmul.f32 %v2893_v56, %v2746_v22  ;;  %vm3045_vm1 = vcmp.gt.f32.partialorder %v3013_v57, 0.0  ;;  %v2755_v56 = vld [vmem:[#allocation4 + $0x90] sm:$0xff] }
 0x4f9   : > { %v3067_v5 = vmin.f32 %v3003_v23, 0.0  ;;  %vm3035_vm2 = vcmp.gt.f32.partialorder %v3003_v23, 0.0 }
 0x4fa   : > { %v3844_v48 = vpop.eup %3843  ;;  %v3132_v2 = vmul.f32 1.442695, %v3077_v47  ;;  %v3066_v13 = vmin.f32 %v3002_v41, 0.0  ;;  %vm3034_vm3 = vcmp.gt.f32.partialorder %v3002_v41, 0.0 }
 0x4fb   : > { %v3846_v30 = vpop.eup %3845  ;;  %v3450_v17 = vadd.f32 -1.0, %v3844_v48  ;;  %v3112_v12 = vmul.f32 1.442695, %v3067_v5 }
 0x4fc   : > { %v3848_v27 = vpop.eup %3847  ;;  %v3440_v10 = vadd.f32 -1.0, %v3846_v30  ;;  %3849 = vpow2.f32 %v3132_v2  ;;  %v3110_v7 = vmul.f32 1.442695, %v3066_v13 }
 0x4fd   : > { %v3202_v49 = vsel %vm3042_vm14, %v3010_v40, %v3450_v17  ;;  %v3439_v24 = vadd.f32 -1.0, %v3848_v27  ;;  %3851 = vpow2.f32 %v3112_v12  ;;  %v2963_v54 = vpop.permute.xlu2 %2962 }
 0x4fe   : > { %3234 = vst [vmem:[%s4059_s7 + $0xa0] sm:$0xff] %v3202_v49  ;;  %v3192_v60 = vsel %vm3032_vm15, %v3000_v39, %v3440_v10  ;;  %3853 = vpow2.f32 %v3110_v7  ;;  %v3016_v55 = vmul.f32 %v2963_v54, %v2760_v53  ;;  %v2913_v52 = vpop.permute.xlu1 %2912 }
 0x4ff   : > { %3224 = vst [vmem:[%s4059_s7 + $0x50] sm:$0xff] %v3192_v60  ;;  %v3191_v61 = vsel %vm3031_vm0, %v2999_v3, %v3439_v24  ;;  %v3006_v18 = vmul.f32 %v2913_v52, %v2750_v15  ;;  %v2908_v31 = vpop.permute.xlu0 %2907  ;;  %v2752_v3 = vld [vmem:[#allocation4 + $0x40] sm:$0xff]  ;;  %v2759_v24 = vld [vmem:[#allocation4 + $0xd0] sm:$0xff]  ;;  %v2758_v60 = vld [vmem:[#allocation4 + $0xa8] sm:$0xff] }
 0x500   : > { %3223 = vst [vmem:[%s4059_s7 + $0x48] sm:$0xff] %v3191_v61  ;;  %v3080_v44 = vmin.f32 %v3016_v55, 0.0  ;;  %v3005_v58 = vmul.f32 %v2908_v31, %v2749_v43  ;;  %vm3048_vm4 = vcmp.gt.f32.partialorder %v3016_v55, 0.0 }
 0x501   : > { %v3070_v35 = vmin.f32 %v3006_v18, 0.0  ;;  %vm3038_vm5 = vcmp.gt.f32.partialorder %v3006_v18, 0.0 }
 0x502   : > { %v3850_v63 = vpop.eup %3849  ;;  %v3138_v33 = vmul.f32 1.442695, %v3080_v44  ;;  %v3069_v14 = vmin.f32 %v3005_v58, 0.0  ;;  %vm3037_vm6 = vcmp.gt.f32.partialorder %v3005_v58, 0.0 }
 0x503   : > { %v3852_v45 = vpop.eup %3851  ;;  %v3453_v9 = vadd.f32 -1.0, %v3850_v63  ;;  %v3118_v42 = vmul.f32 1.442695, %v3070_v35 }
 0x504   : > { %v3854_v46 = vpop.eup %3853  ;;  %v3443_v40 = vadd.f32 -1.0, %v3852_v45  ;;  %3855 = vpow2.f32 %v3138_v33  ;;  %v3116_v0 = vmul.f32 1.442695, %v3069_v14 }
 0x505   : > { %v3205_v39 = vsel %vm3045_vm1, %v3013_v57, %v3453_v9  ;;  %v3442_v59 = vadd.f32 -1.0, %v3854_v46  ;;  %3857 = vpow2.f32 %v3118_v42  ;;  %v2978_v50 = vpop.permute.xlu2 %2977  ;;  %v2762_v42 = vld [vmem:[#allocation4 + $0xa0] sm:$0xff]  ;;  %v2761_v46 = vld [vmem:[#allocation4 + $0x28] sm:$0xff] }
 0x506   : > { %3237 = vst [vmem:[%s4059_s7 + $0xb8] sm:$0xff] %v3205_v39  ;;  %v3195_v28 = vsel %vm3035_vm2, %v3003_v23, %v3443_v40  ;;  %3859 = vpow2.f32 %v3116_v0  ;;  %v3019_v1 = vmul.f32 %v2978_v50, %v2763_v6  ;;  %v2928_v32 = vpop.permute.xlu1 %2927 }
 0x507   : > { %3227 = vst [vmem:[%s4059_s7 + $0x68] sm:$0xff] %v3195_v28  ;;  %v3194_v20 = vsel %vm3034_vm3, %v3002_v41, %v3442_v59  ;;  %v3009_v19 = vmul.f32 %v2928_v32, %v2753_v34  ;;  %v2923_v36 = vpop.permute.xlu0 %2922 }
 0x508   : > { %3226 = vst [vmem:[%s4059_s7 + $0x60] sm:$0xff] %v3194_v20  ;;  %v3083_v11 = vmin.f32 %v3019_v1, 0.0  ;;  %v3008_v62 = vmul.f32 %v2923_v36, %v2752_v3  ;;  %vm3051_vm7 = vcmp.gt.f32.partialorder %v3019_v1, 0.0 }
 0x509   : > { %v3073_v16 = vmin.f32 %v3009_v19, 0.0  ;;  %vm3041_vm8 = vcmp.gt.f32.partialorder %v3009_v19, 0.0 }
 0x50a   : > { %v3856_v25 = vpop.eup %3855  ;;  %v3144_v38 = vmul.f32 1.442695, %v3083_v11  ;;  %v3072_v26 = vmin.f32 %v3008_v62, 0.0  ;;  %vm3040_vm9 = vcmp.gt.f32.partialorder %v3008_v62, 0.0  ;;  %v2765_v11 = vld [vmem:[#allocation4 + $0x98] sm:$0xff] }
 0x50b   : > { %v3858_v21 = vpop.eup %3857  ;;  %v3456_v29 = vadd.f32 -1.0, %v3856_v25  ;;  %v3124_v37 = vmul.f32 1.442695, %v3073_v16  ;;  %v2764_v16 = vld [vmem:[#allocation4 + $0x20] sm:$0xff] }
 0x50c   : > { %v3860_v22 = vpop.eup %3859  ;;  %v3446_v4 = vadd.f32 -1.0, %v3858_v21  ;;  %3861 = vpow2.f32 %v3144_v38  ;;  %v3122_v57 = vmul.f32 1.442695, %v3072_v26 }
 0x50d   : > { %v3208_v8 = vsel %vm3048_vm4, %v3016_v55, %v3456_v29  ;;  %v3445_v23 = vadd.f32 -1.0, %v3860_v22  ;;  %3863 = vpow2.f32 %v3124_v37 }
 0x50e   : > { %3240 = vst [vmem:[%s4059_s7 + $0xd0] sm:$0xff] %v3208_v8  ;;  %v3198_v47 = vsel %vm3038_vm5, %v3006_v18, %v3446_v4  ;;  %3865 = vpow2.f32 %v3122_v57  ;;  %v2943_v41 = vpop.permute.xlu1 %2942 }
 0x50f   : > { %3230 = vst [vmem:[%s4059_s7 + $0x80] sm:$0xff] %v3198_v47  ;;  %v3197_v5 = vsel %vm3037_vm6, %v3005_v58, %v3445_v23  ;;  %v3012_v48 = vmul.f32 %v2943_v41, %v2756_v51  ;;  %v2938_v2 = vpop.permute.xlu0 %2937 }
 0x510   : > { %3229 = vst [vmem:[%s4059_s7 + $0x78] sm:$0xff] %v3197_v5  ;;  %v3011_v13 = vmul.f32 %v2938_v2, %v2755_v56 }
 0x511   : > { %v3076_v30 = vmin.f32 %v3012_v48, 0.0  ;;  %vm3044_vm10 = vcmp.gt.f32.partialorder %v3012_v48, 0.0 }
 0x512   : > { %v3862_v17 = vpop.eup %3861  ;;  %v3075_v12 = vmin.f32 %v3011_v13, 0.0  ;;  %vm3043_vm11 = vcmp.gt.f32.partialorder %v3011_v13, 0.0 }
 0x513   : > { %v3864_v53 = vpop.eup %3863  ;;  %v3459_v27 = vadd.f32 -1.0, %v3862_v17  ;;  %v3130_v10 = vmul.f32 1.442695, %v3076_v30 }
 0x514   : > { %v3866_v7 = vpop.eup %3865  ;;  %v3449_v15 = vadd.f32 -1.0, %v3864_v53  ;;  %v3128_v49 = vmul.f32 1.442695, %v3075_v12 }
 0x515   : > { %v3211_v54 = vsel %vm3051_vm7, %v3019_v1, %v3459_v27  ;;  %v3448_v43 = vadd.f32 -1.0, %v3866_v7  ;;  %3867 = vpow2.f32 %v3130_v10 }
 0x516   : > { %3243 = vst [vmem:[%s4059_s7 + $0xe8] sm:$0xff] %v3211_v54  ;;  %v3201_v55 = vsel %vm3041_vm8, %v3009_v19, %v3449_v15  ;;  %3869 = vpow2.f32 %v3128_v49  ;;  %v2958_v52 = vpop.permute.xlu1 %2957 }
 0x517   : > { %3233 = vst [vmem:[%s4059_s7 + $0x98] sm:$0xff] %v3201_v55  ;;  %v3200_v61 = vsel %vm3040_vm9, %v3008_v62, %v3448_v43  ;;  %v3015_v18 = vmul.f32 %v2958_v52, %v2759_v24  ;;  %v2953_v31 = vpop.permute.xlu0 %2952 }
 0x518   : > { %3232 = vst [vmem:[%s4059_s7 + $0x90] sm:$0xff] %v3200_v61  ;;  %v3014_v44 = vmul.f32 %v2953_v31, %v2758_v60 }
 0x519   : > { %v3079_v58 = vmin.f32 %v3015_v18, 0.0  ;;  %vm3047_vm12 = vcmp.gt.f32.partialorder %v3015_v18, 0.0 }
 0x51a   : > { %v3078_v35 = vmin.f32 %v3014_v44, 0.0  ;;  %vm3046_vm13 = vcmp.gt.f32.partialorder %v3014_v44, 0.0 }
 0x51b   : > { %v3868_v63 = vpop.eup %3867  ;;  %v3136_v33 = vmul.f32 1.442695, %v3079_v58 }
 0x51c   : > { %v3870_v14 = vpop.eup %3869  ;;  %v3452_v45 = vadd.f32 -1.0, %v3868_v63  ;;  %v3134_v9 = vmul.f32 1.442695, %v3078_v35 }
 0x51d   : > { %v3451_v6 = vadd.f32 -1.0, %v3870_v14  ;;  %3871 = vpow2.f32 %v3136_v33 }
 0x51e   : > { %v3204_v40 = vsel %vm3044_vm10, %v3012_v48, %v3452_v45  ;;  %3873 = vpow2.f32 %v3134_v9  ;;  %v2973_v0 = vpop.permute.xlu1 %2972 }
 0x51f   : > { %3236 = vst [vmem:[%s4059_s7 + $0xb0] sm:$0xff] %v3204_v40  ;;  %v3203_v34 = vsel %vm3043_vm11, %v3011_v13, %v3451_v6  ;;  %v3018_v39 = vmul.f32 %v2973_v0, %v2762_v42  ;;  %v2968_v59 = vpop.permute.xlu0 %2967 }
 0x520   : > { %3235 = vst [vmem:[%s4059_s7 + $0xa8] sm:$0xff] %v3203_v34  ;;  %v3017_v50 = vmul.f32 %v2968_v59, %v2761_v46 }
 0x521   : > { %v3082_v3 = vmin.f32 %v3018_v39, 0.0  ;;  %vm3050_vm14 = vcmp.gt.f32.partialorder %v3018_v39, 0.0 }
 0x522   : > { %v3081_v28 = vmin.f32 %v3017_v50, 0.0  ;;  %vm3049_vm15 = vcmp.gt.f32.partialorder %v3017_v50, 0.0 }
 0x523   : > { %v3872_v1 = vpop.eup %3871  ;;  %v3142_v32 = vmul.f32 1.442695, %v3082_v3 }
 0x524   : > { %v3874_v20 = vpop.eup %3873  ;;  %v3455_v19 = vadd.f32 -1.0, %v3872_v1  ;;  %v3140_v36 = vmul.f32 1.442695, %v3081_v28 }
 0x525   : > { %v3454_v62 = vadd.f32 -1.0, %v3874_v20  ;;  %3875 = vpow2.f32 %v3142_v32 }
 0x526   : > { %v3207_v25 = vsel %vm3047_vm12, %v3015_v18, %v3455_v19  ;;  %3877 = vpow2.f32 %v3140_v36  ;;  %v2988_v38 = vpop.permute.xlu1 %2987 }
 0x527   : > { %3239 = vst [vmem:[%s4059_s7 + $0xc8] sm:$0xff] %v3207_v25  ;;  %v3206_v26 = vsel %vm3046_vm13, %v3014_v44, %v3454_v62  ;;  %v3021_v21 = vmul.f32 %v2988_v38, %v2765_v11  ;;  %v2983_v29 = vpop.permute.xlu0 %2982 }
 0x528   : > { %3238 = vst [vmem:[%s4059_s7 + $0xc0] sm:$0xff] %v3206_v26  ;;  %v3020_v37 = vmul.f32 %v2983_v29, %v2764_v16 }
 0x529   : > { %v3085_v22 = vmin.f32 %v3021_v21, 0.0  ;;  %vm3053_vm0 = vcmp.gt.f32.partialorder %v3021_v21, 0.0 }
 0x52a   : > { %v3084_v4 = vmin.f32 %v3020_v37, 0.0  ;;  %vm3052_vm1 = vcmp.gt.f32.partialorder %v3020_v37, 0.0 }
 0x52b   : > { %v3876_v57 = vpop.eup %3875  ;;  %v3148_v51 = vmul.f32 1.442695, %v3085_v22 }
 0x52c   : > { %v3878_v8 = vpop.eup %3877  ;;  %v3458_v23 = vadd.f32 -1.0, %v3876_v57  ;;  %v3146_v56 = vmul.f32 1.442695, %v3084_v4 }
 0x52d   : > { %v3457_v47 = vadd.f32 -1.0, %v3878_v8  ;;  %3879 = vpow2.f32 %v3148_v51 }
 0x52e   : > { %v3210_v41 = vsel %vm3050_vm14, %v3018_v39, %v3458_v23  ;;  %3881 = vpow2.f32 %v3146_v56 }
 0x52f   : > { %3242 = vst [vmem:[%s4059_s7 + $0xe0] sm:$0xff] %v3210_v41  ;;  %v3209_v5 = vsel %vm3049_vm15, %v3017_v50, %v3457_v47 }
 0x530   : > { %3241 = vst [vmem:[%s4059_s7 + $0xd8] sm:$0xff] %v3209_v5 }
 0x533   : > { %v3880_v48 = vpop.eup %3879 }
 0x534   : > { %v3882_v2 = vpop.eup %3881  ;;  %v3461_v13 = vadd.f32 -1.0, %v3880_v48 }
 0x535   : > { %v3460_v30 = vadd.f32 -1.0, %v3882_v2 }
 0x536   : > { %v3213_v17 = vsel %vm3053_vm0, %v3021_v21, %v3461_v13 }
 0x537   : > { %3245 = vst [vmem:[%s4059_s7 + $0xf8] sm:$0xff] %v3213_v17  ;;  %v3212_v12 = vsel %vm3052_vm1, %v3020_v37, %v3460_v30 }
 0x538   : > { %3244 = vst [vmem:[%s4059_s7 + $0xf0] sm:$0xff] %v3212_v12 }
 0x539 PF: > { %s14_s21 = sadd.s32 1, %s3937_s21   ;;  %s6229_s15 = smov %s3917_s16 }
 0x53a   : > { %p11_p0 = scmp.ge.s32.totalorder %s14_s21, 6   ;;  %s6230_s16 = smov %s4019_s28 }
 0x53b   : > { %s6231_s17 = smov %s3929_s19  ;;  %s6232_s18 = smov %s3933_s20 }
 0x53c   : > { %s6233_s19 = smov %s6236_s22  ;;  %s6234_s20 = smov %s6240_s23 }
 0x53d   :  { %13 = sbr.rel (!%p11_p0) target bundleno = 4 (0x4), region = 109 }

</bundles_post_ra>
